<compile_context>
chip_gen: v7x
topology: tpu7x:2x2x1
jax: 0.10.0
libtpu: 0.0.40
codegen_flags: <defaults>
</compile_context>

<pallas_src>
import jax
import jax.numpy as jnp
from jax.experimental import pallas as pl
from jax.experimental.pallas import tpu as pltpu

NUM_JOINTS = 17
INPUT_DIM = 2
FEAT_DIM = 8          # [x, y, score, 1(bias), 0, 0, 0, 0] -> MXU-friendly K
HIDDEN0 = 128
HIDDEN1 = 64
OUT_DIM = 128
PROJ_IN = NUM_JOINTS * HIDDEN1   # 1088


def _round_up(x, m):
    return (x + m - 1) // m * m


def encoder_kernel(feat_ref, w1a_ref, w2t_ref, b2_ref, w3t_ref, b3_ref,
                   out_ref, wbuf_ref):
    """One batch block, transposed activations (hidden in sublanes, batch in lanes).

    feat_ref : (8, J*Bn)    f32   rows = [x, y, score, 1, 0, 0, 0, 0], joint-major lanes
    w1a_ref  : (128, 8)     f32   mlp[0].weight with bias folded into column 3
    w2t_ref  : (64, 128)    bf16  mlp[2].weight (torch (out, in) layout)
    b2_ref   : (64, 1)      f32
    w3t_ref  : (128, 1088)  bf16  proj.weight (torch (out, in) layout)
    b3_ref   : (128, 1)     f32
    out_ref  : (128, Bn)    f32   transposed output block
    wbuf_ref : (1088, Bn)   bf16  scratch: weighted h2 restacked joint-major along K
    """
    bn = out_ref.shape[1]

    feat = feat_ref[...]                                       # (8, J*Bn) f32

    # ---- Layer 1: single MXU dot over all joints & batch (bias via ones row).
    h1 = jnp.dot(w1a_ref[...], feat, preferred_element_type=jnp.float32)
    h1 = jnp.maximum(h1, 0.0).astype(jnp.bfloat16)             # (128, J*Bn)

    # ---- Layer 2: single MXU dot over all joints & batch.
    h2 = jnp.dot(w2t_ref[...], h1, preferred_element_type=jnp.float32)
    h2 = jnp.maximum(h2 + b2_ref[...], 0.0)                    # (64, J*Bn) f32

    # ---- Score weighting (score = feature row 2) in one VPU pass.
    weighted = (h2 * feat[2:3, :]).astype(jnp.bfloat16)        # (64, J*Bn)

    # ---- Restack joints into the contraction dim of the projection:
    #      (64, J*Bn) lane blocks -> (J*64, Bn) sublane blocks.
    #      17 statically-indexed, tile-aligned vreg copies.
    for j in range(NUM_JOINTS):
        wbuf_ref[j * HIDDEN1:(j + 1) * HIDDEN1, :] = (
            weighted[:, j * bn:(j + 1) * bn])

    # ---- Projection: one K = 1088 MXU dot with internal f32 accumulation.
    acc = jnp.dot(w3t_ref[...], wbuf_ref[...],
                  preferred_element_type=jnp.float32)          # (128, Bn)
    out_ref[...] = acc + b3_ref[...]


def weighted_mlp_encoder(keypoints, scores, mask, params, *, block_n=256):
    """keypoints (N, J, 2), scores (N, J), mask (N, 1) -> (N, OUT_DIM) f32."""
    w1, b1, w2, b2, w3, b3 = params          # torch nn.Linear (out, in) layouts
    n = keypoints.shape[0]

    # Batch lives in the lane dim -> blocks are multiples of 128.
    assert block_n % 128 == 0
    bn = min(block_n, _round_up(n, 128))
    n_pad = _round_up(n, bn)
    n_blocks = n_pad // bn

    # ---- feature prep in XLA (a few KB; fuses into one fusion under jit).
    kmin = jnp.min(keypoints, axis=1, keepdims=True)
    kmax = jnp.max(keypoints, axis=1, keepdims=True)
    knorm = (keypoints - kmin) / (kmax - kmin + 1e-6)            # (N, J, 2)
    ones = jnp.ones_like(scores)
    zeros = jnp.zeros_like(scores)
    feat = jnp.stack([knorm[..., 0], knorm[..., 1], scores, ones,
                      zeros, zeros, zeros, zeros], axis=0)       # (8, N, J)
    feat = jnp.transpose(feat, (0, 2, 1)).astype(jnp.float32)    # (8, J, N)
    feat = jnp.pad(feat, ((0, 0), (0, 0), (0, n_pad - n)))       # (8, J, N_pad)
    # Lane order inside each batch block: joint-major, batch-minor.
    feat = (feat.reshape(FEAT_DIM, NUM_JOINTS, n_blocks, bn)
                .transpose(0, 2, 1, 3)
                .reshape(FEAT_DIM, n_blocks * NUM_JOINTS * bn))

    # ---- weight prep: transposed-orientation operands, bf16 on the big dots.
    w1a = jnp.concatenate(
        [w1.astype(jnp.float32),
         b1.astype(jnp.float32)[:, None],
         jnp.zeros((HIDDEN0, FEAT_DIM - (INPUT_DIM + 1) - 1), jnp.float32)],
        axis=1)                                                  # (128, 8)
    w2t = w2.astype(jnp.bfloat16)                                # (64, 128)
    b2c = b2.astype(jnp.float32)[:, None]                        # (64, 1)
    w3t = w3.astype(jnp.bfloat16)                                # (128, 1088)
    b3c = b3.astype(jnp.float32)[:, None]                        # (128, 1)

    flops = 2 * n_pad * NUM_JOINTS * (
        FEAT_DIM * HIDDEN0 + HIDDEN0 * HIDDEN1 + HIDDEN1 * OUT_DIM)
    bytes_accessed = (feat.size * 4 + n_pad * OUT_DIM * 4
                      + w1a.size * 4 + w2t.size * 2 + b2c.size * 4
                      + w3t.size * 2 + b3c.size * 4)

    out_t = pl.pallas_call(
        encoder_kernel,
        out_shape=jax.ShapeDtypeStruct((OUT_DIM, n_pad), jnp.float32),
        grid_spec=pltpu.PrefetchScalarGridSpec(
            num_scalar_prefetch=0,
            grid=(n_blocks,),
            in_specs=[
                pl.BlockSpec((FEAT_DIM, NUM_JOINTS * bn), lambda i: (0, i)),
                pl.BlockSpec((HIDDEN0, FEAT_DIM), lambda i: (0, 0)),
                pl.BlockSpec((HIDDEN1, HIDDEN0), lambda i: (0, 0)),
                pl.BlockSpec((HIDDEN1, 1), lambda i: (0, 0)),
                pl.BlockSpec((OUT_DIM, PROJ_IN), lambda i: (0, 0)),
                pl.BlockSpec((OUT_DIM, 1), lambda i: (0, 0)),
            ],
            out_specs=pl.BlockSpec((OUT_DIM, bn), lambda i: (0, i)),
            scratch_shapes=[pltpu.VMEM((PROJ_IN, bn), jnp.bfloat16)],
        ),
        compiler_params=pltpu.CompilerParams(
            dimension_semantics=("parallel",)),
        cost_estimate=pl.CostEstimate(
            flops=flops, transcendentals=0, bytes_accessed=bytes_accessed),
    )(feat, w1a, w2t, b2c, w3t, b3c)

    out = out_t[:, :n].T                                         # (N, OUT_DIM)
    # None-detections -> exact zeros (robust even to NaN placeholder inputs).
    return jnp.where(mask > 0, out, 0.0)


def init_params(key):
    """Parameters in the torch nn.Linear (out_dim, in_dim) layout."""
    k1, k2, k3, k4, k5, k6 = jax.random.split(key, 6)
    w1 = jax.random.uniform(k1, (HIDDEN0, INPUT_DIM + 1), jnp.float32, -0.5, 0.5)
    b1 = jax.random.uniform(k2, (HIDDEN0,), jnp.float32, -0.5, 0.5)
    w2 = jax.random.uniform(k3, (HIDDEN1, HIDDEN0), jnp.float32, -0.1, 0.1)
    b2 = jax.random.uniform(k4, (HIDDEN1,), jnp.float32, -0.1, 0.1)
    w3 = jax.random.uniform(k5, (OUT_DIM, PROJ_IN), jnp.float32, -0.03, 0.03)
    b3 = jax.random.uniform(k6, (OUT_DIM,), jnp.float32, -0.03, 0.03)
    return (w1, b1, w2, b2, w3, b3)


def reference_forward(keypoints, scores, mask, params):
    """Pure-JAX f32 reference mirroring the PyTorch forward."""
    w1, b1, w2, b2, w3, b3 = params
    kmin = jnp.min(keypoints, axis=1, keepdims=True)
    kmax = jnp.max(keypoints, axis=1, keepdims=True)
    knorm = (keypoints - kmin) / (kmax - kmin + 1e-6)
    p = jnp.concatenate([knorm, scores[..., None]], axis=-1)     # (N, J, 3)
    h1 = jnp.maximum(jnp.einsum('njd,hd->njh', p, w1) + b1, 0.0)
    h2 = jnp.maximum(jnp.einsum('njh,kh->njk', h1, w2) + b2, 0.0)
    weighted = h2 * scores[..., None]                            # (N, J, 64)
    flat = weighted.reshape(keypoints.shape[0], PROJ_IN)         # j*64 + h
    out = flat @ w3.T + b3
    return jnp.where(mask > 0, out, 0.0)


if __name__ == "__main__":
    key = jax.random.PRNGKey(0)
    kp_key, sc_key, p_key, kp2_key, sc2_key = jax.random.split(key, 5)
    params = init_params(p_key)

    fwd = jax.jit(weighted_mlp_encoder)

    # --- per-frame shape: 4 detections, one of which is `None` (masked out).
    N = 4
    keypoints = jax.random.uniform(kp_key, (N, NUM_JOINTS, INPUT_DIM),
                                   jnp.float32, 0.0, 640.0)
    scores = jax.random.uniform(sc_key, (N, NUM_JOINTS), jnp.float32, 0.0, 1.0)
    # Detection index 2 simulates `None` in the torch list input -> zero row.
    mask = jnp.array([[1.0], [1.0], [0.0], [1.0]], dtype=jnp.float32)

    out = jax.block_until_ready(fwd(keypoints, scores, mask, params))
    ref = reference_forward(keypoints, scores, mask, params)
    assert out.shape == (N, OUT_DIM)
    max_diff = float(jnp.max(jnp.abs(out - ref)))
    assert jnp.allclose(out, ref, atol=5e-2, rtol=5e-2), (
        f"mismatch vs reference (max abs diff {max_diff})")
    assert jnp.all(out[2] == 0.0), "masked (None) detection must be all zeros"

    # --- larger batch: exercises the multi-block (2 x 256) grid path.
    N2 = 300
    keypoints2 = jax.random.uniform(kp2_key, (N2, NUM_JOINTS, INPUT_DIM),
                                    jnp.float32, 0.0, 640.0)
    scores2 = jax.random.uniform(sc2_key, (N2, NUM_JOINTS), jnp.float32, 0.0, 1.0)
    mask2 = jnp.ones((N2, 1), jnp.float32)
    out2 = jax.block_until_ready(fwd(keypoints2, scores2, mask2, params))
    ref2 = reference_forward(keypoints2, scores2, mask2, params)
    assert out2.shape == (N2, OUT_DIM)
    max_diff2 = float(jnp.max(jnp.abs(out2 - ref2)))
    assert jnp.allclose(out2, ref2, atol=5e-2, rtol=5e-2), (
        f"mismatch vs reference at N=300 (max abs diff {max_diff2})")

    print("KERNEL_OK")
</pallas_src>

<mosaic_0001>
module attributes {stable_mosaic.version = 11 : i64} {
  func.func @encoder_kernel(%arg0: i32, %arg1: memref<8x2176xf32, #tpu.memory_space<vmem>>, %arg2: memref<128x8xf32, #tpu.memory_space<vmem>>, %arg3: memref<64x128xbf16, #tpu.memory_space<vmem>>, %arg4: memref<64x1xf32, #tpu.memory_space<vmem>>, %arg5: memref<128x1088xbf16, #tpu.memory_space<vmem>>, %arg6: memref<128x1xf32, #tpu.memory_space<vmem>>, %arg7: memref<128x128xf32, #tpu.memory_space<vmem>>, %arg8: memref<1088x128xbf16, #tpu.memory_space<vmem>>) attributes {dimension_semantics = [#tpu.dimension_semantics<parallel>], iteration_bounds = array<i64: 1>, scalar_prefetch = 0 : i64, scratch_operands = 1 : i64, tpu.core_type = #tpu.core_type<tc>, window_params = [{transform_indices = @transform_0, window_bounds = array<i64: 8, 2176>}, {pipeline_mode = #tpu.pipeline_mode<synchronous>, transform_indices = @transform_1, window_bounds = array<i64: 128, 8>}, {pipeline_mode = #tpu.pipeline_mode<synchronous>, transform_indices = @transform_2, window_bounds = array<i64: 64, 128>}, {pipeline_mode = #tpu.pipeline_mode<synchronous>, transform_indices = @transform_3, window_bounds = array<i64: 64, 1>}, {pipeline_mode = #tpu.pipeline_mode<synchronous>, transform_indices = @transform_4, window_bounds = array<i64: 128, 1088>}, {pipeline_mode = #tpu.pipeline_mode<synchronous>, transform_indices = @transform_5, window_bounds = array<i64: 128, 1>}, {transform_indices = @transform_6, window_bounds = array<i64: 128, 128>}]} {
    %c0 = arith.constant 0 : index
    %c0_0 = arith.constant 0 : index
    %0 = vector.load %arg1[%c0, %c0_0] : memref<8x2176xf32, #tpu.memory_space<vmem>>, vector<8x2176xf32>
    %c0_1 = arith.constant 0 : index
    %c0_2 = arith.constant 0 : index
    %1 = vector.load %arg2[%c0_1, %c0_2] : memref<128x8xf32, #tpu.memory_space<vmem>>, vector<128x8xf32>
    %cst = arith.constant dense<0.000000e+00> : vector<128x2176xf32>
    %2 = tpu.matmul %1, %0, %cst {dimension_numbers = #tpu.dot_dimension_numbers<[1], [0], [0], [1], [0, 0, 1, 1], [], []>} : vector<128x8xf32>, vector<8x2176xf32>, vector<128x2176xf32> -> vector<128x2176xf32>
    %cst_3 = arith.constant 0.000000e+00 : f32
    %3 = vector.broadcast %cst_3 : f32 to vector<128x2176xf32>
    %4 = arith.maximumf %2, %3 : vector<128x2176xf32>
    %5 = arith.truncf %4 : vector<128x2176xf32> to vector<128x2176xbf16>
    %c0_4 = arith.constant 0 : index
    %c0_5 = arith.constant 0 : index
    %6 = vector.load %arg3[%c0_4, %c0_5] : memref<64x128xbf16, #tpu.memory_space<vmem>>, vector<64x128xbf16>
    %cst_6 = arith.constant dense<0.000000e+00> : vector<64x2176xf32>
    %7 = tpu.matmul %6, %5, %cst_6 {dimension_numbers = #tpu.dot_dimension_numbers<[1], [0], [0], [1], [0, 0, 1, 1], [], []>} : vector<64x128xbf16>, vector<128x2176xbf16>, vector<64x2176xf32> -> vector<64x2176xf32>
    %c0_7 = arith.constant 0 : index
    %c0_8 = arith.constant 0 : index
    %8 = vector.load %arg4[%c0_7, %c0_8] : memref<64x1xf32, #tpu.memory_space<vmem>>, vector<64x1xf32>
    %9 = vector.broadcast %8 : vector<64x1xf32> to vector<64x2176xf32>
    %10 = arith.addf %7, %9 : vector<64x2176xf32>
    %cst_9 = arith.constant 0.000000e+00 : f32
    %11 = vector.broadcast %cst_9 : f32 to vector<64x2176xf32>
    %12 = arith.maximumf %10, %11 : vector<64x2176xf32>
    %13 = vector.extract_strided_slice %0 {offsets = [2, 0], sizes = [1, 2176], strides = [1, 1]} : vector<8x2176xf32> to vector<1x2176xf32>
    %14 = vector.broadcast %13 : vector<1x2176xf32> to vector<64x2176xf32>
    %15 = arith.mulf %12, %14 : vector<64x2176xf32>
    %16 = arith.truncf %15 : vector<64x2176xf32> to vector<64x2176xbf16>
    %17 = vector.extract_strided_slice %16 {offsets = [0, 0], sizes = [64, 128], strides = [1, 1]} : vector<64x2176xbf16> to vector<64x128xbf16>
    %c0_10 = arith.constant 0 : index
    %c0_11 = arith.constant 0 : index
    %18 = vector.load %arg8[%c0_10, %c0_11] : memref<1088x128xbf16, #tpu.memory_space<vmem>>, vector<64x128xbf16>
    tpu.vector_store %arg8[%c0_10, %c0_11], %17 {strides = array<i32>} : memref<1088x128xbf16, #tpu.memory_space<vmem>>, vector<64x128xbf16>,
    %19 = vector.extract_strided_slice %16 {offsets = [0, 128], sizes = [64, 128], strides = [1, 1]} : vector<64x2176xbf16> to vector<64x128xbf16>
    %c64 = arith.constant 64 : index
    %c0_12 = arith.constant 0 : index
    %20 = vector.load %arg8[%c64, %c0_12] : memref<1088x128xbf16, #tpu.memory_space<vmem>>, vector<64x128xbf16>
    tpu.vector_store %arg8[%c64, %c0_12], %19 {strides = array<i32>} : memref<1088x128xbf16, #tpu.memory_space<vmem>>, vector<64x128xbf16>,
    %21 = vector.extract_strided_slice %16 {offsets = [0, 256], sizes = [64, 128], strides = [1, 1]} : vector<64x2176xbf16> to vector<64x128xbf16>
    %c128 = arith.constant 128 : index
    %c0_13 = arith.constant 0 : index
    %22 = vector.load %arg8[%c128, %c0_13] : memref<1088x128xbf16, #tpu.memory_space<vmem>>, vector<64x128xbf16>
    tpu.vector_store %arg8[%c128, %c0_13], %21 {strides = array<i32>} : memref<1088x128xbf16, #tpu.memory_space<vmem>>, vector<64x128xbf16>,
    %23 = vector.extract_strided_slice %16 {offsets = [0, 384], sizes = [64, 128], strides = [1, 1]} : vector<64x2176xbf16> to vector<64x128xbf16>
    %c192 = arith.constant 192 : index
    %c0_14 = arith.constant 0 : index
    %24 = vector.load %arg8[%c192, %c0_14] : memref<1088x128xbf16, #tpu.memory_space<vmem>>, vector<64x128xbf16>
    tpu.vector_store %arg8[%c192, %c0_14], %23 {strides = array<i32>} : memref<1088x128xbf16, #tpu.memory_space<vmem>>, vector<64x128xbf16>,
    %25 = vector.extract_strided_slice %16 {offsets = [0, 512], sizes = [64, 128], strides = [1, 1]} : vector<64x2176xbf16> to vector<64x128xbf16>
    %c256 = arith.constant 256 : index
    %c0_15 = arith.constant 0 : index
    %26 = vector.load %arg8[%c256, %c0_15] : memref<1088x128xbf16, #tpu.memory_space<vmem>>, vector<64x128xbf16>
    tpu.vector_store %arg8[%c256, %c0_15], %25 {strides = array<i32>} : memref<1088x128xbf16, #tpu.memory_space<vmem>>, vector<64x128xbf16>,
    %27 = vector.extract_strided_slice %16 {offsets = [0, 640], sizes = [64, 128], strides = [1, 1]} : vector<64x2176xbf16> to vector<64x128xbf16>
    %c320 = arith.constant 320 : index
    %c0_16 = arith.constant 0 : index
    %28 = vector.load %arg8[%c320, %c0_16] : memref<1088x128xbf16, #tpu.memory_space<vmem>>, vector<64x128xbf16>
    tpu.vector_store %arg8[%c320, %c0_16], %27 {strides = array<i32>} : memref<1088x128xbf16, #tpu.memory_space<vmem>>, vector<64x128xbf16>,
    %29 = vector.extract_strided_slice %16 {offsets = [0, 768], sizes = [64, 128], strides = [1, 1]} : vector<64x2176xbf16> to vector<64x128xbf16>
    %c384 = arith.constant 384 : index
    %c0_17 = arith.constant 0 : index
    %30 = vector.load %arg8[%c384, %c0_17] : memref<1088x128xbf16, #tpu.memory_space<vmem>>, vector<64x128xbf16>
    tpu.vector_store %arg8[%c384, %c0_17], %29 {strides = array<i32>} : memref<1088x128xbf16, #tpu.memory_space<vmem>>, vector<64x128xbf16>,
    %31 = vector.extract_strided_slice %16 {offsets = [0, 896], sizes = [64, 128], strides = [1, 1]} : vector<64x2176xbf16> to vector<64x128xbf16>
    %c448 = arith.constant 448 : index
    %c0_18 = arith.constant 0 : index
    %32 = vector.load %arg8[%c448, %c0_18] : memref<1088x128xbf16, #tpu.memory_space<vmem>>, vector<64x128xbf16>
    tpu.vector_store %arg8[%c448, %c0_18], %31 {strides = array<i32>} : memref<1088x128xbf16, #tpu.memory_space<vmem>>, vector<64x128xbf16>,
    %33 = vector.extract_strided_slice %16 {offsets = [0, 1024], sizes = [64, 128], strides = [1, 1]} : vector<64x2176xbf16> to vector<64x128xbf16>
    %c512 = arith.constant 512 : index
    %c0_19 = arith.constant 0 : index
    %34 = vector.load %arg8[%c512, %c0_19] : memref<1088x128xbf16, #tpu.memory_space<vmem>>, vector<64x128xbf16>
    tpu.vector_store %arg8[%c512, %c0_19], %33 {strides = array<i32>} : memref<1088x128xbf16, #tpu.memory_space<vmem>>, vector<64x128xbf16>,
    %35 = vector.extract_strided_slice %16 {offsets = [0, 1152], sizes = [64, 128], strides = [1, 1]} : vector<64x2176xbf16> to vector<64x128xbf16>
    %c576 = arith.constant 576 : index
    %c0_20 = arith.constant 0 : index
    %36 = vector.load %arg8[%c576, %c0_20] : memref<1088x128xbf16, #tpu.memory_space<vmem>>, vector<64x128xbf16>
    tpu.vector_store %arg8[%c576, %c0_20], %35 {strides = array<i32>} : memref<1088x128xbf16, #tpu.memory_space<vmem>>, vector<64x128xbf16>,
    %37 = vector.extract_strided_slice %16 {offsets = [0, 1280], sizes = [64, 128], strides = [1, 1]} : vector<64x2176xbf16> to vector<64x128xbf16>
    %c640 = arith.constant 640 : index
    %c0_21 = arith.constant 0 : index
    %38 = vector.load %arg8[%c640, %c0_21] : memref<1088x128xbf16, #tpu.memory_space<vmem>>, vector<64x128xbf16>
    tpu.vector_store %arg8[%c640, %c0_21], %37 {strides = array<i32>} : memref<1088x128xbf16, #tpu.memory_space<vmem>>, vector<64x128xbf16>,
    %39 = vector.extract_strided_slice %16 {offsets = [0, 1408], sizes = [64, 128], strides = [1, 1]} : vector<64x2176xbf16> to vector<64x128xbf16>
    %c704 = arith.constant 704 : index
    %c0_22 = arith.constant 0 : index
    %40 = vector.load %arg8[%c704, %c0_22] : memref<1088x128xbf16, #tpu.memory_space<vmem>>, vector<64x128xbf16>
    tpu.vector_store %arg8[%c704, %c0_22], %39 {strides = array<i32>} : memref<1088x128xbf16, #tpu.memory_space<vmem>>, vector<64x128xbf16>,
    %41 = vector.extract_strided_slice %16 {offsets = [0, 1536], sizes = [64, 128], strides = [1, 1]} : vector<64x2176xbf16> to vector<64x128xbf16>
    %c768 = arith.constant 768 : index
    %c0_23 = arith.constant 0 : index
    %42 = vector.load %arg8[%c768, %c0_23] : memref<1088x128xbf16, #tpu.memory_space<vmem>>, vector<64x128xbf16>
    tpu.vector_store %arg8[%c768, %c0_23], %41 {strides = array<i32>} : memref<1088x128xbf16, #tpu.memory_space<vmem>>, vector<64x128xbf16>,
    %43 = vector.extract_strided_slice %16 {offsets = [0, 1664], sizes = [64, 128], strides = [1, 1]} : vector<64x2176xbf16> to vector<64x128xbf16>
    %c832 = arith.constant 832 : index
    %c0_24 = arith.constant 0 : index
    %44 = vector.load %arg8[%c832, %c0_24] : memref<1088x128xbf16, #tpu.memory_space<vmem>>, vector<64x128xbf16>
    tpu.vector_store %arg8[%c832, %c0_24], %43 {strides = array<i32>} : memref<1088x128xbf16, #tpu.memory_space<vmem>>, vector<64x128xbf16>,
    %45 = vector.extract_strided_slice %16 {offsets = [0, 1792], sizes = [64, 128], strides = [1, 1]} : vector<64x2176xbf16> to vector<64x128xbf16>
    %c896 = arith.constant 896 : index
    %c0_25 = arith.constant 0 : index
    %46 = vector.load %arg8[%c896, %c0_25] : memref<1088x128xbf16, #tpu.memory_space<vmem>>, vector<64x128xbf16>
    tpu.vector_store %arg8[%c896, %c0_25], %45 {strides = array<i32>} : memref<1088x128xbf16, #tpu.memory_space<vmem>>, vector<64x128xbf16>,
    %47 = vector.extract_strided_slice %16 {offsets = [0, 1920], sizes = [64, 128], strides = [1, 1]} : vector<64x2176xbf16> to vector<64x128xbf16>
    %c960 = arith.constant 960 : index
    %c0_26 = arith.constant 0 : index
    %48 = vector.load %arg8[%c960, %c0_26] : memref<1088x128xbf16, #tpu.memory_space<vmem>>, vector<64x128xbf16>
    tpu.vector_store %arg8[%c960, %c0_26], %47 {strides = array<i32>} : memref<1088x128xbf16, #tpu.memory_space<vmem>>, vector<64x128xbf16>,
    %49 = vector.extract_strided_slice %16 {offsets = [0, 2048], sizes = [64, 128], strides = [1, 1]} : vector<64x2176xbf16> to vector<64x128xbf16>
    %c1024 = arith.constant 1024 : index
    %c0_27 = arith.constant 0 : index
    %50 = vector.load %arg8[%c1024, %c0_27] : memref<1088x128xbf16, #tpu.memory_space<vmem>>, vector<64x128xbf16>
    tpu.vector_store %arg8[%c1024, %c0_27], %49 {strides = array<i32>} : memref<1088x128xbf16, #tpu.memory_space<vmem>>, vector<64x128xbf16>,
    %c0_28 = arith.constant 0 : index
    %c0_29 = arith.constant 0 : index
    %51 = vector.load %arg5[%c0_28, %c0_29] : memref<128x1088xbf16, #tpu.memory_space<vmem>>, vector<128x1088xbf16>
    %c0_30 = arith.constant 0 : index
    %c0_31 = arith.constant 0 : index
    %52 = vector.load %arg8[%c0_30, %c0_31] : memref<1088x128xbf16, #tpu.memory_space<vmem>>, vector<1088x128xbf16>
    %cst_32 = arith.constant dense<0.000000e+00> : vector<128x128xf32>
    %53 = tpu.matmul %51, %52, %cst_32 {dimension_numbers = #tpu.dot_dimension_numbers<[1], [0], [0], [1], [0, 0, 1, 1], [], []>} : vector<128x1088xbf16>, vector<1088x128xbf16>, vector<128x128xf32> -> vector<128x128xf32>
    %c0_33 = arith.constant 0 : index
    %c0_34 = arith.constant 0 : index
    %54 = vector.load %arg6[%c0_33, %c0_34] : memref<128x1xf32, #tpu.memory_space<vmem>>, vector<128x1xf32>
    %55 = vector.broadcast %54 : vector<128x1xf32> to vector<128x128xf32>
    %56 = arith.addf %53, %55 : vector<128x128xf32>
    %c0_35 = arith.constant 0 : index
    %c0_36 = arith.constant 0 : index
    %57 = vector.load %arg7[%c0_35, %c0_36] : memref<128x128xf32, #tpu.memory_space<vmem>>, vector<128x128xf32>
    tpu.vector_store %arg7[%c0_35, %c0_36], %56 {strides = array<i32>} : memref<128x128xf32, #tpu.memory_space<vmem>>, vector<128x128xf32>,
    return
  }
  func.func @transform_0(%arg0: i32) -> (i32, i32) {
    %c0_i32 = arith.constant 0 : i32
    %c0_i32_0 = arith.constant 0 : i32
    return %c0_i32, %arg0 : i32, i32
  }
  func.func @transform_1(%arg0: i32) -> (i32, i32) {
    %c0_i32 = arith.constant 0 : i32
    %c0_i32_0 = arith.constant 0 : i32
    %c0_i32_1 = arith.constant 0 : i32
    return %c0_i32, %c0_i32_0 : i32, i32
  }
  func.func @transform_2(%arg0: i32) -> (i32, i32) {
    %c0_i32 = arith.constant 0 : i32
    %c0_i32_0 = arith.constant 0 : i32
    %c0_i32_1 = arith.constant 0 : i32
    return %c0_i32, %c0_i32_0 : i32, i32
  }
  func.func @transform_3(%arg0: i32) -> (i32, i32) {
    %c0_i32 = arith.constant 0 : i32
    %c0_i32_0 = arith.constant 0 : i32
    %c0_i32_1 = arith.constant 0 : i32
    return %c0_i32, %c0_i32_0 : i32, i32
  }
  func.func @transform_4(%arg0: i32) -> (i32, i32) {
    %c0_i32 = arith.constant 0 : i32
    %c0_i32_0 = arith.constant 0 : i32
    %c0_i32_1 = arith.constant 0 : i32
    return %c0_i32, %c0_i32_0 : i32, i32
  }
  func.func @transform_5(%arg0: i32) -> (i32, i32) {
    %c0_i32 = arith.constant 0 : i32
    %c0_i32_0 = arith.constant 0 : i32
    %c0_i32_1 = arith.constant 0 : i32
    return %c0_i32, %c0_i32_0 : i32, i32
  }
  func.func @transform_6(%arg0: i32) -> (i32, i32) {
    %c0_i32 = arith.constant 0 : i32
    %c0_i32_0 = arith.constant 0 : i32
    return %c0_i32, %arg0 : i32, i32
  }
}

</mosaic_0001>

<bundles_post_ra>
// kernel: weighted_mlp_encoder.1
= control target key start
LH: loop header
LB: loop body
LE: loop exit
PB: predicated region body
PF: predicated region fallthrough
CT: control target
= control target key end

     0   :  { %v5020_v2 = vmov 0.0   ;;  %vm57_vm0 = vcmask 64512   ;;  %v5021_v34 = vmov 0   ;;  %vm3756_vm1 = vcmask 523264   ;;  %s6991_s0 = inlined_call_operand.vmem [shape: f32[8,2176], index: 0, kind: input, shape index: {}]   ;;  %s6992_s1 = inlined_call_operand.vmem [shape: f32[128,8], index: 1, kind: input, shape index: {}]   ;;  %s6993_s2 = inlined_call_operand.vmem [shape: bf16[64,128], index: 2, kind: input, shape index: {}]   ;;  %s6994_s3 = inlined_call_operand.vmem [shape: f32[64,1], index: 3, kind: input, shape index: {}]   ;;  %s6995_s5 = inlined_call_operand.vmem [shape: f32[128,1], index: 5, kind: input, shape index: {}]   ;;  %s6996_s4 = inlined_call_operand.vmem [shape: bf16[128,1088], index: 4, kind: input, shape index: {}]   ;;  %s6997_s6 = inlined_call_operand.vmem [shape: f32[128,128], index: 6, kind: output, shape index: {}]  }
   0x1   :  { %v25_v0 = vld [vmem:[%s6991_s0 + $0x8] sm:$0xff]  ;;  %v24_v1 = vld [vmem:[%s6991_s0] sm:$0xff]  ;;  %170 = vmatprep.mubr.f32.mxu0 %v5020_v2  ;;  %242 = vmatprep.mubr.f32.mxu1 %v5020_v2  ;;  %v27_v5 = vld [vmem:[%s6991_s0 + $0x18] sm:$0xff] }
   0x2   :  { %v5068_v3 = vld [vmem:[%s6992_s1] sm:$0xff]  ;;  %106 = vmatprep.subr.mxu0 %v25_v0  ;;  %4885 = vmatprep.subr.mxu1 %v25_v0  ;;  %v26_v6 = vld [vmem:[%s6991_s0 + $0x10] sm:$0xff]  ;;  %v5090_v7 = vld [vmem:[%s6992_s1 + $0x8] sm:$0xff] }
   0x3   :  { %v5073_v4 = vld [vmem:[%s6992_s1 + $0x60] sm:$0xff]  ;;  %107 = vmatpush1.msra.mxu0 %v24_v1  ;;  %4886 = vmatpush1.msra.mxu1 %v24_v1  ;;  %v5095_v8 = vld [vmem:[%s6992_s1 + $0x68] sm:$0xff]  ;;  %v31_v9 = vld [vmem:[%s6991_s0 + $0x38] sm:$0xff] }
   0x4   :  { %4286 = vmatmul.mubr.msk.f32.vlgmr.msra.gmra.mrb[0].mxu0 %vm57_vm0, %v5068_v3  ;;  %4298 = vmatmul.mubr.msk.f32.vlgmr.msra.gmra.mrb[0].mxu1 %vm57_vm0, %v5073_v4  ;;  %v29_v10 = vld [vmem:[%s6991_s0 + $0x28] sm:$0xff]  ;;  %v28_v11 = vld [vmem:[%s6991_s0 + $0x20] sm:$0xff]  ;;  %v5115_v12 = vld [vmem:[%s6992_s1 + $0x10] sm:$0xff] }
   0x5   :  { %176 = vmatprep.mubr.f32.mxu0 %v5020_v2  ;;  %248 = vmatprep.mubr.f32.mxu1 %v5020_v2  ;;  %v5120_v13 = vld [vmem:[%s6992_s1 + $0x70] sm:$0xff]  ;;  %v33_v14 = vld [vmem:[%s6991_s0 + $0x48] sm:$0xff]  ;;  %v5134_v15 = vld [vmem:[%s6992_s1 + $0x18] sm:$0xff] }
   0x6   :  { %267 = vmatprep.subr.mxu1 %v27_v5  ;;  %428 = vmatprep.subr.mxu0 %v29_v10  ;;  %v5139_v16 = vld [vmem:[%s6992_s1 + $0x78] sm:$0xff]  ;;  %v5150_v17 = vld [vmem:[%s6992_s1 + $0x20] sm:$0xff]  ;;  %v30_v18 = vld [vmem:[%s6991_s0 + $0x30] sm:$0xff] }
   0x7   :  { %268 = vmatpush1.msra.mxu1 %v26_v6  ;;  %429 = vmatpush1.msra.mxu0 %v28_v11  ;;  %v35_v19 = vld [vmem:[%s6991_s0 + $0x58] sm:$0xff]  ;;  %v5167_v20 = vld [vmem:[%s6992_s1 + $0x28] sm:$0xff]  ;;  %v5178_v21 = vld [vmem:[%s6992_s1 + $0x30] sm:$0xff] }
   0x8   :  { %4287 = vmatmul.mubr.msk.f32.gmra.mrb[2].mxu0 %vm57_vm0, %v5090_v7  ;;  %4299 = vmatmul.mubr.msk.f32.gmra.mrb[2].mxu1 %vm57_vm0, %v5095_v8  ;;  %v5189_v22 = vld [vmem:[%s6992_s1 + $0x38] sm:$0xff]  ;;  %v5200_v23 = vld [vmem:[%s6992_s1 + $0x40] sm:$0xff]  ;;  %v5211_v24 = vld [vmem:[%s6992_s1 + $0x48] sm:$0xff] }
   0x9   :  { %182 = vmatprep.mubr.f32.mxu0 %v5020_v2  ;;  %254 = vmatprep.mubr.f32.mxu1 %v5020_v2  ;;  %v5222_v25 = vld [vmem:[%s6992_s1 + $0x50] sm:$0xff]  ;;  %v5233_v26 = vld [vmem:[%s6992_s1 + $0x58] sm:$0xff]  ;;  %v32_v27 = vld [vmem:[%s6991_s0 + $0x40] sm:$0xff] }
   0xa   :  { %589 = vmatprep.subr.mxu1 %v31_v9  ;;  %750 = vmatprep.subr.mxu0 %v33_v14  ;;  %v37_v28 = vld [vmem:[%s6991_s0 + $0x68] sm:$0xff]  ;;  %v34_v29 = vld [vmem:[%s6991_s0 + $0x50] sm:$0xff]  ;;  %v39_v30 = vld [vmem:[%s6991_s0 + $0x78] sm:$0xff] }
   0xb   :  { %v36_v31 = vld [vmem:[%s6991_s0 + $0x60] sm:$0xff]  ;;  %v38_v33 = vld [vmem:[%s6991_s0 + $0x70] sm:$0xff]  ;;  %4889 = vset.pattern.permute.xlu0 %v5021_v34  ;;  %4890 = vset.pattern.permute.xlu1 %v5021_v34 }
   0xc   :  { %4288 = vmatmul.mubr.msk.f32.gmra.mrb[4].mxu0 %vm57_vm0, %v5115_v12  ;;  %4300 = vmatmul.mubr.msk.f32.gmra.mrb[4].mxu1 %vm57_vm0, %v5120_v13  ;;  %v5359_v32 = vld [vmem:[%s6991_s0 + $0x80] sm:$0xff] }
   0xd   :  { %188 = vmatprep.mubr.f32.mxu0 %v5020_v2  ;;  %260 = vmatprep.mubr.f32.mxu1 %v5020_v2 }
  0x10   :  { %4289 = vmatmul.mubr.msk.f32.gmra.mrb[6].mxu0 %vm57_vm0, %v5134_v15  ;;  %4301 = vmatmul.mubr.msk.f32.gmra.mrb[6].mxu1 %vm57_vm0, %v5139_v16 }
  0x11   :  { %194 = vmatprep.mubr.f32.mxu0 %v5020_v2  ;;  %331 = vmatprep.mubr.f32.mxu1 %v5020_v2 }
  0x14   :  { %4290 = vmatmul.mubr.msk.f32.gmra.mrb[8].mxu0 %vm57_vm0, %v5150_v17  ;;  %4302 = vmatmul.mubr.msk.f32.vlgmr.msra.gmra.mrb[8].mxu1 %vm57_vm0, %v5068_v3 }
  0x15   :  { %200 = vmatprep.mubr.f32.mxu0 %v5020_v2  ;;  %337 = vmatprep.mubr.f32.mxu1 %v5020_v2 }
  0x16   :  { %590 = vmatpush1.msra.mxu1 %v30_v18 }
  0x17   :  { %911 = vmatprep.subr.mxu1 %v35_v19 }
  0x18   :  { %4291 = vmatmul.mubr.msk.f32.gmra.mrb[10].mxu0 %vm57_vm0, %v5167_v20  ;;  %4303 = vmatmul.mubr.msk.f32.gmra.mrb[10].mxu1 %vm57_vm0, %v5090_v7 }
  0x19   :  { %206 = vmatprep.mubr.f32.mxu0 %v5020_v2  ;;  %343 = vmatprep.mubr.f32.mxu1 %v5020_v2 }
  0x1c   :  { %4292 = vmatmul.mubr.msk.f32.gmra.mrb[12].mxu0 %vm57_vm0, %v5178_v21  ;;  %4304 = vmatmul.mubr.msk.f32.gmra.mrb[12].mxu1 %vm57_vm0, %v5115_v12 }
  0x1d   :  { %212 = vmatprep.mubr.f32.mxu0 %v5020_v2  ;;  %349 = vmatprep.mubr.f32.mxu1 %v5020_v2 }
  0x20   :  { %4293 = vmatmul.mubr.msk.f32.gmra.mrb[14].mxu0 %vm57_vm0, %v5189_v22  ;;  %4305 = vmatmul.mubr.msk.f32.gmra.mrb[14].mxu1 %vm57_vm0, %v5134_v15 }
  0x21   :  { %218 = vmatprep.mubr.f32.mxu0 %v5020_v2  ;;  %355 = vmatprep.mubr.f32.mxu1 %v5020_v2 }
  0x24   :  { %4294 = vmatmul.mubr.msk.f32.gmra.mrb[16].mxu0 %vm57_vm0, %v5200_v23  ;;  %4306 = vmatmul.mubr.msk.f32.gmra.mrb[16].mxu1 %vm57_vm0, %v5150_v17 }
  0x25   :  { %224 = vmatprep.mubr.f32.mxu0 %v5020_v2  ;;  %361 = vmatprep.mubr.f32.mxu1 %v5020_v2 }
  0x28   :  { %4295 = vmatmul.mubr.msk.f32.gmra.mrb[18].mxu0 %vm57_vm0, %v5211_v24  ;;  %4307 = vmatmul.mubr.msk.f32.gmra.mrb[18].mxu1 %vm57_vm0, %v5167_v20 }
  0x29   :  { %230 = vmatprep.mubr.f32.mxu0 %v5020_v2  ;;  %367 = vmatprep.mubr.f32.mxu1 %v5020_v2 }
  0x2c   :  { %4296 = vmatmul.mubr.msk.f32.gmra.mrb[20].mxu0 %vm57_vm0, %v5222_v25  ;;  %4308 = vmatmul.mubr.msk.f32.gmra.mrb[20].mxu1 %vm57_vm0, %v5178_v21 }
  0x2d   :  { %236 = vmatprep.mubr.f32.mxu0 %v5020_v2  ;;  %373 = vmatprep.mubr.f32.mxu1 %v5020_v2 }
  0x30   :  { %4297 = vmatmul.mubr.msk.f32.gmra.mrb[22].mxu0 %vm57_vm0, %v5233_v26  ;;  %4309 = vmatmul.mubr.msk.f32.gmra.mrb[22].mxu1 %vm57_vm0, %v5189_v22 }
  0x31   :  { %379 = vmatprep.mubr.f32.mxu1 %v5020_v2  ;;  %492 = vmatprep.mubr.f32.mxu0 %v5020_v2 }
  0x34   :  { %4310 = vmatmul.mubr.msk.f32.gmra.mrb[24].mxu1 %vm57_vm0, %v5200_v23  ;;  %4318 = vmatmul.mubr.msk.f32.vlgmr.msra.gmra.mrb[24].mxu0 %vm57_vm0, %v5068_v3 }
  0x35   :  { %385 = vmatprep.mubr.f32.mxu1 %v5020_v2  ;;  %498 = vmatprep.mubr.f32.mxu0 %v5020_v2 }
  0x36   :  { %751 = vmatpush1.msra.mxu0 %v32_v27 }
  0x37   :  { %1072 = vmatprep.subr.mxu0 %v37_v28 }
  0x38   :  { %4311 = vmatmul.mubr.msk.f32.gmra.mrb[26].mxu1 %vm57_vm0, %v5211_v24  ;;  %4319 = vmatmul.mubr.msk.f32.gmra.mrb[26].mxu0 %vm57_vm0, %v5090_v7 }
  0x39   :  { %391 = vmatprep.mubr.f32.mxu1 %v5020_v2  ;;  %504 = vmatprep.mubr.f32.mxu0 %v5020_v2 }
  0x3c   :  { %4312 = vmatmul.mubr.msk.f32.gmra.mrb[28].mxu1 %vm57_vm0, %v5222_v25  ;;  %4320 = vmatmul.mubr.msk.f32.gmra.mrb[28].mxu0 %vm57_vm0, %v5115_v12 }
  0x3d   :  { %397 = vmatprep.mubr.f32.mxu1 %v5020_v2  ;;  %510 = vmatprep.mubr.f32.mxu0 %v5020_v2 }
  0x40   :  { %4313 = vmatmul.mubr.msk.f32.gmra.mrb[30].mxu1 %vm57_vm0, %v5233_v26  ;;  %4321 = vmatmul.mubr.msk.f32.gmra.mrb[30].mxu0 %vm57_vm0, %v5134_v15 }
  0x41   :  { %403 = vmatprep.mubr.f32.mxu1 %v5020_v2  ;;  %516 = vmatprep.mubr.f32.mxu0 %v5020_v2 }
  0x44   :  { %4314 = vmatmul.mubr.msk.f32.gmra.mrb[32].mxu1 %vm57_vm0, %v5073_v4  ;;  %4322 = vmatmul.mubr.msk.f32.gmra.mrb[32].mxu0 %vm57_vm0, %v5150_v17 }
  0x45   :  { %409 = vmatprep.mubr.f32.mxu1 %v5020_v2  ;;  %522 = vmatprep.mubr.f32.mxu0 %v5020_v2 }
  0x48   :  { %4315 = vmatmul.mubr.msk.f32.gmra.mrb[34].mxu1 %vm57_vm0, %v5095_v8  ;;  %4323 = vmatmul.mubr.msk.f32.gmra.mrb[34].mxu0 %vm57_vm0, %v5167_v20 }
  0x49   :  { %415 = vmatprep.mubr.f32.mxu1 %v5020_v2  ;;  %528 = vmatprep.mubr.f32.mxu0 %v5020_v2 }
  0x4c   :  { %4316 = vmatmul.mubr.msk.f32.gmra.mrb[36].mxu1 %vm57_vm0, %v5120_v13  ;;  %4324 = vmatmul.mubr.msk.f32.gmra.mrb[36].mxu0 %vm57_vm0, %v5178_v21 }
  0x4d   :  { %421 = vmatprep.mubr.f32.mxu1 %v5020_v2  ;;  %534 = vmatprep.mubr.f32.mxu0 %v5020_v2 }
  0x50   :  { %4317 = vmatmul.mubr.msk.f32.gmra.mrb[38].mxu1 %vm57_vm0, %v5139_v16  ;;  %4325 = vmatmul.mubr.msk.f32.gmra.mrb[38].mxu0 %vm57_vm0, %v5189_v22 }
  0x51   :  { %540 = vmatprep.mubr.f32.mxu0 %v5020_v2  ;;  %653 = vmatprep.mubr.f32.mxu1 %v5020_v2 }
  0x54   :  { %4326 = vmatmul.mubr.msk.f32.gmra.mrb[40].mxu0 %vm57_vm0, %v5200_v23  ;;  %4334 = vmatmul.mubr.msk.f32.vlgmr.msra.gmra.mrb[40].mxu1 %vm57_vm0, %v5068_v3 }
  0x55   :  { %546 = vmatprep.mubr.f32.mxu0 %v5020_v2  ;;  %659 = vmatprep.mubr.f32.mxu1 %v5020_v2 }
  0x56   :  { %912 = vmatpush1.msra.mxu1 %v34_v29 }
  0x57   :  { %1233 = vmatprep.subr.mxu1 %v39_v30 }
  0x58   :  { %4327 = vmatmul.mubr.msk.f32.gmra.mrb[42].mxu0 %vm57_vm0, %v5211_v24  ;;  %4335 = vmatmul.mubr.msk.f32.gmra.mrb[42].mxu1 %vm57_vm0, %v5090_v7 }
  0x59   :  { %552 = vmatprep.mubr.f32.mxu0 %v5020_v2  ;;  %665 = vmatprep.mubr.f32.mxu1 %v5020_v2 }
  0x5c   :  { %4328 = vmatmul.mubr.msk.f32.gmra.mrb[44].mxu0 %vm57_vm0, %v5222_v25  ;;  %4336 = vmatmul.mubr.msk.f32.gmra.mrb[44].mxu1 %vm57_vm0, %v5115_v12 }
  0x5d   :  { %558 = vmatprep.mubr.f32.mxu0 %v5020_v2  ;;  %671 = vmatprep.mubr.f32.mxu1 %v5020_v2 }
  0x60   :  { %4329 = vmatmul.mubr.msk.f32.gmra.mrb[46].mxu0 %vm57_vm0, %v5233_v26  ;;  %4337 = vmatmul.mubr.msk.f32.gmra.mrb[46].mxu1 %vm57_vm0, %v5134_v15 }
  0x61   :  { %564 = vmatprep.mubr.f32.mxu0 %v5020_v2  ;;  %677 = vmatprep.mubr.f32.mxu1 %v5020_v2 }
  0x64   :  { %4330 = vmatmul.mubr.msk.f32.gmra.mrb[48].mxu0 %vm57_vm0, %v5073_v4  ;;  %4338 = vmatmul.mubr.msk.f32.gmra.mrb[48].mxu1 %vm57_vm0, %v5150_v17 }
  0x65   :  { %570 = vmatprep.mubr.f32.mxu0 %v5020_v2  ;;  %683 = vmatprep.mubr.f32.mxu1 %v5020_v2 }
  0x68   :  { %4331 = vmatmul.mubr.msk.f32.gmra.mrb[50].mxu0 %vm57_vm0, %v5095_v8  ;;  %4339 = vmatmul.mubr.msk.f32.gmra.mrb[50].mxu1 %vm57_vm0, %v5167_v20 }
  0x69   :  { %576 = vmatprep.mubr.f32.mxu0 %v5020_v2  ;;  %689 = vmatprep.mubr.f32.mxu1 %v5020_v2 }
  0x6c   :  { %4332 = vmatmul.mubr.msk.f32.gmra.mrb[52].mxu0 %vm57_vm0, %v5120_v13  ;;  %4340 = vmatmul.mubr.msk.f32.gmra.mrb[52].mxu1 %vm57_vm0, %v5178_v21 }
  0x6d   :  { %582 = vmatprep.mubr.f32.mxu0 %v5020_v2  ;;  %695 = vmatprep.mubr.f32.mxu1 %v5020_v2 }
  0x70   :  { %4333 = vmatmul.mubr.msk.f32.gmra.mrb[54].mxu0 %vm57_vm0, %v5139_v16  ;;  %4341 = vmatmul.mubr.msk.f32.gmra.mrb[54].mxu1 %vm57_vm0, %v5189_v22 }
  0x71   :  { %701 = vmatprep.mubr.f32.mxu1 %v5020_v2  ;;  %814 = vmatprep.mubr.f32.mxu0 %v5020_v2 }
  0x74   :  { %4342 = vmatmul.mubr.msk.f32.gmra.mrb[56].mxu1 %vm57_vm0, %v5200_v23  ;;  %4350 = vmatmul.mubr.msk.f32.vlgmr.msra.gmra.mrb[56].mxu0 %vm57_vm0, %v5068_v3 }
  0x75   :  { %707 = vmatprep.mubr.f32.mxu1 %v5020_v2  ;;  %820 = vmatprep.mubr.f32.mxu0 %v5020_v2 }
  0x76   :  { %1073 = vmatpush1.msra.mxu0 %v36_v31 }
  0x77   :  { %4811 = vmatprep.subr.mxu0 %v5359_v32 }
  0x78   :  { %4343 = vmatmul.mubr.msk.f32.gmra.mrb[58].mxu1 %vm57_vm0, %v5211_v24  ;;  %4351 = vmatmul.mubr.msk.f32.gmra.mrb[58].mxu0 %vm57_vm0, %v5090_v7 }
  0x79   :  { %713 = vmatprep.mubr.f32.mxu1 %v5020_v2  ;;  %826 = vmatprep.mubr.f32.mxu0 %v5020_v2 }
  0x7c   :  { %4344 = vmatmul.mubr.msk.f32.gmra.mrb[60].mxu1 %vm57_vm0, %v5222_v25  ;;  %4352 = vmatmul.mubr.msk.f32.gmra.mrb[60].mxu0 %vm57_vm0, %v5115_v12 }
  0x7d   :  { %719 = vmatprep.mubr.f32.mxu1 %v5020_v2  ;;  %832 = vmatprep.mubr.f32.mxu0 %v5020_v2 }
  0x80   :  { %4345 = vmatmul.mubr.msk.f32.gmra.mrb[62].mxu1 %vm57_vm0, %v5233_v26  ;;  %4353 = vmatmul.mubr.msk.f32.gmra.mrb[62].mxu0 %vm57_vm0, %v5134_v15 }
  0x81   :  { %725 = vmatprep.mubr.f32.mxu1 %v5020_v2  ;;  %838 = vmatprep.mubr.f32.mxu0 %v5020_v2 }
  0x84   :  { %4346 = vmatmul.mubr.msk.f32.gmra.mrb[64].mxu1 %vm57_vm0, %v5073_v4  ;;  %4354 = vmatmul.mubr.msk.f32.gmra.mrb[64].mxu0 %vm57_vm0, %v5150_v17 }
  0x85   :  { %731 = vmatprep.mubr.f32.mxu1 %v5020_v2  ;;  %844 = vmatprep.mubr.f32.mxu0 %v5020_v2 }
  0x88   :  { %4347 = vmatmul.mubr.msk.f32.gmra.mrb[66].mxu1 %vm57_vm0, %v5095_v8  ;;  %4355 = vmatmul.mubr.msk.f32.gmra.mrb[66].mxu0 %vm57_vm0, %v5167_v20 }
  0x89   :  { %737 = vmatprep.mubr.f32.mxu1 %v5020_v2  ;;  %850 = vmatprep.mubr.f32.mxu0 %v5020_v2 }
  0x8c   :  { %4348 = vmatmul.mubr.msk.f32.gmra.mrb[68].mxu1 %vm57_vm0, %v5120_v13  ;;  %4356 = vmatmul.mubr.msk.f32.gmra.mrb[68].mxu0 %vm57_vm0, %v5178_v21 }
  0x8d   :  { %743 = vmatprep.mubr.f32.mxu1 %v5020_v2  ;;  %856 = vmatprep.mubr.f32.mxu0 %v5020_v2 }
  0x90   :  { %4349 = vmatmul.mubr.msk.f32.gmra.mrb[70].mxu1 %vm57_vm0, %v5139_v16  ;;  %4357 = vmatmul.mubr.msk.f32.gmra.mrb[70].mxu0 %vm57_vm0, %v5189_v22 }
  0x91   :  { %862 = vmatprep.mubr.f32.mxu0 %v5020_v2  ;;  %975 = vmatprep.mubr.f32.mxu1 %v5020_v2 }
  0x94   :  { %4358 = vmatmul.mubr.msk.f32.gmra.mrb[72].mxu0 %vm57_vm0, %v5200_v23  ;;  %4366 = vmatmul.mubr.msk.f32.vlgmr.msra.gmra.mrb[72].mxu1 %vm57_vm0, %v5068_v3 }
  0x95   :  { %868 = vmatprep.mubr.f32.mxu0 %v5020_v2  ;;  %981 = vmatprep.mubr.f32.mxu1 %v5020_v2 }
  0x96   :  { %1234 = vmatpush1.msra.mxu1 %v38_v33 }
  0x98   :  { %4359 = vmatmul.mubr.msk.f32.gmra.mrb[74].mxu0 %vm57_vm0, %v5211_v24  ;;  %4367 = vmatmul.mubr.msk.f32.gmra.mrb[74].mxu1 %vm57_vm0, %v5090_v7 }
  0x99   :  { %874 = vmatprep.mubr.f32.mxu0 %v5020_v2  ;;  %987 = vmatprep.mubr.f32.mxu1 %v5020_v2 }
  0x9c   :  { %4360 = vmatmul.mubr.msk.f32.gmra.mrb[76].mxu0 %vm57_vm0, %v5222_v25  ;;  %4368 = vmatmul.mubr.msk.f32.gmra.mrb[76].mxu1 %vm57_vm0, %v5115_v12 }
  0x9d   :  { %880 = vmatprep.mubr.f32.mxu0 %v5020_v2  ;;  %993 = vmatprep.mubr.f32.mxu1 %v5020_v2 }
  0xa0   :  { %4361 = vmatmul.mubr.msk.f32.gmra.mrb[78].mxu0 %vm57_vm0, %v5233_v26  ;;  %4369 = vmatmul.mubr.msk.f32.gmra.mrb[78].mxu1 %vm57_vm0, %v5134_v15 }
  0xa1   :  { %886 = vmatprep.mubr.f32.mxu0 %v5020_v2  ;;  %999 = vmatprep.mubr.f32.mxu1 %v5020_v2 }
  0xa4   :  { %4362 = vmatmul.mubr.msk.f32.gmra.mrb[80].mxu0 %vm57_vm0, %v5073_v4  ;;  %4370 = vmatmul.mubr.msk.f32.gmra.mrb[80].mxu1 %vm57_vm0, %v5150_v17 }
  0xa5   :  { %892 = vmatprep.mubr.f32.mxu0 %v5020_v2  ;;  %1005 = vmatprep.mubr.f32.mxu1 %v5020_v2 }
  0xa8   :  { %4363 = vmatmul.mubr.msk.f32.gmra.mrb[82].mxu0 %vm57_vm0, %v5095_v8  ;;  %4371 = vmatmul.mubr.msk.f32.gmra.mrb[82].mxu1 %vm57_vm0, %v5167_v20 }
  0xa9   :  { %898 = vmatprep.mubr.f32.mxu0 %v5020_v2  ;;  %1011 = vmatprep.mubr.f32.mxu1 %v5020_v2 }
  0xac   :  { %4364 = vmatmul.mubr.msk.f32.gmra.mrb[84].mxu0 %vm57_vm0, %v5120_v13  ;;  %4372 = vmatmul.mubr.msk.f32.gmra.mrb[84].mxu1 %vm57_vm0, %v5178_v21 }
  0xad   :  { %904 = vmatprep.mubr.f32.mxu0 %v5020_v2  ;;  %1017 = vmatprep.mubr.f32.mxu1 %v5020_v2 }
  0xb0   :  { %4365 = vmatmul.mubr.msk.f32.gmra.mrb[86].mxu0 %vm57_vm0, %v5139_v16  ;;  %4373 = vmatmul.mubr.msk.f32.gmra.mrb[86].mxu1 %vm57_vm0, %v5189_v22 }
  0xb1   :  { %1023 = vmatprep.mubr.f32.mxu1 %v5020_v2  ;;  %1136 = vmatprep.mubr.f32.mxu0 %v5020_v2 }
  0xb4   :  { %4374 = vmatmul.mubr.msk.f32.gmra.mrb[88].mxu1 %vm57_vm0, %v5200_v23  ;;  %4382 = vmatmul.mubr.msk.f32.vlgmr.msra.gmra.mrb[88].mxu0 %vm57_vm0, %v5068_v3 }
  0xb5   :  { %1029 = vmatprep.mubr.f32.mxu1 %v5020_v2  ;;  %1142 = vmatprep.mubr.f32.mxu0 %v5020_v2 }
  0xb6   :  { %4812 = vmatpush3.msra.mxu0 %v5359_v32 }
  0xb8   :  { %4375 = vmatmul.mubr.msk.f32.gmra.mrb[90].mxu1 %vm57_vm0, %v5211_v24  ;;  %4383 = vmatmul.mubr.msk.f32.gmra.mrb[90].mxu0 %vm57_vm0, %v5090_v7 }
  0xb9   :  { %1035 = vmatprep.mubr.f32.mxu1 %v5020_v2  ;;  %1148 = vmatprep.mubr.f32.mxu0 %v5020_v2 }
  0xbc   :  { %4376 = vmatmul.mubr.msk.f32.gmra.mrb[92].mxu1 %vm57_vm0, %v5222_v25  ;;  %4384 = vmatmul.mubr.msk.f32.gmra.mrb[92].mxu0 %vm57_vm0, %v5115_v12 }
  0xbd   :  { %1041 = vmatprep.mubr.f32.mxu1 %v5020_v2  ;;  %1154 = vmatprep.mubr.f32.mxu0 %v5020_v2 }
  0xc0   :  { %4377 = vmatmul.mubr.msk.f32.gmra.mrb[94].mxu1 %vm57_vm0, %v5233_v26  ;;  %4385 = vmatmul.mubr.msk.f32.gmra.mrb[94].mxu0 %vm57_vm0, %v5134_v15 }
  0xc1   :  { %1047 = vmatprep.mubr.f32.mxu1 %v5020_v2  ;;  %1160 = vmatprep.mubr.f32.mxu0 %v5020_v2 }
  0xc4   :  { %4378 = vmatmul.mubr.msk.f32.gmra.mrb[96].mxu1 %vm57_vm0, %v5073_v4  ;;  %4386 = vmatmul.mubr.msk.f32.gmra.mrb[96].mxu0 %vm57_vm0, %v5150_v17 }
  0xc5   :  { %1053 = vmatprep.mubr.f32.mxu1 %v5020_v2  ;;  %1166 = vmatprep.mubr.f32.mxu0 %v5020_v2 }
  0xc8   :  { %4379 = vmatmul.mubr.msk.f32.gmra.mrb[98].mxu1 %vm57_vm0, %v5095_v8  ;;  %4387 = vmatmul.mubr.msk.f32.gmra.mrb[98].mxu0 %vm57_vm0, %v5167_v20 }
  0xc9   :  { %1059 = vmatprep.mubr.f32.mxu1 %v5020_v2  ;;  %1172 = vmatprep.mubr.f32.mxu0 %v5020_v2 }
  0xcc   :  { %4380 = vmatmul.mubr.msk.f32.gmra.mrb[100].mxu1 %vm57_vm0, %v5120_v13  ;;  %4388 = vmatmul.mubr.msk.f32.gmra.mrb[100].mxu0 %vm57_vm0, %v5178_v21 }
  0xcd   :  { %1065 = vmatprep.mubr.f32.mxu1 %v5020_v2  ;;  %1178 = vmatprep.mubr.f32.mxu0 %v5020_v2 }
  0xd0   :  { %4381 = vmatmul.mubr.msk.f32.gmra.mrb[102].mxu1 %vm57_vm0, %v5139_v16  ;;  %4389 = vmatmul.mubr.msk.f32.gmra.mrb[102].mxu0 %vm57_vm0, %v5189_v22 }
  0xd1   :  { %1184 = vmatprep.mubr.f32.mxu0 %v5020_v2  ;;  %1297 = vmatprep.mubr.f32.mxu1 %v5020_v2 }
  0xd4   :  { %4390 = vmatmul.mubr.msk.f32.gmra.mrb[104].mxu0 %vm57_vm0, %v5200_v23  ;;  %4398 = vmatmul.mubr.msk.f32.vlgmr.msra.gmra.mrb[104].mxu1 %vm57_vm0, %v5068_v3 }
  0xd5   :  { %1190 = vmatprep.mubr.f32.mxu0 %v5020_v2  ;;  %1303 = vmatprep.mubr.f32.mxu1 %v5020_v2 }
  0xd7   :  { %v244_v35 = vpop.f32.mrb[0].mxu1  ;;  %v172_v36 = vpop.f32.mrb[0].mxu0 }
  0xd8   :  { %v246_v37 = vpop.f32.mrb[1].mxu1  ;;  %4391 = vmatmul.mubr.msk.f32.gmra.mrb[106].mxu0 %vm57_vm0, %v5211_v24  ;;  %4399 = vmatmul.mubr.msk.f32.gmra.mrb[106].mxu1 %vm57_vm0, %v5090_v7  ;;  %v174_v38 = vpop.f32.mrb[1].mxu0  ;;  %v1539_v39 = vmax.f32 %v172_v36, 0.0  ;;  %v1743_v43 = vmax.f32 %v244_v35, 0.0 }
  0xd9   :  { %1196 = vmatprep.mubr.f32.mxu0 %v5020_v2  ;;  %1309 = vmatprep.mubr.f32.mxu1 %v5020_v2  ;;  %v1540_v41 = vmax.f32 %v174_v38, 0.0  ;;  %v1744_v48 = vmax.f32 %v246_v37, 0.0 }
  0xdb   :  { %v250_v40 = vpop.f32.mrb[2].mxu1  ;;  %v178_v42 = vpop.f32.mrb[2].mxu0 }
  0xdc   :  { %v1760_v44 = vmax.f32 %v250_v40, 0.0  ;;  %v252_v45 = vpop.f32.mrb[3].mxu1  ;;  %4392 = vmatmul.mubr.msk.f32.gmra.mrb[108].mxu0 %vm57_vm0, %v5222_v25  ;;  %4400 = vmatmul.mubr.msk.f32.gmra.mrb[108].mxu1 %vm57_vm0, %v5115_v12  ;;  %v1556_v46 = vmax.f32 %v178_v42, 0.0  ;;  %v180_v47 = vpop.f32.mrb[3].mxu0 }
  0xdd   :  { %v1761_v49 = vmax.f32 %v252_v45, 0.0  ;;  %1202 = vmatprep.mubr.f32.mxu0 %v5020_v2  ;;  %1315 = vmatprep.mubr.f32.mxu1 %v5020_v2  ;;  %v1557_v50 = vmax.f32 %v180_v47, 0.0 }
  0xde   :  { %v5526_v51 = vpack.c.bf16 %v1760_v44, %v1743_v43  ;;  %v1811_v52 = vpack.c.bf16 %v1556_v46, %v1539_v39 }
  0xdf   :  { %v256_v53 = vpop.f32.mrb[4].mxu1  ;;  %v184_v54 = vpop.f32.mrb[4].mxu0  ;;  %v1812_v55 = vpack.c.bf16 %v1557_v50, %v1540_v41  ;;  %v5528_v56 = vpack.c.bf16 %v1761_v49, %v1744_v48 }
  0xe0   :  { %v258_v57 = vpop.f32.mrb[5].mxu1  ;;  %4393 = vmatmul.mubr.msk.f32.gmra.mrb[110].mxu0 %vm57_vm0, %v5233_v26  ;;  %4401 = vmatmul.mubr.msk.f32.gmra.mrb[110].mxu1 %vm57_vm0, %v5134_v15  ;;  %v186_v58 = vpop.f32.mrb[5].mxu0  ;;  %v1573_v59 = vmax.f32 %v184_v54, 0.0  ;;  %v1777_v63 = vmax.f32 %v256_v53, 0.0 }
  0xe1   :  { %1208 = vmatprep.mubr.f32.mxu0 %v5020_v2  ;;  %1321 = vmatprep.mubr.f32.mxu1 %v5020_v2  ;;  %v1574_v61 = vmax.f32 %v186_v58, 0.0  ;;  %v1778_v9 = vmax.f32 %v258_v57, 0.0 }
  0xe2   :  { %2027 = vmatprep.subr.bf16.mxu1 %v1812_v55 }
  0xe3   :  { %v262_v60 = vpop.f32.mrb[6].mxu1  ;;  %v190_v62 = vpop.f32.mrb[6].mxu0  ;;  %2028 = vmatpush1.bf16.msra.mxu1 %v1811_v52 }
  0xe4   :  { %v1794_v0 = vmax.f32 %v262_v60, 0.0  ;;  %v264_v1 = vpop.f32.mrb[7].mxu1  ;;  %4394 = vmatmul.mubr.msk.f32.gmra.mrb[112].mxu0 %vm57_vm0, %v5073_v4  ;;  %4402 = vmatmul.mubr.msk.f32.gmra.mrb[112].mxu1 %vm57_vm0, %v5150_v17  ;;  %v1590_v5 = vmax.f32 %v190_v62, 0.0  ;;  %v192_v6 = vpop.f32.mrb[7].mxu0 }
  0xe5   :  { %v1795_v10 = vmax.f32 %v264_v1, 0.0  ;;  %1214 = vmatprep.mubr.f32.mxu0 %v5020_v2  ;;  %1327 = vmatprep.mubr.f32.mxu1 %v5020_v2  ;;  %v1591_v11 = vmax.f32 %v192_v6, 0.0 }
  0xe6   :  { %v5542_v14 = vpack.c.bf16 %v1794_v0, %v1777_v63  ;;  %v1828_v18 = vpack.c.bf16 %v1590_v5, %v1573_v59 }
  0xe7   :  { %v333_v19 = vpop.f32.mrb[8].mxu1  ;;  %v196_v27 = vpop.f32.mrb[8].mxu0  ;;  %v1829_v28 = vpack.c.bf16 %v1591_v11, %v1574_v61  ;;  %v5544_v29 = vpack.c.bf16 %v1795_v10, %v1778_v9 }
  0xe8   :  { %v335_v30 = vpop.f32.mrb[9].mxu1  ;;  %4395 = vmatmul.mubr.msk.f32.gmra.mrb[114].mxu0 %vm57_vm0, %v5095_v8  ;;  %4403 = vmatmul.mubr.msk.f32.gmra.mrb[114].mxu1 %vm57_vm0, %v5167_v20  ;;  %v198_v31 = vpop.f32.mrb[9].mxu0  ;;  %v1607_v32 = vmax.f32 %v196_v27, 0.0  ;;  %v1541_v37 = vmax.f32 %v333_v19, 0.0 }
  0xe9   :  { %1220 = vmatprep.mubr.f32.mxu0 %v5020_v2  ;;  %1333 = vmatprep.mubr.f32.mxu1 %v5020_v2  ;;  %v1608_v35 = vmax.f32 %v198_v31, 0.0  ;;  %v1542_v42 = vmax.f32 %v335_v30, 0.0 }
  0xea   :  { %2029 = vmatprep.subr.bf16.mxu1 %v1829_v28 }
  0xeb   :  { %v339_v33 = vpop.f32.mrb[10].mxu1  ;;  %v202_v36 = vpop.f32.mrb[10].mxu0  ;;  %2030 = vmatpush1.bf16.msra.mxu1 %v1828_v18 }
  0xec   :  { %v1558_v38 = vmax.f32 %v339_v33, 0.0  ;;  %v341_v39 = vpop.f32.mrb[11].mxu1  ;;  %4396 = vmatmul.mubr.msk.f32.gmra.mrb[116].mxu0 %vm57_vm0, %v5120_v13  ;;  %4404 = vmatmul.mubr.msk.f32.gmra.mrb[116].mxu1 %vm57_vm0, %v5178_v21  ;;  %v1624_v40 = vmax.f32 %v202_v36, 0.0  ;;  %v204_v41 = vpop.f32.mrb[11].mxu0 }
  0xed   :  { %v1559_v43 = vmax.f32 %v341_v39, 0.0  ;;  %1226 = vmatprep.mubr.f32.mxu0 %v5020_v2  ;;  %1339 = vmatprep.mubr.f32.mxu1 %v5020_v2  ;;  %v1625_v44 = vmax.f32 %v204_v41, 0.0 }
  0xee   :  { %v1813_v45 = vpack.c.bf16 %v1558_v38, %v1541_v37  ;;  %v1845_v46 = vpack.c.bf16 %v1624_v40, %v1607_v32 }
  0xef   :  { %v345_v47 = vpop.f32.mrb[12].mxu1  ;;  %v1814_v48 = vpack.c.bf16 %v1559_v43, %v1542_v42  ;;  %v208_v49 = vpop.f32.mrb[12].mxu0  ;;  %v1846_v50 = vpack.c.bf16 %v1625_v44, %v1608_v35 }
  0xf0   :  { %v347_v52 = vpop.f32.mrb[13].mxu1  ;;  %4397 = vmatmul.mubr.msk.f32.gmra.mrb[118].mxu0 %vm57_vm0, %v5139_v16  ;;  %4405 = vmatmul.mubr.msk.f32.gmra.mrb[118].mxu1 %vm57_vm0, %v5189_v22  ;;  %v210_v53 = vpop.f32.mrb[13].mxu0  ;;  %v1641_v54 = vmax.f32 %v208_v49, 0.0  ;;  %v1575_v59 = vmax.f32 %v345_v47, 0.0 }
  0xf1   :  { %2100 = vmatprep.subr.bf16.mxu0 %v1814_v48  ;;  %1345 = vmatprep.mubr.f32.mxu1 %v5020_v2  ;;  %v1642_v57 = vmax.f32 %v210_v53, 0.0  ;;  %v1576_v0 = vmax.f32 %v347_v52, 0.0 }
  0xf2   :  { %4813 = vmatprep.mubr.msk.f32.mxu0 %vm57_vm0, %v5068_v3  ;;  %2031 = vmatprep.subr.bf16.mxu1 %v1846_v50 }
  0xf3   :  { %v351_v55 = vpop.f32.mrb[14].mxu1  ;;  %v214_v58 = vpop.f32.mrb[14].mxu0  ;;  %2032 = vmatpush1.bf16.msra.mxu1 %v1845_v46 }
  0xf4   :  { %v1592_v60 = vmax.f32 %v351_v55, 0.0  ;;  %v353_v61 = vpop.f32.mrb[15].mxu1  ;;  %4406 = vmatmul.mubr.msk.f32.gmra.mrb[120].mxu1 %vm57_vm0, %v5200_v23  ;;  %4814 = vmatmul.mubr.msk.f32.vlgmr.msra.gmra.mrb[120].mxu0 %vm57_vm0, %v5090_v7  ;;  %v1658_v62 = vmax.f32 %v214_v58, 0.0  ;;  %v216_v63 = vpop.f32.mrb[15].mxu0 }
  0xf5   :  { %v1593_v1 = vmax.f32 %v353_v61, 0.0  ;;  %2101 = vmatpush1.bf16.msra.mxu0 %v1813_v45  ;;  %1351 = vmatprep.mubr.f32.mxu1 %v5020_v2  ;;  %v1659_v3 = vmax.f32 %v216_v63, 0.0 }
  0xf6   :  { %v1830_v5 = vpack.c.bf16 %v1592_v60, %v1575_v59  ;;  %4816 = vmatprep.mubr.msk.f32.mxu0 %vm57_vm0, %v5115_v12  ;;  %v1862_v6 = vpack.c.bf16 %v1658_v62, %v1641_v54 }
  0xf7   :  { %v357_v9 = vpop.f32.mrb[16].mxu1  ;;  %v1831_v10 = vpack.c.bf16 %v1593_v1, %v1576_v0  ;;  %v220_v11 = vpop.f32.mrb[16].mxu0  ;;  %v1863_v18 = vpack.c.bf16 %v1659_v3, %v1642_v57 }
  0xf8   :  { %v359_v19 = vpop.f32.mrb[17].mxu1  ;;  %4407 = vmatmul.mubr.msk.f32.gmra.mrb[122].mxu1 %vm57_vm0, %v5211_v24  ;;  %4817 = vmatmul.mubr.msk.f32.gmra.mrb[122].mxu0 %vm57_vm0, %v5134_v15  ;;  %v222_v7 = vpop.f32.mrb[17].mxu0  ;;  %v1675_v12 = vmax.f32 %v220_v11, 0.0  ;;  %v1609_v31 = vmax.f32 %v357_v9, 0.0 }
  0xf9   :  { %2102 = vmatprep.subr.bf16.mxu0 %v1831_v10  ;;  %1357 = vmatprep.mubr.f32.mxu1 %v5020_v2  ;;  %v1676_v28 = vmax.f32 %v222_v7, 0.0  ;;  %v1610_v36 = vmax.f32 %v359_v19, 0.0  ;;  %v1955_v10 = vld [vmem:[%s6994_s3] sm:$0xff] }
  0xfa   :  { %2103 = vmatpush1.bf16.msra.mxu0 %v1830_v5  ;;  %4819 = vmatprep.mubr.msk.f32.mxu0 %vm57_vm0, %v5150_v17 }
  0xfb   :  { %v363_v27 = vpop.f32.mrb[18].mxu1  ;;  %v226_v30 = vpop.f32.mrb[18].mxu0  ;;  %2033 = vmatprep.subr.bf16.mxu1 %v1863_v18  ;;  %1965 = vperm.xlu0 %4889, %v1955_v10  }
  0xfc   :  { %v1626_v32 = vmax.f32 %v363_v27, 0.0  ;;  %v365_v33 = vpop.f32.mrb[19].mxu1  ;;  %4408 = vmatmul.mubr.msk.f32.gmra.mrb[124].mxu1 %vm57_vm0, %v5222_v25  ;;  %4820 = vmatmul.mubr.msk.f32.gmra.mrb[124].mxu0 %vm57_vm0, %v5167_v20  ;;  %v1692_v15 = vmax.f32 %v226_v30, 0.0  ;;  %v228_v35 = vpop.f32.mrb[19].mxu0 }
  0xfd   :  { %v1627_v37 = vmax.f32 %v365_v33, 0.0  ;;  %1363 = vmatprep.mubr.f32.mxu1 %v5020_v2  ;;  %4822 = vmatprep.mubr.msk.f32.mxu0 %vm57_vm0, %v5178_v21  ;;  %v1693_v17 = vmax.f32 %v228_v35, 0.0 }
  0xfe   :  { %v1847_v38 = vpack.c.bf16 %v1626_v32, %v1609_v31  ;;  %v1879_v39 = vpack.c.bf16 %v1692_v15, %v1675_v12  ;;  %2034 = vmatpush1.bf16.msra.mxu1 %v1862_v6  ;;  %v1958_v31 = vld [vmem:[%s6994_s3 + $0x18] sm:$0xff] }
  0xff   :  { %v1848_v40 = vpack.c.bf16 %v1627_v37, %v1610_v36  ;;  %v369_v41 = vpop.f32.mrb[20].mxu1  ;;  %v232_v42 = vpop.f32.mrb[20].mxu0  ;;  %v1880_v43 = vpack.c.bf16 %v1693_v17, %v1676_v28 }
 0x100   :  { %v371_v44 = vpop.f32.mrb[21].mxu1  ;;  %4409 = vmatmul.mubr.msk.f32.gmra.mrb[126].mxu1 %vm57_vm0, %v5233_v26  ;;  %4823 = vmatmul.mubr.msk.f32.gmra.mrb[126].mxu0 %vm57_vm0, %v5189_v22  ;;  %v234_v20 = vpop.f32.mrb[21].mxu0  ;;  %v1709_v21 = vmax.f32 %v232_v42, 0.0  ;;  %v1643_v48 = vmax.f32 %v369_v41, 0.0 }
 0x101   :  { %2104 = vmatprep.subr.bf16.mxu0 %v1848_v40  ;;  %1369 = vmatprep.mubr.f32.mxu1 %v5020_v2  ;;  %v1710_v45 = vmax.f32 %v234_v20, 0.0  ;;  %v1644_v22 = vmax.f32 %v371_v44, 0.0 }
 0x102   :  { %2105 = vmatpush1.bf16.msra.mxu0 %v1847_v38  ;;  %4825 = vmatprep.mubr.msk.f32.mxu0 %vm57_vm0, %v5200_v23 }
 0x103   :  { %v238_v46 = vpop.f32.mrb[22].mxu0  ;;  %v375_v47 = vpop.f32.mrb[22].mxu1  ;;  %2035 = vmatprep.subr.bf16.mxu1 %v1880_v43 }
 0x104   :  { %v1726_v49 = vmax.f32 %v238_v46, 0.0  ;;  %v1660_v50 = vmax.f32 %v375_v47, 0.0  ;;  %v240_v52 = vpop.f32.mrb[23].mxu0  ;;  %v377_v53 = vpop.f32.mrb[23].mxu1  ;;  %4410 = vmatmul.mubr.msk.f32.gmra.mrb[128].mxu1 %vm57_vm0, %v5073_v4  ;;  %4826 = vmatmul.mubr.msk.f32.gmra.mrb[128].mxu0 %vm57_vm0, %v5211_v24  ;;  %v1960_v47 = vld [vmem:[%s6994_s3 + $0x28] sm:$0xff] }
 0x105   :  { %v1727_v54 = vmax.f32 %v240_v52, 0.0  ;;  %v1661_v55 = vmax.f32 %v377_v53, 0.0  ;;  %2036 = vmatpush1.bf16.msra.mxu1 %v1879_v39  ;;  %1375 = vmatprep.mubr.f32.mxu1 %v5020_v2 }
 0x106   :  { %v1896_v23 = vpack.c.bf16 %v1726_v49, %v1709_v21  ;;  %v1864_v57 = vpack.c.bf16 %v1660_v50, %v1643_v48  ;;  %4828 = vmatprep.mubr.msk.f32.mxu0 %vm57_vm0, %v5222_v25  ;;  %v1959_v21 = vld [vmem:[%s6994_s3 + $0x20] sm:$0xff]  ;;  %v5652_v48 = vld [vmem:[%s6993_s2 + $0x8] sm:$0xff]   ;;  %v1961_v50 = vld [vmem:[%s6994_s3 + $0x30] sm:$0xff] }
 0x107   :  { %v1865_v58 = vpack.c.bf16 %v1661_v55, %v1644_v22  ;;  %v381_v59 = vpop.f32.mrb[24].mxu1  ;;  %v1897_v60 = vpack.c.bf16 %v1727_v54, %v1710_v45  ;;  %v494_v61 = vpop.f32.mrb[24].mxu0 }
 0x108   :  { %v383_v62 = vpop.f32.mrb[25].mxu1  ;;  %4411 = vmatmul.mubr.msk.f32.gmra.mrb[130].mxu1 %vm57_vm0, %v5095_v8  ;;  %4829 = vmatmul.mubr.msk.f32.gmra.mrb[130].mxu0 %vm57_vm0, %v5233_v26  ;;  %v496_v24 = vpop.f32.mrb[25].mxu0  ;;  %v1543_v63 = vmax.f32 %v494_v61, 0.0  ;;  %v1677_v3 = vmax.f32 %v381_v59, 0.0  ;;  %v1962_v59 = vld [vmem:[%s6994_s3 + $0x38] sm:$0xff] }
 0x109   :  { %2037 = vmatprep.subr.bf16.mxu1 %v1897_v60  ;;  %2106 = vmatprep.subr.bf16.mxu0 %v1865_v58  ;;  %v1544_v25 = vmax.f32 %v496_v24, 0.0  ;;  %v1678_v11 = vmax.f32 %v383_v62, 0.0 }
 0x10a   :  { %2038 = vmatpush1.bf16.msra.mxu1 %v1896_v23  ;;  %2107 = vmatpush1.bf16.msra.mxu0 %v1864_v57 }
 0x10b   :  { %v387_v0 = vpop.f32.mrb[26].mxu1  ;;  %1381 = vmatprep.mubr.f32.mxu1 %v5020_v2  ;;  %4831 = vmatprep.mubr.msk.f32.mxu0 %vm57_vm0, %v5073_v4  ;;  %v500_v1 = vpop.f32.mrb[26].mxu0 }
 0x10c   :  { %v1694_v5 = vmax.f32 %v387_v0, 0.0  ;;  %2039 = vmatprep.subr.bf16.mxu1 %v5528_v56  ;;  %v389_v6 = vpop.f32.mrb[27].mxu1  ;;  %4412 = vmatmul.mubr.msk.f32.gmra.mrb[132].mxu1 %vm57_vm0, %v5120_v13  ;;  %v1560_v26 = vmax.f32 %v500_v1, 0.0  ;;  %v502_v9 = vpop.f32.mrb[27].mxu0 }
 0x10d   :  { %v1695_v18 = vmax.f32 %v389_v6, 0.0  ;;  %4832 = vmatmul.mubr.msk.f32.gmra.mrb[132].mxu0 %vm57_vm0, %v5095_v8  ;;  %1387 = vmatprep.mubr.f32.mxu1 %v5020_v2  ;;  %v1561_v4 = vmax.f32 %v502_v9, 0.0  ;;  %v1957_v8 = vld [vmem:[%s6994_s3 + $0x10] sm:$0xff] }
 0x10e   :  { %v1881_v19 = vpack.c.bf16 %v1694_v5, %v1677_v3  ;;  %2040 = vmatpush1.bf16.msra.mxu1 %v5526_v51  ;;  %4834 = vmatprep.mubr.msk.f32.mxu0 %vm57_vm0, %v5120_v13  ;;  %v1815_v56 = vpack.c.bf16 %v1560_v26, %v1543_v63  ;;  %v5630_v13 = vld [vmem:[%s6993_s2] sm:$0xff]   ;;  %v5665_v26 = vld [vmem:[%s6993_s2 + $0x10] sm:$0xff]  }
 0x10f   :  { %v1882_v7 = vpack.c.bf16 %v1695_v18, %v1678_v11  ;;  %v393_v12 = vpop.f32.mrb[28].mxu1  ;;  %2041 = vmatprep.subr.bf16.mxu1 %v5544_v29  ;;  %v1816_v27 = vpack.c.bf16 %v1561_v4, %v1544_v25  ;;  %v506_v28 = vpop.f32.mrb[28].mxu0  ;;  %1975 = vperm.xlu1 %4890, %v1957_v8   ;;  %v1956_v29 = vld [vmem:[%s6994_s3 + $0x8] sm:$0xff] }
 0x110   :  { %v395_v2 = vpop.f32.mrb[29].mxu1  ;;  %4413 = vmatmul.mubr.msk.f32.gmra.mrb[134].mxu1 %vm57_vm0, %v5139_v16  ;;  %v508_v51 = vpop.f32.mrb[29].mxu0  ;;  %v1577_v30 = vmax.f32 %v506_v28, 0.0  ;;  %v1711_v15 = vmax.f32 %v393_v12, 0.0  ;;  %1970 = vperm.xlu0 %4889, %v1956_v29  }
 0x111   :  { %4835 = vmatmul.mubr.msk.f32.gmra.mrb[134].mxu0 %vm57_vm0, %v5139_v16  ;;  %2108 = vmatprep.subr.bf16.mxu0 %v1882_v7  ;;  %v1578_v16 = vmax.f32 %v508_v51, 0.0 }
 0x112   :  { %2042 = vmatpush1.bf16.msra.mxu1 %v5542_v14  ;;  %2109 = vmatpush1.bf16.msra.mxu0 %v1881_v19  ;;  %v1712_v14 = vmax.f32 %v395_v2, 0.0 }
 0x113   :  { %v399_v32 = vpop.f32.mrb[30].mxu1  ;;  %2059 = vmatprep.mubr.bf16.mxu1 %v5021_v34  ;;  %2132 = vmatprep.mubr.bf16.mxu0 %v5021_v34  ;;  %v512_v33 = vpop.f32.mrb[30].mxu0 }
 0x114   :  { %v1728_v35 = vmax.f32 %v399_v32, 0.0  ;;  %v401_v36 = vpop.f32.mrb[31].mxu1  ;;  %2173 = vmatprep.subr.bf16.mxu1 %v1816_v27  ;;  %v1594_v37 = vmax.f32 %v512_v33, 0.0  ;;  %v514_v17 = vpop.f32.mrb[31].mxu0  ;;  %1980 = vperm.xlu1 %4890, %v1958_v31  }
 0x115   :  { %v1729_v38 = vmax.f32 %v401_v36, 0.0  ;;  %2060 = vmatmul.mubr.bf16.vlgmr.msra.gmra.mrb[136].mxu1 %v5630_v13  ;;  %v1595_v39 = vmax.f32 %v514_v17, 0.0  ;;  %1985 = vperm.xlu0 %4889, %v1959_v21  }
 0x116   :  { %v1898_v40 = vpack.c.bf16 %v1728_v35, %v1711_v15  ;;  %2174 = vmatpush1.bf16.msra.mxu1 %v1815_v56  ;;  %v1832_v41 = vpack.c.bf16 %v1594_v37, %v1577_v30  ;;  %2069 = vmatprep.mubr.bf16.mxu1 %v5021_v34  ;;  %v5672_v15 = vld [vmem:[%s6993_s2 + $0x18] sm:$0xff]  }
 0x117   :  { %v1899_v42 = vpack.c.bf16 %v1729_v38, %v1712_v14  ;;  %v405_v43 = vpop.f32.mrb[32].mxu1  ;;  %v1833_v44 = vpack.c.bf16 %v1595_v39, %v1578_v16  ;;  %v518_v20 = vpop.f32.mrb[32].mxu0 }
 0x118   :  { %v407_v45 = vpop.f32.mrb[33].mxu1  ;;  %v520_v46 = vpop.f32.mrb[33].mxu0  ;;  %v1611_v49 = vmax.f32 %v518_v20, 0.0  ;;  %1990 = vperm.xlu1 %4890, %v1960_v47   ;;  %v1745_v54 = vmax.f32 %v405_v43, 0.0 }
 0x119   :  { %2110 = vmatprep.subr.bf16.mxu0 %v1899_v42  ;;  %2175 = vmatprep.subr.bf16.mxu1 %v1833_v44  ;;  %v1612_v53 = vmax.f32 %v520_v46, 0.0  ;;  %v1746_v60 = vmax.f32 %v407_v45, 0.0 }
 0x11a   :  { %2111 = vmatpush1.bf16.msra.mxu0 %v1898_v40  ;;  %2176 = vmatpush1.bf16.msra.mxu1 %v1832_v41 }
 0x11b   :  { %v411_v52 = vpop.f32.mrb[34].mxu1  ;;  %v524_v22 = vpop.f32.mrb[34].mxu0  ;;  %1995 = vperm.xlu0 %4889, %v1961_v50  }
 0x11c   :  { %v1762_v55 = vmax.f32 %v411_v52, 0.0  ;;  %v413_v23 = vpop.f32.mrb[35].mxu1  ;;  %v1628_v57 = vmax.f32 %v524_v22, 0.0  ;;  %v526_v58 = vpop.f32.mrb[35].mxu0  ;;  %2000 = vperm.xlu1 %4890, %v1962_v59  }
 0x11d   :  { %v1763_v61 = vmax.f32 %v413_v23, 0.0  ;;  %2070 = vmatmul.mubr.bf16.gmra.mrb[140].mxu1 %v5652_v48  ;;  %v1629_v62 = vmax.f32 %v526_v58, 0.0 }
 0x11e   :  { %v1915_v24 = vpack.c.bf16 %v1762_v55, %v1745_v54  ;;  %v1849_v63 = vpack.c.bf16 %v1628_v57, %v1611_v49  ;;  %2079 = vmatprep.mubr.bf16.mxu1 %v5021_v34 }
 0x11f   :  { %v1916_v0 = vpack.c.bf16 %v1763_v61, %v1746_v60  ;;  %v417_v25 = vpop.f32.mrb[36].mxu1  ;;  %v1850_v1 = vpack.c.bf16 %v1629_v62, %v1612_v53  ;;  %v530_v3 = vpop.f32.mrb[36].mxu0 }
 0x120   :  { %v419_v5 = vpop.f32.mrb[37].mxu1  ;;  %v532_v6 = vpop.f32.mrb[37].mxu0  ;;  %v1645_v9 = vmax.f32 %v530_v3, 0.0  ;;  %v1779_v4 = vmax.f32 %v417_v25, 0.0 }
 0x121   :  { %2112 = vmatprep.subr.bf16.mxu0 %v1916_v0  ;;  %2177 = vmatprep.subr.bf16.mxu1 %v1850_v1  ;;  %v1646_v11 = vmax.f32 %v532_v6, 0.0  ;;  %v1780_v27 = vmax.f32 %v419_v5, 0.0 }
 0x122   :  { %2113 = vmatpush1.bf16.msra.mxu0 %v1915_v24  ;;  %2178 = vmatpush1.bf16.msra.mxu1 %v1849_v63 }
 0x123   :  { %v423_v10 = vpop.f32.mrb[38].mxu1  ;;  %v536_v18 = vpop.f32.mrb[38].mxu0 }
 0x124   :  { %v1796_v19 = vmax.f32 %v423_v10, 0.0  ;;  %v425_v56 = vpop.f32.mrb[39].mxu1  ;;  %v1662_v7 = vmax.f32 %v536_v18, 0.0  ;;  %v538_v12 = vpop.f32.mrb[39].mxu0 }
 0x125   :  { %v1797_v28 = vmax.f32 %v425_v56, 0.0  ;;  %2080 = vmatmul.mubr.bf16.gmra.mrb[144].mxu1 %v5665_v26  ;;  %v1663_v8 = vmax.f32 %v538_v12, 0.0 }
 0x126   :  { %v1932_v2 = vpack.c.bf16 %v1796_v19, %v1779_v4  ;;  %v1866_v51 = vpack.c.bf16 %v1662_v7, %v1645_v9  ;;  %2089 = vmatprep.mubr.bf16.mxu1 %v5021_v34 }
 0x127   :  { %v1933_v29 = vpack.c.bf16 %v1797_v28, %v1780_v27  ;;  %v655_v30 = vpop.f32.mrb[40].mxu1  ;;  %v1867_v31 = vpack.c.bf16 %v1663_v8, %v1646_v11  ;;  %v542_v32 = vpop.f32.mrb[40].mxu0 }
 0x128   :  { %v657_v16 = vpop.f32.mrb[41].mxu1  ;;  %v544_v33 = vpop.f32.mrb[41].mxu0  ;;  %v1679_v35 = vmax.f32 %v542_v32, 0.0  ;;  %v1545_v14 = vmax.f32 %v655_v30, 0.0 }
 0x129   :  { %2114 = vmatprep.subr.bf16.mxu0 %v1933_v29  ;;  %2179 = vmatprep.subr.bf16.mxu1 %v1867_v31  ;;  %v1680_v37 = vmax.f32 %v544_v33, 0.0  ;;  %v1546_v42 = vmax.f32 %v657_v16, 0.0 }
 0x12a   :  { %2115 = vmatpush1.bf16.msra.mxu0 %v1932_v2  ;;  %2180 = vmatpush1.bf16.msra.mxu1 %v1866_v51 }
 0x12b   :  { %v661_v36 = vpop.f32.mrb[42].mxu1  ;;  %v548_v17 = vpop.f32.mrb[42].mxu0 }
 0x12c   :  { %v1562_v38 = vmax.f32 %v661_v36, 0.0  ;;  %v663_v39 = vpop.f32.mrb[43].mxu1  ;;  %v1696_v40 = vmax.f32 %v548_v17, 0.0  ;;  %v550_v41 = vpop.f32.mrb[43].mxu0 }
 0x12d   :  { %v1563_v43 = vmax.f32 %v663_v39, 0.0  ;;  %2133 = vmatmul.mubr.bf16.vlgmr.msra.gmra.mrb[136].mxu0 %v5630_v13  ;;  %2090 = vmatmul.mubr.bf16.gmra.mrb[148].mxu1 %v5672_v15  ;;  %v1697_v44 = vmax.f32 %v550_v41, 0.0 }
 0x12e   :  { %v1817_v20 = vpack.c.bf16 %v1562_v38, %v1545_v14  ;;  %2142 = vmatprep.mubr.bf16.mxu0 %v5021_v34  ;;  %v1883_v21 = vpack.c.bf16 %v1696_v40, %v1679_v35  ;;  %2205 = vmatprep.mubr.bf16.mxu1 %v5021_v34 }
 0x12f   :  { %v1818_v45 = vpack.c.bf16 %v1563_v43, %v1546_v42  ;;  %v667_v46 = vpop.f32.mrb[44].mxu1  ;;  %v1884_v47 = vpack.c.bf16 %v1697_v44, %v1680_v37  ;;  %v554_v49 = vpop.f32.mrb[44].mxu0 }
 0x130   :  { %v669_v50 = vpop.f32.mrb[45].mxu1  ;;  %v556_v52 = vpop.f32.mrb[45].mxu0  ;;  %v1713_v53 = vmax.f32 %v554_v49, 0.0  ;;  %v1579_v23 = vmax.f32 %v667_v46, 0.0 }
 0x131   :  { %2246 = vmatprep.subr.bf16.mxu0 %v1818_v45  ;;  %2181 = vmatprep.subr.bf16.mxu1 %v1884_v47  ;;  %v1714_v54 = vmax.f32 %v556_v52, 0.0  ;;  %v1580_v61 = vmax.f32 %v669_v50, 0.0 }
 0x132   :  { %2247 = vmatpush1.bf16.msra.mxu0 %v1817_v20  ;;  %2182 = vmatpush1.bf16.msra.mxu1 %v1883_v21 }
 0x133   :  { %v673_v22 = vpop.f32.mrb[46].mxu1  ;;  %v560_v55 = vpop.f32.mrb[46].mxu0 }
 0x134   :  { %v1596_v57 = vmax.f32 %v673_v22, 0.0  ;;  %v675_v58 = vpop.f32.mrb[47].mxu1  ;;  %v1730_v59 = vmax.f32 %v560_v55, 0.0  ;;  %v562_v60 = vpop.f32.mrb[47].mxu0 }
 0x135   :  { %v1597_v62 = vmax.f32 %v675_v58, 0.0  ;;  %2143 = vmatmul.mubr.bf16.gmra.mrb[140].mxu0 %v5652_v48  ;;  %v1731_v24 = vmax.f32 %v562_v60, 0.0 }
 0x136   :  { %v1834_v63 = vpack.c.bf16 %v1596_v57, %v1579_v23  ;;  %2152 = vmatprep.mubr.bf16.mxu0 %v5021_v34  ;;  %v1900_v0 = vpack.c.bf16 %v1730_v59, %v1713_v53 }
 0x137   :  { %v1835_v25 = vpack.c.bf16 %v1597_v62, %v1580_v61  ;;  %v679_v1 = vpop.f32.mrb[48].mxu1  ;;  %v1901_v3 = vpack.c.bf16 %v1731_v24, %v1714_v54  ;;  %v566_v5 = vpop.f32.mrb[48].mxu0 }
 0x138   :  { %v681_v6 = vpop.f32.mrb[49].mxu1  ;;  %v568_v9 = vpop.f32.mrb[49].mxu0  ;;  %v1747_v10 = vmax.f32 %v566_v5, 0.0  ;;  %v1613_v19 = vmax.f32 %v679_v1, 0.0 }
 0x139   :  { %2248 = vmatprep.subr.bf16.mxu0 %v1835_v25  ;;  %2183 = vmatprep.subr.bf16.mxu1 %v1901_v3  ;;  %v1748_v18 = vmax.f32 %v568_v9, 0.0  ;;  %v1614_v28 = vmax.f32 %v681_v6, 0.0 }
 0x13a   :  { %2249 = vmatpush1.bf16.msra.mxu0 %v1834_v63  ;;  %2184 = vmatpush1.bf16.msra.mxu1 %v1900_v0 }
 0x13b   :  { %v685_v11 = vpop.f32.mrb[50].mxu1  ;;  %v572_v4 = vpop.f32.mrb[50].mxu0 }
 0x13c   :  { %v1630_v56 = vmax.f32 %v685_v11, 0.0  ;;  %v687_v7 = vpop.f32.mrb[51].mxu1  ;;  %v1764_v12 = vmax.f32 %v572_v4, 0.0  ;;  %v574_v27 = vpop.f32.mrb[51].mxu0 }
 0x13d   :  { %v1631_v8 = vmax.f32 %v687_v7, 0.0  ;;  %2153 = vmatmul.mubr.bf16.gmra.mrb[144].mxu0 %v5665_v26  ;;  %v1765_v2 = vmax.f32 %v574_v27, 0.0 }
 0x13e   :  { %v1851_v51 = vpack.c.bf16 %v1630_v56, %v1613_v19  ;;  %2162 = vmatprep.mubr.bf16.mxu0 %v5021_v34  ;;  %v1917_v29 = vpack.c.bf16 %v1764_v12, %v1747_v10  ;;  %v3300_v56 = vld [vmem:[%s6995_s5] sm:$0xff] }
 0x13f   :  { %v1852_v30 = vpack.c.bf16 %v1631_v8, %v1614_v28  ;;  %v691_v31 = vpop.f32.mrb[52].mxu1  ;;  %v1918_v32 = vpack.c.bf16 %v1765_v2, %v1748_v18  ;;  %v578_v16 = vpop.f32.mrb[52].mxu0  ;;  %3318 = vperm.xlu0 %4889, %v3300_v56  }
 0x140   :  { %v693_v33 = vpop.f32.mrb[53].mxu1  ;;  %v580_v35 = vpop.f32.mrb[53].mxu0  ;;  %v1781_v36 = vmax.f32 %v578_v16, 0.0  ;;  %v1647_v38 = vmax.f32 %v691_v31, 0.0 }
 0x141   :  { %2250 = vmatprep.subr.bf16.mxu0 %v1852_v30  ;;  %2185 = vmatprep.subr.bf16.mxu1 %v1918_v32  ;;  %v1782_v17 = vmax.f32 %v580_v35, 0.0  ;;  %v1648_v43 = vmax.f32 %v693_v33, 0.0 }
 0x142   :  { %2251 = vmatpush1.bf16.msra.mxu0 %v1851_v51  ;;  %2186 = vmatpush1.bf16.msra.mxu1 %v1917_v29 }
 0x143   :  { %v697_v37 = vpop.f32.mrb[54].mxu1  ;;  %v584_v14 = vpop.f32.mrb[54].mxu0 }
 0x144   :  { %v1664_v39 = vmax.f32 %v697_v37, 0.0  ;;  %v699_v40 = vpop.f32.mrb[55].mxu1  ;;  %v1798_v41 = vmax.f32 %v584_v14, 0.0  ;;  %v586_v42 = vpop.f32.mrb[55].mxu0  ;;  %v3302_v37 = vld [vmem:[%s6995_s5 + $0x10] sm:$0xff] }
 0x145   :  { %v1665_v44 = vmax.f32 %v699_v40, 0.0  ;;  %2163 = vmatmul.mubr.bf16.gmra.mrb[148].mxu0 %v5672_v15  ;;  %v1799_v20 = vmax.f32 %v586_v42, 0.0  ;;  %3328 = vperm.xlu0 %4889, %v3302_v37   ;;  %v3303_v42 = vld [vmem:[%s6995_s5 + $0x18] sm:$0xff] }
 0x146   :  { %v1868_v21 = vpack.c.bf16 %v1664_v39, %v1647_v38  ;;  %v1934_v45 = vpack.c.bf16 %v1798_v41, %v1781_v36  ;;  %2278 = vmatprep.mubr.bf16.mxu0 %v5021_v34  ;;  %v3301_v36 = vld [vmem:[%s6995_s5 + $0x8] sm:$0xff] }
 0x147   :  { %v1869_v46 = vpack.c.bf16 %v1665_v44, %v1648_v43  ;;  %v703_v47 = vpop.f32.mrb[56].mxu1  ;;  %v1935_v49 = vpack.c.bf16 %v1799_v20, %v1782_v17  ;;  %v816_v50 = vpop.f32.mrb[56].mxu0  ;;  %3323 = vperm.xlu1 %4890, %v3301_v36   ;;  %v3304_v43 = vld [vmem:[%s6995_s5 + $0x20] sm:$0xff] }
 0x148   :  { %v705_v52 = vpop.f32.mrb[57].mxu1  ;;  %v818_v53 = vpop.f32.mrb[57].mxu0  ;;  %v1547_v22 = vmax.f32 %v816_v50, 0.0  ;;  %v1681_v57 = vmax.f32 %v703_v47, 0.0 }
 0x149   :  { %2252 = vmatprep.subr.bf16.mxu0 %v1869_v46  ;;  %2187 = vmatprep.subr.bf16.mxu1 %v1935_v49  ;;  %v1548_v55 = vmax.f32 %v818_v53, 0.0  ;;  %v1682_v62 = vmax.f32 %v705_v52, 0.0 }
 0x14a   :  { %2253 = vmatpush1.bf16.msra.mxu0 %v1868_v21  ;;  %2188 = vmatpush1.bf16.msra.mxu1 %v1934_v45 }
 0x14b   :  { %v709_v54 = vpop.f32.mrb[58].mxu1  ;;  %v822_v23 = vpop.f32.mrb[58].mxu0  ;;  %3333 = vperm.xlu1 %4890, %v3303_v42   ;;  %3338 = vperm.xlu0 %4889, %v3304_v43  }
 0x14c   :  { %v1698_v58 = vmax.f32 %v709_v54, 0.0  ;;  %v711_v59 = vpop.f32.mrb[59].mxu1  ;;  %v1564_v60 = vmax.f32 %v822_v23, 0.0  ;;  %v824_v61 = vpop.f32.mrb[59].mxu0 }
 0x14d   :  { %v1699_v24 = vmax.f32 %v711_v59, 0.0  ;;  %v1565_v63 = vmax.f32 %v824_v61, 0.0  ;;  %2206 = vmatmul.mubr.bf16.vlgmr.msra.gmra.mrb[152].mxu1 %v5630_v13 }
 0x14e   :  { %v1885_v0 = vpack.c.bf16 %v1698_v58, %v1681_v57  ;;  %v1819_v25 = vpack.c.bf16 %v1564_v60, %v1547_v22  ;;  %2215 = vmatprep.mubr.bf16.mxu1 %v5021_v34  ;;  %v3305_v57 = vld [vmem:[%s6995_s5 + $0x28] sm:$0xff]  ;;  %v3306_v58 = vld [vmem:[%s6995_s5 + $0x30] sm:$0xff] }
 0x14f   :  { %v1886_v1 = vpack.c.bf16 %v1699_v24, %v1682_v62  ;;  %v715_v3 = vpop.f32.mrb[60].mxu1  ;;  %v1820_v5 = vpack.c.bf16 %v1565_v63, %v1548_v55  ;;  %v828_v6 = vpop.f32.mrb[60].mxu0  ;;  %3343 = vperm.xlu1 %4890, %v3305_v57   ;;  %3348 = vperm.xlu0 %4889, %v3306_v58  }
 0x150   :  { %v717_v9 = vpop.f32.mrb[61].mxu1  ;;  %v830_v10 = vpop.f32.mrb[61].mxu0  ;;  %v1581_v11 = vmax.f32 %v828_v6, 0.0  ;;  %v1715_v7 = vmax.f32 %v715_v3, 0.0 }
 0x151   :  { %2254 = vmatprep.subr.bf16.mxu0 %v1886_v1  ;;  %2319 = vmatprep.subr.bf16.mxu1 %v1820_v5  ;;  %v1582_v4 = vmax.f32 %v830_v10, 0.0  ;;  %v1716_v2 = vmax.f32 %v717_v9, 0.0 }
 0x152   :  { %2255 = vmatpush1.bf16.msra.mxu0 %v1885_v0  ;;  %2320 = vmatpush1.bf16.msra.mxu1 %v1819_v25  ;;  %v3307_v0 = vld [vmem:[%s6995_s5 + $0x38] sm:$0xff]  ;;  %v3308_v25 = vld [vmem:[%s6995_s5 + $0x40] sm:$0xff] }
 0x153   :  { %v721_v18 = vpop.f32.mrb[62].mxu1  ;;  %v834_v19 = vpop.f32.mrb[62].mxu0  ;;  %3353 = vperm.xlu1 %4890, %v3307_v0   ;;  %3358 = vperm.xlu0 %4889, %v3308_v25  }
 0x154   :  { %v1732_v12 = vmax.f32 %v721_v18, 0.0  ;;  %v723_v27 = vpop.f32.mrb[63].mxu1  ;;  %v1598_v28 = vmax.f32 %v834_v19, 0.0  ;;  %v836_v8 = vpop.f32.mrb[63].mxu0 }
 0x155   :  { %v1733_v51 = vmax.f32 %v723_v27, 0.0  ;;  %v1599_v29 = vmax.f32 %v836_v8, 0.0  ;;  %2216 = vmatmul.mubr.bf16.gmra.mrb[156].mxu1 %v5652_v48  ;;  %v3310_v8 = vld [vmem:[%s6995_s5 + $0x50] sm:$0xff] }
 0x156   :  { %v1902_v30 = vpack.c.bf16 %v1732_v12, %v1715_v7  ;;  %v1836_v31 = vpack.c.bf16 %v1598_v28, %v1581_v11  ;;  %2225 = vmatprep.mubr.bf16.mxu1 %v5021_v34  ;;  %v3309_v28 = vld [vmem:[%s6995_s5 + $0x48] sm:$0xff] }
 0x157   :  { %v1903_v32 = vpack.c.bf16 %v1733_v51, %v1716_v2  ;;  %v727_v16 = vpop.f32.mrb[64].mxu1  ;;  %v1837_v33 = vpack.c.bf16 %v1599_v29, %v1582_v4  ;;  %v840_v35 = vpop.f32.mrb[64].mxu0  ;;  %3363 = vperm.xlu1 %4890, %v3309_v28   ;;  %3368 = vperm.xlu0 %4889, %v3310_v8  }
 0x158   :  { %v729_v17 = vpop.f32.mrb[65].mxu1  ;;  %v842_v14 = vpop.f32.mrb[65].mxu0  ;;  %v1615_v38 = vmax.f32 %v840_v35, 0.0  ;;  %v1749_v44 = vmax.f32 %v727_v16, 0.0  ;;  %v3311_v16 = vld [vmem:[%s6995_s5 + $0x58] sm:$0xff] }
 0x159   :  { %2256 = vmatprep.subr.bf16.mxu0 %v1903_v32  ;;  %2321 = vmatprep.subr.bf16.mxu1 %v1837_v33  ;;  %v1616_v40 = vmax.f32 %v842_v14, 0.0  ;;  %v1750_v47 = vmax.f32 %v729_v17, 0.0  ;;  %v3312_v33 = vld [vmem:[%s6995_s5 + $0x60] sm:$0xff] }
 0x15a   :  { %2257 = vmatpush1.bf16.msra.mxu0 %v1902_v30  ;;  %2322 = vmatpush1.bf16.msra.mxu1 %v1836_v31 }
 0x15b   :  { %v733_v39 = vpop.f32.mrb[66].mxu1  ;;  %v846_v41 = vpop.f32.mrb[66].mxu0  ;;  %3373 = vperm.xlu1 %4890, %v3311_v16   ;;  %3378 = vperm.xlu0 %4889, %v3312_v33  }
 0x15c   :  { %v1766_v20 = vmax.f32 %v733_v39, 0.0  ;;  %v735_v21 = vpop.f32.mrb[67].mxu1  ;;  %v1632_v45 = vmax.f32 %v846_v41, 0.0  ;;  %v848_v46 = vpop.f32.mrb[67].mxu0 }
 0x15d   :  { %v1767_v49 = vmax.f32 %v735_v21, 0.0  ;;  %v1633_v50 = vmax.f32 %v848_v46, 0.0  ;;  %2226 = vmatmul.mubr.bf16.gmra.mrb[160].mxu1 %v5665_v26  ;;  %v3314_v46 = vld [vmem:[%s6995_s5 + $0x70] sm:$0xff] }
 0x15e   :  { %v1919_v52 = vpack.c.bf16 %v1766_v20, %v1749_v44  ;;  %v1853_v53 = vpack.c.bf16 %v1632_v45, %v1615_v38  ;;  %2235 = vmatprep.mubr.bf16.mxu1 %v5021_v34  ;;  %v3313_v45 = vld [vmem:[%s6995_s5 + $0x68] sm:$0xff] }
 0x15f   :  { %v1920_v22 = vpack.c.bf16 %v1767_v49, %v1750_v47  ;;  %v739_v54 = vpop.f32.mrb[68].mxu1  ;;  %v1854_v55 = vpack.c.bf16 %v1633_v50, %v1616_v40  ;;  %v852_v23 = vpop.f32.mrb[68].mxu0  ;;  %3383 = vperm.xlu1 %4890, %v3313_v45   ;;  %3388 = vperm.xlu0 %4889, %v3314_v46  }
 0x160   :  { %v741_v59 = vpop.f32.mrb[69].mxu1  ;;  %v854_v60 = vpop.f32.mrb[69].mxu0  ;;  %v1649_v61 = vmax.f32 %v852_v23, 0.0  ;;  %v1783_v1 = vmax.f32 %v739_v54, 0.0  ;;  %v3315_v54 = vld [vmem:[%s6995_s5 + $0x78] sm:$0xff] }
 0x161   :  { %2258 = vmatprep.subr.bf16.mxu0 %v1920_v22  ;;  %2323 = vmatprep.subr.bf16.mxu1 %v1854_v55  ;;  %v1650_v24 = vmax.f32 %v854_v60, 0.0  ;;  %v1784_v10 = vmax.f32 %v741_v59, 0.0 }
 0x162   :  { %2259 = vmatpush1.bf16.msra.mxu0 %v1919_v52  ;;  %2324 = vmatpush1.bf16.msra.mxu1 %v1853_v53 }
 0x163   :  { %v745_v62 = vpop.f32.mrb[70].mxu1  ;;  %v858_v63 = vpop.f32.mrb[70].mxu0  ;;  %3393 = vperm.xlu1 %4890, %v3315_v54  }
 0x164   :  { %v1800_v3 = vmax.f32 %v745_v62, 0.0  ;;  %v747_v5 = vpop.f32.mrb[71].mxu1  ;;  %v1666_v6 = vmax.f32 %v858_v63, 0.0  ;;  %v860_v9 = vpop.f32.mrb[71].mxu0 }
 0x165   :  { %v1801_v11 = vmax.f32 %v747_v5, 0.0  ;;  %v1667_v18 = vmax.f32 %v860_v9, 0.0  ;;  %2236 = vmatmul.mubr.bf16.gmra.mrb[164].mxu1 %v5672_v15 }
 0x166   :  { %v1936_v4 = vpack.c.bf16 %v1800_v3, %v1783_v1  ;;  %v1870_v19 = vpack.c.bf16 %v1666_v6, %v1649_v61  ;;  %2351 = vmatprep.mubr.bf16.mxu1 %v5021_v34 }
 0x167   :  { %v1937_v56 = vpack.c.bf16 %v1801_v11, %v1784_v10  ;;  %v977_v7 = vpop.f32.mrb[72].mxu1  ;;  %v1871_v12 = vpack.c.bf16 %v1667_v18, %v1650_v24  ;;  %v864_v27 = vpop.f32.mrb[72].mxu0 }
 0x168   :  { %v979_v2 = vpop.f32.mrb[73].mxu1  ;;  %v866_v51 = vpop.f32.mrb[73].mxu0  ;;  %v1683_v29 = vmax.f32 %v864_v27, 0.0  ;;  %v1549_v35 = vmax.f32 %v977_v7, 0.0 }
 0x169   :  { %2260 = vmatprep.subr.bf16.mxu0 %v1937_v56  ;;  %2325 = vmatprep.subr.bf16.mxu1 %v1871_v12  ;;  %v1684_v31 = vmax.f32 %v866_v51, 0.0  ;;  %v1550_v38 = vmax.f32 %v979_v2, 0.0 }
 0x16a   :  { %2261 = vmatpush1.bf16.msra.mxu0 %v1936_v4  ;;  %2326 = vmatpush1.bf16.msra.mxu1 %v1870_v19 }
 0x16b   :  { %v983_v30 = vpop.f32.mrb[74].mxu1  ;;  %v870_v32 = vpop.f32.mrb[74].mxu0 }
 0x16c   :  { %v1566_v36 = vmax.f32 %v983_v30, 0.0  ;;  %v985_v37 = vpop.f32.mrb[75].mxu1  ;;  %v1700_v17 = vmax.f32 %v870_v32, 0.0  ;;  %v872_v14 = vpop.f32.mrb[75].mxu0 }
 0x16d   :  { %v1567_v39 = vmax.f32 %v985_v37, 0.0  ;;  %2279 = vmatmul.mubr.bf16.vlgmr.msra.gmra.mrb[152].mxu0 %v5630_v13  ;;  %v1701_v40 = vmax.f32 %v872_v14, 0.0 }
 0x16e   :  { %v1821_v41 = vpack.c.bf16 %v1566_v36, %v1549_v35  ;;  %2288 = vmatprep.mubr.bf16.mxu0 %v5021_v34  ;;  %v1887_v42 = vpack.c.bf16 %v1700_v17, %v1683_v29 }
 0x16f   :  { %v1822_v43 = vpack.c.bf16 %v1567_v39, %v1550_v38  ;;  %v989_v44 = vpop.f32.mrb[76].mxu1  ;;  %v1888_v20 = vpack.c.bf16 %v1701_v40, %v1684_v31  ;;  %v876_v21 = vpop.f32.mrb[76].mxu0 }
 0x170   :  { %v991_v47 = vpop.f32.mrb[77].mxu1  ;;  %v878_v49 = vpop.f32.mrb[77].mxu0  ;;  %v1717_v50 = vmax.f32 %v876_v21, 0.0  ;;  %v1583_v55 = vmax.f32 %v989_v44, 0.0 }
 0x171   :  { %2392 = vmatprep.subr.bf16.mxu0 %v1822_v43  ;;  %2327 = vmatprep.subr.bf16.mxu1 %v1888_v20  ;;  %v1718_v53 = vmax.f32 %v878_v49, 0.0  ;;  %v1584_v60 = vmax.f32 %v991_v47, 0.0 }
 0x172   :  { %2393 = vmatpush1.bf16.msra.mxu0 %v1821_v41  ;;  %2328 = vmatpush1.bf16.msra.mxu1 %v1887_v42 }
 0x173   :  { %v995_v52 = vpop.f32.mrb[78].mxu1  ;;  %v882_v22 = vpop.f32.mrb[78].mxu0 }
 0x174   :  { %v1600_v23 = vmax.f32 %v995_v52, 0.0  ;;  %v997_v57 = vpop.f32.mrb[79].mxu1  ;;  %v1734_v58 = vmax.f32 %v882_v22, 0.0  ;;  %v884_v59 = vpop.f32.mrb[79].mxu0 }
 0x175   :  { %v1601_v61 = vmax.f32 %v997_v57, 0.0  ;;  %2289 = vmatmul.mubr.bf16.gmra.mrb[156].mxu0 %v5652_v48  ;;  %v1735_v62 = vmax.f32 %v884_v59, 0.0 }
 0x176   :  { %v1838_v24 = vpack.c.bf16 %v1600_v23, %v1583_v55  ;;  %2298 = vmatprep.mubr.bf16.mxu0 %v5021_v34  ;;  %v1904_v63 = vpack.c.bf16 %v1734_v58, %v1717_v50 }
 0x177   :  { %v1839_v0 = vpack.c.bf16 %v1601_v61, %v1584_v60  ;;  %v1001_v25 = vpop.f32.mrb[80].mxu1  ;;  %v1905_v1 = vpack.c.bf16 %v1735_v62, %v1718_v53  ;;  %v888_v3 = vpop.f32.mrb[80].mxu0 }
 0x178   :  { %v1003_v5 = vpop.f32.mrb[81].mxu1  ;;  %v890_v6 = vpop.f32.mrb[81].mxu0  ;;  %v1751_v9 = vmax.f32 %v888_v3, 0.0  ;;  %v1617_v4 = vmax.f32 %v1001_v25, 0.0 }
 0x179   :  { %2394 = vmatprep.subr.bf16.mxu0 %v1839_v0  ;;  %2329 = vmatprep.subr.bf16.mxu1 %v1905_v1  ;;  %v1752_v11 = vmax.f32 %v890_v6, 0.0  ;;  %v1618_v27 = vmax.f32 %v1003_v5, 0.0 }
 0x17a   :  { %2395 = vmatpush1.bf16.msra.mxu0 %v1838_v24  ;;  %2330 = vmatpush1.bf16.msra.mxu1 %v1904_v63 }
 0x17b   :  { %v1007_v10 = vpop.f32.mrb[82].mxu1  ;;  %v894_v18 = vpop.f32.mrb[82].mxu0 }
 0x17c   :  { %v1634_v19 = vmax.f32 %v1007_v10, 0.0  ;;  %v1009_v56 = vpop.f32.mrb[83].mxu1  ;;  %v1768_v7 = vmax.f32 %v894_v18, 0.0  ;;  %v896_v12 = vpop.f32.mrb[83].mxu0 }
 0x17d   :  { %v1635_v28 = vmax.f32 %v1009_v56, 0.0  ;;  %2299 = vmatmul.mubr.bf16.gmra.mrb[160].mxu0 %v5665_v26  ;;  %v1769_v8 = vmax.f32 %v896_v12, 0.0 }
 0x17e   :  { %v1855_v2 = vpack.c.bf16 %v1634_v19, %v1617_v4  ;;  %2308 = vmatprep.mubr.bf16.mxu0 %v5021_v34  ;;  %v1921_v51 = vpack.c.bf16 %v1768_v7, %v1751_v9 }
 0x17f   :  { %v1856_v29 = vpack.c.bf16 %v1635_v28, %v1618_v27  ;;  %v1013_v30 = vpop.f32.mrb[84].mxu1  ;;  %v1922_v31 = vpack.c.bf16 %v1769_v8, %v1752_v11  ;;  %v900_v32 = vpop.f32.mrb[84].mxu0 }
 0x180   :  { %v1015_v16 = vpop.f32.mrb[85].mxu1  ;;  %v902_v33 = vpop.f32.mrb[85].mxu0  ;;  %v1785_v35 = vmax.f32 %v900_v32, 0.0  ;;  %v1651_v14 = vmax.f32 %v1013_v30, 0.0 }
 0x181   :  { %2396 = vmatprep.subr.bf16.mxu0 %v1856_v29  ;;  %2331 = vmatprep.subr.bf16.mxu1 %v1922_v31  ;;  %v1786_v37 = vmax.f32 %v902_v33, 0.0  ;;  %v1652_v42 = vmax.f32 %v1015_v16, 0.0 }
 0x182   :  { %2397 = vmatpush1.bf16.msra.mxu0 %v1855_v2  ;;  %2332 = vmatpush1.bf16.msra.mxu1 %v1921_v51 }
 0x183   :  { %v1019_v36 = vpop.f32.mrb[86].mxu1  ;;  %v906_v17 = vpop.f32.mrb[86].mxu0 }
 0x184   :  { %v1668_v38 = vmax.f32 %v1019_v36, 0.0  ;;  %v1021_v39 = vpop.f32.mrb[87].mxu1  ;;  %v1802_v40 = vmax.f32 %v906_v17, 0.0  ;;  %v908_v41 = vpop.f32.mrb[87].mxu0 }
 0x185   :  { %v1669_v43 = vmax.f32 %v1021_v39, 0.0  ;;  %2309 = vmatmul.mubr.bf16.gmra.mrb[164].mxu0 %v5672_v15  ;;  %v1803_v44 = vmax.f32 %v908_v41, 0.0 }
 0x186   :  { %v1872_v20 = vpack.c.bf16 %v1668_v38, %v1651_v14  ;;  %v1938_v21 = vpack.c.bf16 %v1802_v40, %v1785_v35  ;;  %2424 = vmatprep.mubr.bf16.mxu0 %v5021_v34 }
 0x187   :  { %v1873_v45 = vpack.c.bf16 %v1669_v43, %v1652_v42  ;;  %v1025_v46 = vpop.f32.mrb[88].mxu1  ;;  %v1939_v47 = vpack.c.bf16 %v1803_v44, %v1786_v37  ;;  %v1138_v49 = vpop.f32.mrb[88].mxu0 }
 0x188   :  { %v1027_v50 = vpop.f32.mrb[89].mxu1  ;;  %v1140_v52 = vpop.f32.mrb[89].mxu0  ;;  %v1551_v53 = vmax.f32 %v1138_v49, 0.0  ;;  %v1685_v23 = vmax.f32 %v1025_v46, 0.0 }
 0x189   :  { %2398 = vmatprep.subr.bf16.mxu0 %v1873_v45  ;;  %2333 = vmatprep.subr.bf16.mxu1 %v1939_v47  ;;  %v1552_v54 = vmax.f32 %v1140_v52, 0.0  ;;  %v1686_v61 = vmax.f32 %v1027_v50, 0.0 }
 0x18a   :  { %2399 = vmatpush1.bf16.msra.mxu0 %v1872_v20  ;;  %2334 = vmatpush1.bf16.msra.mxu1 %v1938_v21 }
 0x18b   :  { %v1031_v22 = vpop.f32.mrb[90].mxu1  ;;  %v1144_v55 = vpop.f32.mrb[90].mxu0 }
 0x18c   :  { %v1702_v57 = vmax.f32 %v1031_v22, 0.0  ;;  %v1033_v58 = vpop.f32.mrb[91].mxu1  ;;  %v1568_v59 = vmax.f32 %v1144_v55, 0.0  ;;  %v1146_v60 = vpop.f32.mrb[91].mxu0 }
 0x18d   :  { %v1703_v62 = vmax.f32 %v1033_v58, 0.0  ;;  %2352 = vmatmul.mubr.bf16.vlgmr.msra.gmra.mrb[168].mxu1 %v5630_v13  ;;  %v1569_v24 = vmax.f32 %v1146_v60, 0.0 }
 0x18e   :  { %v1889_v63 = vpack.c.bf16 %v1702_v57, %v1685_v23  ;;  %2361 = vmatprep.mubr.bf16.mxu1 %v5021_v34  ;;  %v1823_v0 = vpack.c.bf16 %v1568_v59, %v1551_v53 }
 0x18f   :  { %v1890_v25 = vpack.c.bf16 %v1703_v62, %v1686_v61  ;;  %v1037_v1 = vpop.f32.mrb[92].mxu1  ;;  %v1824_v3 = vpack.c.bf16 %v1569_v24, %v1552_v54  ;;  %v1150_v5 = vpop.f32.mrb[92].mxu0 }
 0x190   :  { %v1039_v6 = vpop.f32.mrb[93].mxu1  ;;  %v1152_v9 = vpop.f32.mrb[93].mxu0  ;;  %v1585_v10 = vmax.f32 %v1150_v5, 0.0  ;;  %v1719_v13 = vmax.f32 %v1037_v1, 0.0 }
 0x191   :  { %2400 = vmatprep.subr.bf16.mxu0 %v1890_v25  ;;  %2465 = vmatprep.subr.bf16.mxu1 %v1824_v3  ;;  %v1586_v18 = vmax.f32 %v1152_v9, 0.0  ;;  %v1720_v27 = vmax.f32 %v1039_v6, 0.0 }
 0x192   :  { %2401 = vmatpush1.bf16.msra.mxu0 %v1889_v63  ;;  %2466 = vmatpush1.bf16.msra.mxu1 %v1823_v0 }
 0x193   :  { %v1043_v11 = vpop.f32.mrb[94].mxu1  ;;  %v1156_v4 = vpop.f32.mrb[94].mxu0 }
 0x194   :  { %v1736_v19 = vmax.f32 %v1043_v11, 0.0  ;;  %v1045_v56 = vpop.f32.mrb[95].mxu1  ;;  %v1602_v7 = vmax.f32 %v1156_v4, 0.0  ;;  %v1158_v12 = vpop.f32.mrb[95].mxu0 }
 0x195   :  { %v1737_v28 = vmax.f32 %v1045_v56, 0.0  ;;  %2362 = vmatmul.mubr.bf16.gmra.mrb[172].mxu1 %v5652_v48  ;;  %v1603_v8 = vmax.f32 %v1158_v12, 0.0  ;;  %v5759_v12 = vld [vmem:[%s6993_s2] sm:$0xff]  }
 0x196   :  { %v1906_v2 = vpack.c.bf16 %v1736_v19, %v1719_v13  ;;  %2371 = vmatprep.mubr.bf16.mxu1 %v5021_v34  ;;  %v1840_v51 = vpack.c.bf16 %v1602_v7, %v1585_v10 }
 0x197   :  { %v1907_v29 = vpack.c.bf16 %v1737_v28, %v1720_v27  ;;  %v1049_v30 = vpop.f32.mrb[96].mxu1  ;;  %v1841_v31 = vpack.c.bf16 %v1603_v8, %v1586_v18  ;;  %v1162_v32 = vpop.f32.mrb[96].mxu0 }
 0x198   :  { %v1051_v16 = vpop.f32.mrb[97].mxu1  ;;  %v1164_v33 = vpop.f32.mrb[97].mxu0  ;;  %v1619_v35 = vmax.f32 %v1162_v32, 0.0  ;;  %v1753_v48 = vmax.f32 %v1049_v30, 0.0 }
 0x199   :  { %2402 = vmatprep.subr.bf16.mxu0 %v1907_v29  ;;  %2467 = vmatprep.subr.bf16.mxu1 %v1841_v31  ;;  %v1620_v37 = vmax.f32 %v1164_v33, 0.0  ;;  %v1754_v41 = vmax.f32 %v1051_v16, 0.0 }
 0x19a   :  { %2403 = vmatpush1.bf16.msra.mxu0 %v1906_v2  ;;  %2468 = vmatpush1.bf16.msra.mxu1 %v1840_v51 }
 0x19b   :  { %v1055_v36 = vpop.f32.mrb[98].mxu1  ;;  %v1168_v17 = vpop.f32.mrb[98].mxu0 }
 0x19c   :  { %v1770_v14 = vmax.f32 %v1055_v36, 0.0  ;;  %v1057_v38 = vpop.f32.mrb[99].mxu1  ;;  %v1636_v39 = vmax.f32 %v1168_v17, 0.0  ;;  %v1170_v40 = vpop.f32.mrb[99].mxu0 }
 0x19d   :  { %v1771_v42 = vmax.f32 %v1057_v38, 0.0  ;;  %2372 = vmatmul.mubr.bf16.gmra.mrb[176].mxu1 %v5665_v26  ;;  %v1637_v43 = vmax.f32 %v1170_v40, 0.0 }
 0x19e   :  { %v1923_v44 = vpack.c.bf16 %v1770_v14, %v1753_v48  ;;  %2381 = vmatprep.mubr.bf16.mxu1 %v5021_v34  ;;  %v1857_v20 = vpack.c.bf16 %v1636_v39, %v1619_v35 }
 0x19f   :  { %v1924_v21 = vpack.c.bf16 %v1771_v42, %v1754_v41  ;;  %v1061_v45 = vpop.f32.mrb[100].mxu1  ;;  %v1858_v46 = vpack.c.bf16 %v1637_v43, %v1620_v37  ;;  %v1174_v47 = vpop.f32.mrb[100].mxu0  ;;  %v5766_v41 = vld [vmem:[%s6993_s2 + $0x8] sm:$0xff]  }
 0x1a0   :  { %v1063_v49 = vpop.f32.mrb[101].mxu1  ;;  %v1176_v50 = vpop.f32.mrb[101].mxu0  ;;  %v1653_v52 = vmax.f32 %v1174_v47, 0.0  ;;  %v1787_v26 = vmax.f32 %v1061_v45, 0.0 }
 0x1a1   :  { %2404 = vmatprep.subr.bf16.mxu0 %v1924_v21  ;;  %2469 = vmatprep.subr.bf16.mxu1 %v1858_v46  ;;  %v1654_v22 = vmax.f32 %v1176_v50, 0.0  ;;  %v1788_v59 = vmax.f32 %v1063_v49, 0.0 }
 0x1a2   :  { %2405 = vmatpush1.bf16.msra.mxu0 %v1923_v44  ;;  %2470 = vmatpush1.bf16.msra.mxu1 %v1857_v20 }
 0x1a3   :  { %v1067_v53 = vpop.f32.mrb[102].mxu1  ;;  %v1180_v54 = vpop.f32.mrb[102].mxu0 }
 0x1a4   :  { %v1804_v55 = vmax.f32 %v1067_v53, 0.0  ;;  %v1069_v23 = vpop.f32.mrb[103].mxu1  ;;  %v1670_v57 = vmax.f32 %v1180_v54, 0.0  ;;  %v1182_v58 = vpop.f32.mrb[103].mxu0 }
 0x1a5   :  { %v1805_v60 = vmax.f32 %v1069_v23, 0.0  ;;  %2382 = vmatmul.mubr.bf16.gmra.mrb[180].mxu1 %v5672_v15  ;;  %v1671_v61 = vmax.f32 %v1182_v58, 0.0 }
 0x1a6   :  { %v1940_v62 = vpack.c.bf16 %v1804_v55, %v1787_v26  ;;  %v1874_v24 = vpack.c.bf16 %v1670_v57, %v1653_v52  ;;  %2497 = vmatprep.mubr.bf16.mxu1 %v5021_v34 }
 0x1a7   :  { %v1941_v63 = vpack.c.bf16 %v1805_v60, %v1788_v59  ;;  %v1299_v0 = vpop.f32.mrb[104].mxu1  ;;  %v1875_v25 = vpack.c.bf16 %v1671_v61, %v1654_v22  ;;  %v1186_v1 = vpop.f32.mrb[104].mxu0  ;;  %v5773_v60 = vld [vmem:[%s6993_s2 + $0x10] sm:$0xff]  }
 0x1a8   :  { %v1301_v3 = vpop.f32.mrb[105].mxu1  ;;  %v1188_v5 = vpop.f32.mrb[105].mxu0  ;;  %v1687_v6 = vmax.f32 %v1186_v1, 0.0  ;;  %v1553_v15 = vmax.f32 %v1299_v0, 0.0 }
 0x1a9   :  { %2406 = vmatprep.subr.bf16.mxu0 %v1941_v63  ;;  %2471 = vmatprep.subr.bf16.mxu1 %v1875_v25  ;;  %v1688_v10 = vmax.f32 %v1188_v5, 0.0  ;;  %v1554_v56 = vmax.f32 %v1301_v3, 0.0 }
 0x1aa   :  { %2407 = vmatpush1.bf16.msra.mxu0 %v1940_v62  ;;  %2472 = vmatpush1.bf16.msra.mxu1 %v1874_v24 }
 0x1ab   :  { %v1305_v9 = vpop.f32.mrb[106].mxu1  ;;  %v1192_v11 = vpop.f32.mrb[106].mxu0 }
 0x1ac   :  { %v1570_v18 = vmax.f32 %v1305_v9, 0.0  ;;  %v1307_v4 = vpop.f32.mrb[107].mxu1  ;;  %v1704_v13 = vmax.f32 %v1192_v11, 0.0  ;;  %v1194_v19 = vpop.f32.mrb[107].mxu0 }
 0x1ad   :  { %v1571_v7 = vmax.f32 %v1307_v4, 0.0  ;;  %2425 = vmatmul.mubr.bf16.vlgmr.msra.gmra.mrb[168].mxu0 %v5759_v12  ;;  %v1705_v27 = vmax.f32 %v1194_v19, 0.0 }
 0x1ae   :  { %v1825_v28 = vpack.c.bf16 %v1570_v18, %v1553_v15  ;;  %2434 = vmatprep.mubr.bf16.mxu0 %v5021_v34  ;;  %v1891_v8 = vpack.c.bf16 %v1704_v13, %v1687_v6 }
 0x1af   :  { %v1826_v2 = vpack.c.bf16 %v1571_v7, %v1554_v56  ;;  %v1311_v51 = vpop.f32.mrb[108].mxu1  ;;  %v1892_v29 = vpack.c.bf16 %v1705_v27, %v1688_v10  ;;  %v1198_v30 = vpop.f32.mrb[108].mxu0 }
 0x1b0   :  { %v1313_v31 = vpop.f32.mrb[109].mxu1  ;;  %v1200_v32 = vpop.f32.mrb[109].mxu0  ;;  %v1721_v16 = vmax.f32 %v1198_v30, 0.0  ;;  %v1587_v37 = vmax.f32 %v1311_v51, 0.0 }
 0x1b1   :  { %2538 = vmatprep.subr.bf16.mxu0 %v1826_v2  ;;  %2473 = vmatprep.subr.bf16.mxu1 %v1892_v29  ;;  %v1722_v35 = vmax.f32 %v1200_v32, 0.0  ;;  %v1588_v39 = vmax.f32 %v1313_v31, 0.0 }
 0x1b2   :  { %2539 = vmatpush1.bf16.msra.mxu0 %v1825_v28  ;;  %2474 = vmatpush1.bf16.msra.mxu1 %v1891_v8  ;;  %v5780_v28 = vld [vmem:[%s6993_s2 + $0x18] sm:$0xff]  }
 0x1b3   :  { %v1317_v33 = vpop.f32.mrb[110].mxu1  ;;  %v1204_v36 = vpop.f32.mrb[110].mxu0 }
 0x1b4   :  { %v1604_v17 = vmax.f32 %v1317_v33, 0.0  ;;  %v1319_v48 = vpop.f32.mrb[111].mxu1  ;;  %v1738_v14 = vmax.f32 %v1204_v36, 0.0  ;;  %v1206_v38 = vpop.f32.mrb[111].mxu0 }
 0x1b5   :  { %v1605_v40 = vmax.f32 %v1319_v48, 0.0  ;;  %2435 = vmatmul.mubr.bf16.gmra.mrb[172].mxu0 %v5766_v41  ;;  %v1739_v42 = vmax.f32 %v1206_v38, 0.0 }
 0x1b6   :  { %v1842_v43 = vpack.c.bf16 %v1604_v17, %v1587_v37  ;;  %v1908_v44 = vpack.c.bf16 %v1738_v14, %v1721_v16  ;;  %2444 = vmatprep.mubr.bf16.mxu0 %v5021_v34 }
 0x1b7   :  { %v1843_v20 = vpack.c.bf16 %v1605_v40, %v1588_v39  ;;  %v1323_v21 = vpop.f32.mrb[112].mxu1  ;;  %v1909_v45 = vpack.c.bf16 %v1739_v42, %v1722_v35  ;;  %v1210_v46 = vpop.f32.mrb[112].mxu0 }
 0x1b8   :  { %v1325_v47 = vpop.f32.mrb[113].mxu1  ;;  %v1212_v49 = vpop.f32.mrb[113].mxu0  ;;  %v1621_v50 = vmax.f32 %v1323_v21, 0.0  ;;  %v1755_v52 = vmax.f32 %v1210_v46, 0.0 }
 0x1b9   :  { %2540 = vmatprep.subr.bf16.mxu0 %v1843_v20  ;;  %2475 = vmatprep.subr.bf16.mxu1 %v1909_v45  ;;  %v1756_v22 = vmax.f32 %v1212_v49, 0.0  ;;  %v1622_v58 = vmax.f32 %v1325_v47, 0.0 }
 0x1ba   :  { %2541 = vmatpush1.bf16.msra.mxu0 %v1842_v43  ;;  %2476 = vmatpush1.bf16.msra.mxu1 %v1908_v44 }
 0x1bb   :  { %v1329_v53 = vpop.f32.mrb[114].mxu1  ;;  %v1216_v54 = vpop.f32.mrb[114].mxu0 }
 0x1bc   :  { %v1638_v26 = vmax.f32 %v1329_v53, 0.0  ;;  %v1331_v55 = vpop.f32.mrb[115].mxu1  ;;  %v1772_v23 = vmax.f32 %v1216_v54, 0.0  ;;  %v1218_v57 = vpop.f32.mrb[115].mxu0 }
 0x1bd   :  { %v1639_v59 = vmax.f32 %v1331_v55, 0.0  ;;  %2445 = vmatmul.mubr.bf16.gmra.mrb[176].mxu0 %v5773_v60  ;;  %v1773_v61 = vmax.f32 %v1218_v57, 0.0 }
 0x1be   :  { %v1859_v62 = vpack.c.bf16 %v1638_v26, %v1621_v50  ;;  %v1925_v24 = vpack.c.bf16 %v1772_v23, %v1755_v52  ;;  %2454 = vmatprep.mubr.bf16.mxu0 %v5021_v34 }
 0x1bf   :  { %v1860_v63 = vpack.c.bf16 %v1639_v59, %v1622_v58  ;;  %v1335_v0 = vpop.f32.mrb[116].mxu1  ;;  %v1926_v25 = vpack.c.bf16 %v1773_v61, %v1756_v22  ;;  %v1222_v1 = vpop.f32.mrb[116].mxu0 }
 0x1c0   :  { %v1337_v3 = vpop.f32.mrb[117].mxu1  ;;  %v1224_v5 = vpop.f32.mrb[117].mxu0  ;;  %v1655_v6 = vmax.f32 %v1335_v0, 0.0  ;;  %v1789_v9 = vmax.f32 %v1222_v1, 0.0 }
 0x1c1   :  { %2542 = vmatprep.subr.bf16.mxu0 %v1860_v63  ;;  %2477 = vmatprep.subr.bf16.mxu1 %v1926_v25  ;;  %v1790_v10 = vmax.f32 %v1224_v5, 0.0  ;;  %v1656_v56 = vmax.f32 %v1337_v3, 0.0 }
 0x1c2   :  { %2543 = vmatpush1.bf16.msra.mxu0 %v1859_v62  ;;  %2478 = vmatpush1.bf16.msra.mxu1 %v1925_v24 }
 0x1c3   :  { %v1228_v11 = vpop.f32.mrb[118].mxu0  ;;  %v1341_v15 = vpop.f32.mrb[118].mxu1 }
 0x1c4   :  { %v1806_v18 = vmax.f32 %v1228_v11, 0.0  ;;  %v1672_v4 = vmax.f32 %v1341_v15, 0.0  ;;  %v1230_v13 = vpop.f32.mrb[119].mxu0  ;;  %v1343_v19 = vpop.f32.mrb[119].mxu1 }
 0x1c5   :  { %v1807_v7 = vmax.f32 %v1230_v13, 0.0  ;;  %v1673_v27 = vmax.f32 %v1343_v19, 0.0  ;;  %2455 = vmatmul.mubr.bf16.gmra.mrb[180].mxu0 %v5780_v28 }
 0x1c6   :  { %v1942_v8 = vpack.c.bf16 %v1806_v18, %v1789_v9  ;;  %v1876_v2 = vpack.c.bf16 %v1672_v4, %v1655_v6  ;;  %2570 = vmatprep.mubr.bf16.mxu0 %v5021_v34 }
 0x1c7   :  { %v1943_v51 = vpack.c.bf16 %v1807_v7, %v1790_v10  ;;  %v1877_v29 = vpack.c.bf16 %v1673_v27, %v1656_v56  ;;  %v1347_v30 = vpop.f32.mrb[120].mxu1  ;;  %v4815_v31 = vpop.f32.mrb[120].mxu0  ;;  %v2812_v27 = vlaneseq }
 0x1c8   :  { %v1572_v32 = vmax.f32 %v4815_v31, 0.0  ;;  %v1349_v16 = vpop.f32.mrb[121].mxu1  ;;  %v1460_v33 = vpop.f32.mrb[121].mxu0  ;;  %v1689_v36 = vmax.f32 %v1347_v30, 0.0 }
 0x1c9   :  { %v1555_v35 = vmax.f32 %v1460_v33, 0.0  ;;  %2479 = vmatprep.subr.bf16.mxu1 %v1943_v51  ;;  %2544 = vmatprep.subr.bf16.mxu0 %v1877_v29  ;;  %v1690_v37 = vmax.f32 %v1349_v16, 0.0 }
 0x1ca   :  { %2480 = vmatpush1.bf16.msra.mxu1 %v1942_v8  ;;  %2545 = vmatpush1.bf16.msra.mxu0 %v1876_v2 }
 0x1cb   :  { %v1827_v17 = vpack.c.bf16 %v1572_v32, %v1555_v35  ;;  %v1353_v48 = vpop.f32.mrb[122].mxu1  ;;  %v4818_v14 = vpop.f32.mrb[122].mxu0  ;;  %v2813_v35 = vshrl.u32 %v2812_v27, 7 }
 0x1cc   :  { %v1706_v38 = vmax.f32 %v1353_v48, 0.0  ;;  %v1606_v39 = vmax.f32 %v4818_v14, 0.0  ;;  %v1355_v40 = vpop.f32.mrb[123].mxu1  ;;  %v1470_v42 = vpop.f32.mrb[123].mxu0 }
 0x1cd   :  { %v1707_v43 = vmax.f32 %v1355_v40, 0.0  ;;  %v1589_v44 = vmax.f32 %v1470_v42, 0.0  ;;  %2498 = vmatmul.mubr.bf16.vlgmr.msra.gmra.mrb[184].mxu1 %v5759_v12  ;;  %4837 = vmatprep.subr.bf16.mxu1 %v1827_v17  ;;  %v5790_v48 = vpop.permute.xlu0 %1965 }
 0x1ce   :  { %v1893_v20 = vpack.c.bf16 %v1706_v38, %v1689_v36  ;;  %4838 = vmatpush3.bf16.msra.mxu1 %v1827_v17  ;;  %2507 = vmatprep.mubr.bf16.mxu1 %v5021_v34 }
 0x1cf   :  { %v1894_v21 = vpack.c.bf16 %v1707_v43, %v1690_v37  ;;  %v1844_v45 = vpack.c.bf16 %v1606_v39, %v1589_v44  ;;  %v1359_v46 = vpop.f32.mrb[124].mxu1  ;;  %v4821_v47 = vpop.f32.mrb[124].mxu0  ;;  %v5792_v44 = vsub.s32 2, %v2813_v35 }
 0x1d0   :  { %v1640_v49 = vmax.f32 %v4821_v47, 0.0  ;;  %v1361_v50 = vpop.f32.mrb[125].mxu1  ;;  %v1480_v52 = vpop.f32.mrb[125].mxu0  ;;  %v1723_v22 = vmax.f32 %v1359_v46, 0.0 }
 0x1d1   :  { %v1623_v53 = vmax.f32 %v1480_v52, 0.0  ;;  %2546 = vmatprep.subr.bf16.mxu0 %v1894_v21  ;;  %4839 = vmatprep.subr.bf16.mxu1 %v1844_v45  ;;  %v1724_v61 = vmax.f32 %v1361_v50, 0.0 }
 0x1d2   :  { %2547 = vmatpush1.bf16.msra.mxu0 %v1893_v20  ;;  %4840 = vmatpush3.bf16.msra.mxu1 %v1844_v45 }
 0x1d3   :  { %v1861_v54 = vpack.c.bf16 %v1640_v49, %v1623_v53  ;;  %v1365_v26 = vpop.f32.mrb[126].mxu1  ;;  %v4824_v55 = vpop.f32.mrb[126].mxu0 }
 0x1d4   :  { %v1740_v23 = vmax.f32 %v1365_v26, 0.0  ;;  %v1674_v57 = vmax.f32 %v4824_v55, 0.0  ;;  %v1367_v58 = vpop.f32.mrb[127].mxu1  ;;  %v1490_v59 = vpop.f32.mrb[127].mxu0 }
 0x1d5   :  { %v1741_v62 = vmax.f32 %v1367_v58, 0.0  ;;  %v1657_v24 = vmax.f32 %v1490_v59, 0.0  ;;  %2508 = vmatmul.mubr.bf16.gmra.mrb[188].mxu1 %v5766_v41  ;;  %4841 = vmatprep.subr.bf16.mxu1 %v1861_v54  ;;  %v5811_v59 = vpop.permute.xlu1 %1975 }
 0x1d6   :  { %v1910_v63 = vpack.c.bf16 %v1740_v23, %v1723_v22  ;;  %4842 = vmatpush3.bf16.msra.mxu1 %v1861_v54  ;;  %2517 = vmatprep.mubr.bf16.mxu1 %v5021_v34  ;;  %v5796_v22 = vpop.permute.xlu0 %1970  ;;  %v5003_v54 = vld [vmem:[%s6991_s0] sm:$0xff] }
 0x1d7   :  { %v1911_v0 = vpack.c.bf16 %v1741_v62, %v1724_v61  ;;  %v1878_v25 = vpack.c.bf16 %v1674_v57, %v1657_v24  ;;  %v1371_v1 = vpop.f32.mrb[128].mxu1  ;;  %v4827_v3 = vpop.f32.mrb[128].mxu0  ;;  %v5802_v26 = vrot.slane %v5003_v54, %v5792_v44  ;;  %v5004_v57 = vld [vmem:[%s6991_s0 + $0x8] sm:$0xff] }
 0x1d8   :  { %v1708_v5 = vmax.f32 %v4827_v3, 0.0  ;;  %v1373_v6 = vpop.f32.mrb[129].mxu1  ;;  %v1500_v9 = vpop.f32.mrb[129].mxu0  ;;  %v1757_v4 = vmax.f32 %v1371_v1, 0.0  ;;  %v5809_v58 = vrot.slane %v5004_v57, %v5792_v44 }
 0x1d9   :  { %v1691_v10 = vmax.f32 %v1500_v9, 0.0  ;;  %2548 = vmatprep.subr.bf16.mxu0 %v1911_v0  ;;  %4843 = vmatprep.subr.bf16.mxu1 %v1878_v25  ;;  %v1758_v8 = vmax.f32 %v1373_v6, 0.0 }
 0x1da   :  { %2549 = vmatpush1.bf16.msra.mxu0 %v1910_v63  ;;  %4844 = vmatpush3.bf16.msra.mxu1 %v1878_v25  ;;  %v5854_v35 = vpop.permute.xlu0 %1985 }
 0x1db   :  { %v1895_v11 = vpack.c.bf16 %v1708_v5, %v1691_v10  ;;  %v1377_v15 = vpop.f32.mrb[130].mxu1  ;;  %v4830_v18 = vpop.f32.mrb[130].mxu0 }
 0x1dc   :  { %v1774_v13 = vmax.f32 %v1377_v15, 0.0  ;;  %v1742_v19 = vmax.f32 %v4830_v18, 0.0  ;;  %v1379_v56 = vpop.f32.mrb[131].mxu1  ;;  %v1510_v7 = vpop.f32.mrb[131].mxu0 }
 0x1dd   :  { %v1775_v2 = vmax.f32 %v1379_v56, 0.0  ;;  %v1725_v51 = vmax.f32 %v1510_v7, 0.0  ;;  %2518 = vmatmul.mubr.bf16.gmra.mrb[192].mxu1 %v5773_v60  ;;  %4845 = vmatprep.subr.bf16.mxu1 %v1895_v11  ;;  %v5832_v15 = vpop.permute.xlu1 %1980 }
 0x1de   :  { %v1927_v29 = vpack.c.bf16 %v1774_v13, %v1757_v4  ;;  %4846 = vmatpush3.bf16.msra.mxu1 %v1895_v11  ;;  %2527 = vmatprep.mubr.bf16.mxu1 %v5021_v34  ;;  %v5880_v54 = vpop.permute.xlu0 %1995 }
 0x1df   :  { %v1928_v30 = vpack.c.bf16 %v1775_v2, %v1758_v8  ;;  %v1912_v31 = vpack.c.bf16 %v1742_v19, %v1725_v51  ;;  %v1383_v32 = vpop.f32.mrb[132].mxu1 }
 0x1e0   :  { %v4833_v16 = vpop.f32.mrb[132].mxu0  ;;  %v1385_v33 = vpop.f32.mrb[133].mxu1  ;;  %v1791_v38 = vmax.f32 %v1383_v32, 0.0 }
 0x1e1   :  { %v1776_v36 = vmax.f32 %v4833_v16, 0.0  ;;  %v1520_v37 = vpop.f32.mrb[133].mxu0  ;;  %2550 = vmatprep.subr.bf16.mxu0 %v1928_v30  ;;  %4847 = vmatprep.subr.bf16.mxu1 %v1912_v31  ;;  %v1792_v20 = vmax.f32 %v1385_v33, 0.0  ;;  %v4921_v30 = vld [vmem:[%s6996_s4 + $0xc] ss:$36 sps:$4 sm:$0xff]  }
 0x1e2   :  { %v1759_v17 = vmax.f32 %v1520_v37, 0.0  ;;  %2551 = vmatpush1.bf16.msra.mxu0 %v1927_v29  ;;  %4848 = vmatpush3.bf16.msra.mxu1 %v1912_v31 }
 0x1e3   :  { %v1389_v14 = vpop.f32.mrb[134].mxu1 }
 0x1e4   :  { %v1929_v39 = vpack.c.bf16 %v1776_v36, %v1759_v17  ;;  %v1808_v40 = vmax.f32 %v1389_v14, 0.0  ;;  %v4836_v42 = vpop.f32.mrb[134].mxu0  ;;  %v1391_v43 = vpop.f32.mrb[135].mxu1 }
 0x1e5   :  { %v1810_v21 = vmax.f32 %v4836_v42, 0.0  ;;  %v1809_v45 = vmax.f32 %v1391_v43, 0.0  ;;  %v1530_v46 = vpop.f32.mrb[135].mxu0  ;;  %2528 = vmatmul.mubr.bf16.gmra.mrb[196].mxu1 %v5780_v28  ;;  %v5862_v17 = vpop.permute.xlu1 %1990 }
 0x1e6   :  { %v1944_v47 = vpack.c.bf16 %v1808_v40, %v1791_v38  ;;  %v1793_v49 = vmax.f32 %v1530_v46, 0.0  ;;  %4849 = vmatprep.subr.bf16.mxu1 %v1929_v39  ;;  %4853 = vmatprep.mubr.bf16.mxu1 %v5759_v12 }
 0x1e7   :  { %v1945_v50 = vpack.c.bf16 %v1809_v45, %v1792_v20  ;;  %4850 = vmatpush3.bf16.msra.mxu1 %v1929_v39 }
 0x1e8   :  { %v1946_v52 = vpack.c.bf16 %v1810_v21, %v1793_v49  ;;  %v2061_v53 = vpop.f32.mrb[136].mxu1 }
 0x1e9   :  { %2552 = vmatprep.subr.bf16.mxu0 %v1945_v50  ;;  %v2062_v55 = vadd.f32 %v2061_v53, %v5790_v48  ;;  %v2063_v23 = vpop.f32.mrb[137].mxu1 }
 0x1ea   :  { %4851 = vmatprep.subr.bf16.mxu1 %v1946_v52  ;;  %2553 = vmatpush1.bf16.msra.mxu0 %v1944_v47  ;;  %v2064_v61 = vadd.f32 %v2063_v23, %v5790_v48  ;;  %v2065_v62 = vpop.f32.mrb[138].mxu1  ;;  %v5885_v23 = vpop.permute.xlu1 %2000 }
 0x1eb   :  { %4852 = vmatpush3.bf16.msra.mxu1 %v1946_v52  ;;  %v2676_v24 = vmax.f32 %v2062_v55, 0.0  ;;  %v2066_v63 = vadd.f32 %v2065_v62, %v5796_v22  ;;  %v2067_v0 = vpop.f32.mrb[139].mxu1 }
 0x1ec   :  { %v2677_v25 = vmax.f32 %v2064_v61, 0.0  ;;  %v2068_v1 = vadd.f32 %v2067_v0, %v5796_v22 }
 0x1ed   :  { %2571 = vmatmul.mubr.bf16.vlgmr.msra.gmra.mrb[184].mxu0 %v5759_v12  ;;  %v5818_v3 = vmul.f32 %v5802_v26, %v2676_v24  ;;  %v2693_v5 = vmax.f32 %v2066_v63, 0.0 }
 0x1ee   :  { %4854 = vmatmul.mubr.bf16.vlgmr.msra.gmra.mrb[200].mxu1 %v5766_v41  ;;  %2580 = vmatprep.mubr.bf16.mxu0 %v5021_v34  ;;  %v5823_v6 = vmul.f32 %v5809_v58, %v2677_v25  ;;  %v2694_v9 = vmax.f32 %v2068_v1, 0.0 }
 0x1ef   :  { %4857 = vmatprep.mubr.bf16.mxu1 %v5773_v60  ;;  %v5827_v10 = vmul.f32 %v5802_v26, %v2693_v5  ;;  %v5006_v5 = vld [vmem:[%s6991_s0 + $0x18] sm:$0xff] }
 0x1f0   :  { %v5830_v11 = vmul.f32 %v5809_v58, %v2694_v9  ;;  %v2071_v12 = vpop.f32.mrb[140].mxu1  ;;  %v5904_v9 = vrot.slane %v5006_v5, %v5792_v44 }
 0x1f1   :  { %v3016_v18 = vpack.c.bf16 %v5827_v10, %v5818_v3  ;;  %v2072_v4 = vadd.f32 %v2071_v12, %v5811_v59  ;;  %v2073_v13 = vpop.f32.mrb[141].mxu1 }
 0x1f2   :  { %v3017_v19 = vpack.c.bf16 %v5830_v11, %v5823_v6  ;;  %v2074_v56 = vadd.f32 %v2073_v13, %v5811_v59  ;;  %v2075_v7 = vpop.f32.mrb[142].mxu1 }
 0x1f3   :  { %v2710_v27 = vmax.f32 %v2072_v4, 0.0  ;;  %v2076_v8 = vadd.f32 %v2075_v7, %v5832_v15  ;;  %v2077_v2 = vpop.f32.mrb[143].mxu1 }
 0x1f4   :  { %v2711_v51 = vmax.f32 %v2074_v56, 0.0  ;;  %v2078_v29 = vadd.f32 %v2077_v2, %v5832_v15 }
 0x1f5   :  { %2581 = vmatmul.mubr.bf16.gmra.mrb[188].mxu0 %v5766_v41  ;;  %v5847_v31 = vmul.f32 %v5802_v26, %v2710_v27  ;;  %v2727_v32 = vmax.f32 %v2076_v8, 0.0  ;;  %v4897_v27 = vld [vmem:[%s6996_s4 + $0x4] ss:$36 sps:$4 sm:$0xff]  }
 0x1f6   :  { %4858 = vmatmul.mubr.bf16.gmra.mrb[204].mxu1 %v5780_v28  ;;  %2590 = vmatprep.mubr.bf16.mxu0 %v5021_v34  ;;  %v5852_v16 = vmul.f32 %v5809_v58, %v2711_v51  ;;  %v2728_v33 = vmax.f32 %v2078_v29, 0.0 }
 0x1f7   :  { %v5857_v36 = vmul.f32 %v5802_v26, %v2727_v32  ;;  %3910 = vmatprep.mubr.bf16.mxu1 %v4921_v30 }
 0x1f8   :  { %v5860_v41 = vmul.f32 %v5809_v58, %v2728_v33  ;;  %v2081_v37 = vpop.f32.mrb[144].mxu1 }
 0x1f9   :  { %v3033_v14 = vpack.c.bf16 %v5857_v36, %v5847_v31  ;;  %v2083_v38 = vpop.f32.mrb[145].mxu1  ;;  %v2082_v39 = vadd.f32 %v2081_v37, %v5854_v35 }
 0x1fa   :  { %v3034_v40 = vpack.c.bf16 %v5860_v41, %v5852_v16  ;;  %v2084_v42 = vadd.f32 %v2083_v38, %v5854_v35  ;;  %v2085_v43 = vpop.f32.mrb[146].mxu1 }
 0x1fb   :  { %v2086_v20 = vadd.f32 %v2085_v43, %v5862_v17  ;;  %v2744_v21 = vmax.f32 %v2082_v39, 0.0  ;;  %v2087_v45 = vpop.f32.mrb[147].mxu1 }
 0x1fc   :  { %v2745_v46 = vmax.f32 %v2084_v42, 0.0  ;;  %v2088_v47 = vadd.f32 %v2087_v45, %v5862_v17 }
 0x1fd   :  { %2591 = vmatmul.mubr.bf16.gmra.mrb[192].mxu0 %v5773_v60  ;;  %v2761_v49 = vmax.f32 %v2086_v20, 0.0  ;;  %v5874_v50 = vmul.f32 %v5802_v26, %v2744_v21 }
 0x1fe   :  { %2600 = vmatprep.mubr.bf16.mxu0 %v5021_v34  ;;  %v5878_v52 = vmul.f32 %v5809_v58, %v2745_v46  ;;  %v2762_v53 = vmax.f32 %v2088_v47, 0.0  ;;  %v5005_v34 = vld [vmem:[%s6991_s0 + $0x10] sm:$0xff] }
 0x1ff   :  { %v5883_v55 = vmul.f32 %v5802_v26, %v2761_v49  ;;  %v5894_v62 = vrot.slane %v5005_v34, %v5792_v44 }
 0x200   :  { %v2134_v57 = vpop.f32.mrb[136].mxu0  ;;  %v5888_v60 = vmul.f32 %v5809_v58, %v2762_v53  ;;  %v2091_v61 = vpop.f32.mrb[148].mxu1 }
 0x201   :  { %v2135_v24 = vadd.f32 %v2134_v57, %v5790_v48  ;;  %v2136_v63 = vpop.f32.mrb[137].mxu0  ;;  %v3050_v0 = vpack.c.bf16 %v5883_v55, %v5874_v50  ;;  %v2093_v25 = vpop.f32.mrb[149].mxu1  ;;  %v2092_v1 = vadd.f32 %v2091_v61, %v5880_v54 }
 0x202   :  { %v2137_v12 = vadd.f32 %v2136_v63, %v5790_v48  ;;  %v2138_v4 = vpop.f32.mrb[138].mxu0  ;;  %v3051_v13 = vpack.c.bf16 %v5888_v60, %v5878_v52  ;;  %v2094_v56 = vadd.f32 %v2093_v25, %v5880_v54  ;;  %v2095_v7 = vpop.f32.mrb[150].mxu1  ;;  %v4895_v52 = vld [vmem:[%s6996_s4] ss:$36 sps:$4 sm:$0xff]  }
 0x203   :  { %v2678_v8 = vmax.f32 %v2135_v24, 0.0  ;;  %v2139_v2 = vadd.f32 %v2138_v4, %v5796_v22  ;;  %v2140_v51 = vpop.f32.mrb[139].mxu0  ;;  %v2096_v29 = vadd.f32 %v2095_v7, %v5885_v23  ;;  %v2778_v30 = vmax.f32 %v2092_v1, 0.0  ;;  %v2097_v32 = vpop.f32.mrb[151].mxu1 }
 0x204   :  { %v2679_v33 = vmax.f32 %v2137_v12, 0.0  ;;  %v2141_v37 = vadd.f32 %v2140_v51, %v5796_v22  ;;  %v2779_v38 = vmax.f32 %v2094_v56, 0.0  ;;  %v2098_v39 = vadd.f32 %v2097_v32, %v5885_v23 }
 0x205   :  { %2601 = vmatmul.mubr.bf16.gmra.mrb[196].mxu0 %v5780_v28  ;;  %v2882_v42 = vmul.f32 %v5894_v62, %v2678_v8  ;;  %v2695_v43 = vmax.f32 %v2139_v2, 0.0  ;;  %v2795_v20 = vmax.f32 %v2096_v29, 0.0  ;;  %v5920_v21 = vmul.f32 %v5802_v26, %v2778_v30 }
 0x206   :  { %v5923_v45 = vmul.f32 %v5904_v9, %v2679_v33  ;;  %v2696_v46 = vmax.f32 %v2141_v37, 0.0  ;;  %v5926_v47 = vmul.f32 %v5809_v58, %v2779_v38  ;;  %v2796_v49 = vmax.f32 %v2098_v39, 0.0  ;;  %3813 = vmatprep.mubr.bf16.mxu0 %v4897_v27 }
 0x207   :  { %v2899_v53 = vmul.f32 %v5894_v62, %v2695_v43  ;;  %v5930_v28 = vmul.f32 %v5802_v26, %v2795_v20 }
 0x208   :  { %v5933_v57 = vmul.f32 %v5904_v9, %v2696_v46  ;;  %v2144_v61 = vpop.f32.mrb[140].mxu0  ;;  %v5936_v34 = vmul.f32 %v5809_v58, %v2796_v49 }
 0x209   :  { %v2145_v24 = vadd.f32 %v2144_v61, %v5811_v59  ;;  %v2146_v63 = vpop.f32.mrb[141].mxu0  ;;  %v3018_v25 = vpack.c.bf16 %v2899_v53, %v2882_v42  ;;  %v3067_v1 = vpack.c.bf16 %v5930_v28, %v5920_v21 }
 0x20a   :  { %v2147_v5 = vadd.f32 %v2146_v63, %v5811_v59  ;;  %v2148_v12 = vpop.f32.mrb[142].mxu0  ;;  %v3019_v26 = vpack.c.bf16 %v5933_v57, %v5923_v45  ;;  %v3068_v4 = vpack.c.bf16 %v5936_v34, %v5926_v47 }
 0x20b   :  { %v2712_v56 = vmax.f32 %v2145_v24, 0.0  ;;  %v2149_v58 = vadd.f32 %v2148_v12, %v5832_v15  ;;  %v2150_v7 = vpop.f32.mrb[143].mxu0  ;;  %4543 = vmatprep.subr.bf16.mxu0 %v3018_v25 }
 0x20c   :  { %v2713_v27 = vmax.f32 %v2147_v5, 0.0  ;;  %v2151_v8 = vadd.f32 %v2150_v7, %v5832_v15  ;;  %4544 = vmatpush3.bf16.msra.mxu0 %v3016_v18 }
 0x20d   :  { %v2916_v2 = vmul.f32 %v5894_v62, %v2712_v56  ;;  %v2729_v51 = vmax.f32 %v2149_v58, 0.0 }
 0x20e   :  { %v5953_v29 = vmul.f32 %v5904_v9, %v2713_v27  ;;  %v2730_v30 = vmax.f32 %v2151_v8, 0.0 }
 0x20f   :  { %v2933_v32 = vmul.f32 %v5894_v62, %v2729_v51 }
 0x210   :  { %v5957_v33 = vmul.f32 %v5904_v9, %v2730_v30  ;;  %v2154_v37 = vpop.f32.mrb[144].mxu0 }
 0x211   :  { %v2156_v38 = vpop.f32.mrb[145].mxu0  ;;  %v3035_v39 = vpack.c.bf16 %v2933_v32, %v2916_v2  ;;  %v2155_v42 = vadd.f32 %v2154_v37, %v5854_v35 }
 0x212   :  { %v2158_v43 = vpop.f32.mrb[146].mxu0  ;;  %v3036_v3 = vpack.c.bf16 %v5957_v33, %v5953_v29  ;;  %v2157_v10 = vadd.f32 %v2156_v38, %v5854_v35 }
 0x213   :  { %v2159_v18 = vadd.f32 %v2158_v43, %v5862_v17  ;;  %v2160_v20 = vpop.f32.mrb[147].mxu0  ;;  %4545 = vmatprep.subr.bf16.mxu0 %v3035_v39  ;;  %v2746_v46 = vmax.f32 %v2155_v42, 0.0 }
 0x214   :  { %v2161_v49 = vadd.f32 %v2160_v20, %v5862_v17  ;;  %4546 = vmatpush3.bf16.msra.mxu0 %v3033_v14  ;;  %v2747_v53 = vmax.f32 %v2157_v10, 0.0  ;;  %v5007_v10 = vld [vmem:[%s6991_s0 + $0x20] sm:$0xff]  ;;  %v5008_v20 = vld [vmem:[%s6991_s0 + $0x28] sm:$0xff] }
 0x215   :  { %v2763_v61 = vmax.f32 %v2159_v18, 0.0  ;;  %v2950_v24 = vmul.f32 %v5894_v62, %v2746_v46  ;;  %v5990_v50 = vrot.slane %v5007_v10, %v5792_v44 }
 0x216   :  { %v2764_v63 = vmax.f32 %v2161_v49, 0.0  ;;  %v5970_v25 = vmul.f32 %v5904_v9, %v2747_v53 }
 0x217   :  { %v2967_v5 = vmul.f32 %v5894_v62, %v2763_v61 }
 0x218   :  { %v2968_v12 = vmul.f32 %v5904_v9, %v2764_v63  ;;  %v2164_v56 = vpop.f32.mrb[148].mxu0 }
 0x219   :  { %v2166_v58 = vpop.f32.mrb[149].mxu0  ;;  %v3052_v7 = vpack.c.bf16 %v2967_v5, %v2950_v24  ;;  %v2165_v27 = vadd.f32 %v2164_v56, %v5880_v54 }
 0x21a   :  { %v2168_v8 = vpop.f32.mrb[150].mxu0  ;;  %v3053_v31 = vpack.c.bf16 %v2968_v12, %v5970_v25  ;;  %v2167_v36 = vadd.f32 %v2166_v58, %v5880_v54 }
 0x21b   :  { %v2169_v14 = vadd.f32 %v2168_v8, %v5885_v23  ;;  %4547 = vmatprep.subr.bf16.mxu0 %v3052_v7  ;;  %v2780_v2 = vmax.f32 %v2165_v27, 0.0  ;;  %v2170_v51 = vpop.f32.mrb[151].mxu0 }
 0x21c   :  { %4548 = vmatpush3.bf16.msra.mxu0 %v3050_v0  ;;  %v2171_v29 = vadd.f32 %v2170_v51, %v5885_v23  ;;  %v2781_v30 = vmax.f32 %v2167_v36, 0.0 }
 0x21d   :  { %v2797_v32 = vmax.f32 %v2169_v14, 0.0  ;;  %v2984_v33 = vmul.f32 %v5894_v62, %v2780_v2 }
 0x21e   :  { %v2798_v37 = vmax.f32 %v2171_v29, 0.0  ;;  %v2985_v38 = vmul.f32 %v5904_v9, %v2781_v30 }
 0x21f   :  { %v3001_v39 = vmul.f32 %v5894_v62, %v2797_v32  ;;  %v5997_v62 = vrot.slane %v5008_v20, %v5792_v44 }
 0x220   :  { %v3002_v42 = vmul.f32 %v5904_v9, %v2798_v37  ;;  %v2207_v43 = vpop.f32.mrb[152].mxu1 }
 0x221   :  { %v3069_v55 = vpack.c.bf16 %v3001_v39, %v2984_v33  ;;  %v2208_v0 = vadd.f32 %v2207_v43, %v5790_v48  ;;  %v2209_v18 = vpop.f32.mrb[153].mxu1 }
 0x222   :  { %v3070_v9 = vpack.c.bf16 %v3002_v42, %v2985_v38  ;;  %v2210_v46 = vadd.f32 %v2209_v18, %v5790_v48  ;;  %v2211_v49 = vpop.f32.mrb[154].mxu1  ;;  %v4898_v42 = vld [vmem:[%s6996_s4 + $0x4c] ss:$36 sps:$4 sm:$0xff]  }
 0x223   :  { %4549 = vmatprep.subr.bf16.mxu0 %v3069_v55  ;;  %v2680_v53 = vmax.f32 %v2208_v0, 0.0  ;;  %v2212_v61 = vadd.f32 %v2211_v49, %v5796_v22  ;;  %v2213_v24 = vpop.f32.mrb[155].mxu1 }
 0x224   :  { %4550 = vmatpush3.bf16.msra.mxu0 %v3067_v1  ;;  %v2681_v63 = vmax.f32 %v2210_v46, 0.0  ;;  %v2214_v25 = vadd.f32 %v2213_v24, %v5796_v22 }
 0x225   :  { %4551 = vmatprep.subr.bf16.mxu0 %v3019_v26  ;;  %v6009_v5 = vmul.f32 %v5990_v50, %v2680_v53  ;;  %v2697_v12 = vmax.f32 %v2212_v61, 0.0 }
 0x226   :  { %v6012_v56 = vmul.f32 %v5997_v62, %v2681_v63  ;;  %v2698_v58 = vmax.f32 %v2214_v25, 0.0  ;;  %v4900_v63 = vld [vmem:[%s6996_s4 + $0x48] ss:$36 sps:$4 sm:$0xff]  }
 0x227   :  { %v6015_v7 = vmul.f32 %v5990_v50, %v2697_v12 }
 0x228   :  { %4552 = vmatpush3.bf16.msra.mxu0 %v3017_v19  ;;  %v6021_v21 = vmul.f32 %v5997_v62, %v2698_v58  ;;  %v2217_v45 = vpop.f32.mrb[156].mxu1 }
 0x229   :  { %4553 = vmatprep.subr.bf16.mxu0 %v3036_v3  ;;  %v3020_v28 = vpack.c.bf16 %v6015_v7, %v6009_v5  ;;  %v2218_v57 = vadd.f32 %v2217_v45, %v5811_v59  ;;  %v2219_v1 = vpop.f32.mrb[157].mxu1  ;;  %v4901_v45 = vld [vmem:[%s6996_s4 + $0x94] ss:$36 sps:$4 sm:$0xff]  }
 0x22a   :  { %v3021_v26 = vpack.c.bf16 %v6021_v21, %v6012_v56  ;;  %v2220_v27 = vadd.f32 %v2219_v1, %v5811_v59  ;;  %v2221_v8 = vpop.f32.mrb[158].mxu1 }
 0x22b   :  { %v2714_v36 = vmax.f32 %v2218_v57, 0.0  ;;  %v2222_v6 = vadd.f32 %v2221_v8, %v5832_v15  ;;  %v2223_v11 = vpop.f32.mrb[159].mxu1 }
 0x22c   :  { %4554 = vmatpush3.bf16.msra.mxu0 %v3034_v40  ;;  %v2715_v19 = vmax.f32 %v2220_v27, 0.0  ;;  %v2224_v3 = vadd.f32 %v2223_v11, %v5832_v15 }
 0x22d   :  { %4555 = vmatprep.subr.bf16.mxu0 %v3053_v31  ;;  %v6035_v14 = vmul.f32 %v5990_v50, %v2714_v36  ;;  %v2731_v2 = vmax.f32 %v2222_v6, 0.0 }
 0x22e   :  { %v6038_v51 = vmul.f32 %v5997_v62, %v2715_v19  ;;  %v2732_v29 = vmax.f32 %v2224_v3, 0.0 }
 0x22f   :  { %v6041_v30 = vmul.f32 %v5990_v50, %v2731_v2  ;;  %v5009_v2 = vld [vmem:[%s6991_s0 + $0x30] sm:$0xff] }
 0x230   :  { %4556 = vmatpush3.bf16.msra.mxu0 %v3051_v13  ;;  %v6047_v16 = vmul.f32 %v5997_v62, %v2732_v29  ;;  %v2227_v41 = vpop.f32.mrb[160].mxu1  ;;  %v6108_v29 = vrot.slane %v5009_v2, %v5792_v44 }
 0x231   :  { %4557 = vmatprep.subr.bf16.mxu0 %v3070_v9  ;;  %v3037_v40 = vpack.c.bf16 %v6041_v30, %v6035_v14  ;;  %v2228_v31 = vadd.f32 %v2227_v41, %v5854_v35  ;;  %v2229_v32 = vpop.f32.mrb[161].mxu1 }
 0x232   :  { %v3038_v33 = vpack.c.bf16 %v6047_v16, %v6038_v51  ;;  %v2230_v37 = vadd.f32 %v2229_v32, %v5854_v35  ;;  %v2231_v38 = vpop.f32.mrb[162].mxu1 }
 0x233   :  { %v2748_v60 = vmax.f32 %v2228_v31, 0.0  ;;  %v2232_v13 = vadd.f32 %v2231_v38, %v5862_v17  ;;  %v2233_v39 = vpop.f32.mrb[163].mxu1 }
 0x234   :  { %4558 = vmatpush3.bf16.msra.mxu0 %v3068_v4  ;;  %v2749_v43 = vmax.f32 %v2230_v37, 0.0  ;;  %v2234_v10 = vadd.f32 %v2233_v39, %v5862_v17 }
 0x235   :  { %v6067_v55 = vmul.f32 %v5990_v50, %v2748_v60  ;;  %v2765_v0 = vmax.f32 %v2232_v13, 0.0  ;;  %v4903_v60 = vld [vmem:[%s6996_s4 + $0x90] ss:$36 sps:$4 sm:$0xff]  }
 0x236   :  { %v6070_v18 = vmul.f32 %v5997_v62, %v2749_v43  ;;  %v2766_v20 = vmax.f32 %v2234_v10, 0.0  ;;  %v4904_v10 = vld [vmem:[%s6996_s4 + $0xdc] ss:$36 sps:$4 sm:$0xff]  }
 0x237   :  { %3814 = vmatmul.mubr.bf16.vlgmr.msra.gmra.mrb[200].mxu0 %v4895_v52  ;;  %v6073_v9 = vmul.f32 %v5990_v50, %v2765_v0 }
 0x238   :  { %3821 = vmatprep.mubr.bf16.mxu0 %v4898_v42  ;;  %v6076_v47 = vmul.f32 %v5997_v62, %v2766_v20  ;;  %v2237_v34 = vpop.f32.mrb[164].mxu1 }
 0x239   :  { %v3054_v4 = vpack.c.bf16 %v6073_v9, %v6067_v55  ;;  %v2238_v46 = vadd.f32 %v2237_v34, %v5880_v54  ;;  %v2239_v49 = vpop.f32.mrb[165].mxu1 }
 0x23a   :  { %v3055_v53 = vpack.c.bf16 %v6076_v47, %v6070_v18  ;;  %v2240_v61 = vadd.f32 %v2239_v49, %v5880_v54  ;;  %v2241_v24 = vpop.f32.mrb[166].mxu1  ;;  %v4919_v18 = vld [vmem:[%s6996_s4 + $0x8] ss:$36 sps:$4 sm:$0xff]  }
 0x23b   :  { %v2782_v25 = vmax.f32 %v2238_v46, 0.0  ;;  %v2242_v12 = vadd.f32 %v2241_v24, %v5885_v23  ;;  %v2243_v58 = vpop.f32.mrb[167].mxu1 }
 0x23c   :  { %v2783_v57 = vmax.f32 %v2240_v61, 0.0  ;;  %v2244_v1 = vadd.f32 %v2243_v58, %v5885_v23 }
 0x23d   :  { %v6093_v27 = vmul.f32 %v5990_v50, %v2782_v25  ;;  %v2799_v8 = vmax.f32 %v2242_v12, 0.0 }
 0x23e   :  { %v6096_v36 = vmul.f32 %v5997_v62, %v2783_v57  ;;  %v2800_v6 = vmax.f32 %v2244_v1, 0.0 }
 0x23f   :  { %3822 = vmatmul.mubr.bf16.gmra.mrb[204].mxu0 %v4900_v63  ;;  %v6099_v11 = vmul.f32 %v5990_v50, %v2799_v8  ;;  %v5010_v50 = vld [vmem:[%s6991_s0 + $0x38] sm:$0xff] }
 0x240   :  { %3829 = vmatprep.mubr.bf16.mxu0 %v4901_v45  ;;  %v2280_v19 = vpop.f32.mrb[152].mxu0  ;;  %v6102_v3 = vmul.f32 %v5997_v62, %v2800_v6  ;;  %v6117_v62 = vrot.slane %v5010_v50, %v5792_v44  ;;  %v4906_v8 = vld [vmem:[%s6996_s4 + $0xd8] ss:$36 sps:$4 sm:$0xff]   ;;  %v4907_v50 = vld [vmem:[%s6996_s4 + $0x124] ss:$36 sps:$4 sm:$0xff]  }
 0x241   :  { %v2281_v41 = vadd.f32 %v2280_v19, %v5790_v48  ;;  %v2282_v31 = vpop.f32.mrb[153].mxu0  ;;  %v3071_v32 = vpack.c.bf16 %v6099_v11, %v6093_v27 }
 0x242   :  { %v2283_v37 = vadd.f32 %v2282_v31, %v5790_v48  ;;  %v2284_v38 = vpop.f32.mrb[154].mxu0  ;;  %v3072_v52 = vpack.c.bf16 %v6102_v3, %v6096_v36 }
 0x243   :  { %v2682_v13 = vmax.f32 %v2281_v41, 0.0  ;;  %v2285_v39 = vadd.f32 %v2284_v38, %v5796_v22  ;;  %v2286_v42 = vpop.f32.mrb[155].mxu0 }
 0x244   :  { %v2683_v43 = vmax.f32 %v2283_v37, 0.0  ;;  %v2287_v0 = vadd.f32 %v2286_v42, %v5796_v22 }
 0x245   :  { %v2886_v20 = vmul.f32 %v6108_v29, %v2682_v13  ;;  %v2699_v34 = vmax.f32 %v2285_v39, 0.0 }
 0x246   :  { %v6132_v46 = vmul.f32 %v6117_v62, %v2683_v43  ;;  %v2700_v49 = vmax.f32 %v2287_v0, 0.0 }
 0x247   :  { %3830 = vmatmul.mubr.bf16.gmra.mrb[208].mxu0 %v4903_v60  ;;  %v2903_v61 = vmul.f32 %v6108_v29, %v2699_v34 }
 0x248   :  { %3837 = vmatprep.mubr.bf16.mxu0 %v4904_v10  ;;  %v6136_v24 = vmul.f32 %v6117_v62, %v2700_v49  ;;  %v2290_v63 = vpop.f32.mrb[156].mxu0 }
 0x249   :  { %v2291_v25 = vadd.f32 %v2290_v63, %v5811_v59  ;;  %v2292_v12 = vpop.f32.mrb[157].mxu0  ;;  %v3022_v58 = vpack.c.bf16 %v2903_v61, %v2886_v20  ;;  %v4909_v63 = vld [vmem:[%s6996_s4 + $0x120] ss:$36 sps:$4 sm:$0xff]  }
 0x24a   :  { %v2293_v45 = vadd.f32 %v2292_v12, %v5811_v59  ;;  %v2294_v57 = vpop.f32.mrb[158].mxu0  ;;  %v3023_v1 = vpack.c.bf16 %v6136_v24, %v6132_v46 }
 0x24b   :  { %v2716_v6 = vmax.f32 %v2291_v25, 0.0  ;;  %v2295_v19 = vadd.f32 %v2294_v57, %v5832_v15  ;;  %v2296_v2 = vpop.f32.mrb[159].mxu0  ;;  %4607 = vmatprep.subr.bf16.mxu1 %v3022_v58  ;;  %v4910_v58 = vld [vmem:[%s6996_s4 + $0x16c] ss:$36 sps:$4 sm:$0xff]  }
 0x24c   :  { %v2717_v41 = vmax.f32 %v2293_v45, 0.0  ;;  %v2297_v31 = vadd.f32 %v2296_v2, %v5832_v15  ;;  %4608 = vmatpush3.bf16.msra.mxu1 %v3020_v28 }
 0x24d   :  { %v2920_v37 = vmul.f32 %v6108_v29, %v2716_v6  ;;  %v2733_v38 = vmax.f32 %v2295_v19, 0.0 }
 0x24e   :  { %v6155_v60 = vmul.f32 %v6117_v62, %v2717_v41  ;;  %v2734_v13 = vmax.f32 %v2297_v31, 0.0 }
 0x24f   :  { %3838 = vmatmul.mubr.bf16.gmra.mrb[212].mxu0 %v4906_v8  ;;  %v2937_v39 = vmul.f32 %v6108_v29, %v2733_v38 }
 0x250   :  { %v6159_v42 = vmul.f32 %v6117_v62, %v2734_v13  ;;  %v2300_v43 = vpop.f32.mrb[160].mxu0  ;;  %3845 = vmatprep.mubr.bf16.mxu0 %v4907_v50 }
 0x251   :  { %v2301_v10 = vadd.f32 %v2300_v43, %v5854_v35  ;;  %v2302_v0 = vpop.f32.mrb[161].mxu0  ;;  %v3039_v5 = vpack.c.bf16 %v2937_v39, %v2920_v37  ;;  %v4912_v39 = vld [vmem:[%s6996_s4 + $0x168] ss:$36 sps:$4 sm:$0xff]  }
 0x252   :  { %v2303_v7 = vadd.f32 %v2302_v0, %v5854_v35  ;;  %v2304_v28 = vpop.f32.mrb[162].mxu0  ;;  %v3040_v20 = vpack.c.bf16 %v6159_v42, %v6155_v60  ;;  %v4913_v0 = vld [vmem:[%s6996_s4 + $0x1b4] ss:$36 sps:$4 sm:$0xff]  }
 0x253   :  { %v2750_v34 = vmax.f32 %v2301_v10, 0.0  ;;  %v2305_v49 = vadd.f32 %v2304_v28, %v5862_v17  ;;  %v2306_v61 = vpop.f32.mrb[163].mxu0  ;;  %4609 = vmatprep.subr.bf16.mxu1 %v3039_v5 }
 0x254   :  { %v2751_v25 = vmax.f32 %v2303_v7, 0.0  ;;  %v2307_v12 = vadd.f32 %v2306_v61, %v5862_v17  ;;  %4610 = vmatpush3.bf16.msra.mxu1 %v3037_v40 }
 0x255   :  { %v2954_v45 = vmul.f32 %v6108_v29, %v2750_v34  ;;  %v2767_v57 = vmax.f32 %v2305_v49, 0.0 }
 0x256   :  { %v6178_v8 = vmul.f32 %v6117_v62, %v2751_v25  ;;  %v2768_v6 = vmax.f32 %v2307_v12, 0.0 }
 0x257   :  { %v2971_v19 = vmul.f32 %v6108_v29, %v2767_v57  ;;  %3846 = vmatmul.mubr.bf16.gmra.mrb[216].mxu0 %v4909_v63 }
 0x258   :  { %v6182_v2 = vmul.f32 %v6117_v62, %v2768_v6  ;;  %v2310_v41 = vpop.f32.mrb[164].mxu0  ;;  %3853 = vmatprep.mubr.bf16.mxu0 %v4910_v58 }
 0x259   :  { %v2311_v14 = vadd.f32 %v2310_v41, %v5880_v54  ;;  %v2312_v30 = vpop.f32.mrb[165].mxu0  ;;  %v3056_v40 = vpack.c.bf16 %v2971_v19, %v2954_v45  ;;  %v4915_v19 = vld [vmem:[%s6996_s4 + $0x1b0] ss:$36 sps:$4 sm:$0xff]  }
 0x25a   :  { %v2313_v31 = vadd.f32 %v2312_v30, %v5880_v54  ;;  %v2314_v50 = vpop.f32.mrb[166].mxu0  ;;  %v3057_v37 = vpack.c.bf16 %v6182_v2, %v6178_v8 }
 0x25b   :  { %v2784_v38 = vmax.f32 %v2311_v14, 0.0  ;;  %v2315_v13 = vadd.f32 %v2314_v50, %v5885_v23  ;;  %4611 = vmatprep.subr.bf16.mxu1 %v3056_v40  ;;  %v2316_v43 = vpop.f32.mrb[167].mxu0  ;;  %v4916_v40 = vld [vmem:[%s6996_s4 + $0x1fc] ss:$36 sps:$4 sm:$0xff]  }
 0x25c   :  { %v2785_v10 = vmax.f32 %v2313_v31, 0.0  ;;  %4612 = vmatpush3.bf16.msra.mxu1 %v3054_v4  ;;  %v2317_v5 = vadd.f32 %v2316_v43, %v5885_v23  ;;  %v5011_v4 = vld [vmem:[%s6991_s0 + $0x40] sm:$0xff] }
 0x25d   :  { %v2988_v7 = vmul.f32 %v6108_v29, %v2784_v38  ;;  %v2801_v28 = vmax.f32 %v2315_v13, 0.0  ;;  %v6209_v63 = vrot.slane %v5011_v4, %v5792_v44 }
 0x25e   :  { %v6201_v34 = vmul.f32 %v6117_v62, %v2785_v10  ;;  %v2802_v49 = vmax.f32 %v2317_v5, 0.0 }
 0x25f   :  { %v3005_v61 = vmul.f32 %v6108_v29, %v2801_v28  ;;  %3854 = vmatmul.mubr.bf16.gmra.mrb[220].mxu0 %v4912_v39  ;;  %v5012_v29 = vld [vmem:[%s6991_s0 + $0x48] sm:$0xff] }
 0x260   :  { %3861 = vmatprep.mubr.bf16.mxu0 %v4913_v0  ;;  %v3006_v55 = vmul.f32 %v6117_v62, %v2802_v49  ;;  %v2353_v9 = vpop.f32.mrb[168].mxu1  ;;  %v6216_v45 = vrot.slane %v5012_v29, %v5792_v44  ;;  %v4922_v29 = vld [vmem:[%s6996_s4 + $0x54] ss:$36 sps:$4 sm:$0xff]  }
 0x261   :  { %v3073_v25 = vpack.c.bf16 %v3005_v61, %v2988_v7  ;;  %v2354_v12 = vadd.f32 %v2353_v9, %v5790_v48  ;;  %v2355_v58 = vpop.f32.mrb[169].mxu1  ;;  %v4945_v7 = vld [vmem:[%s6996_s4 + $0x14] ss:$36 sps:$4 sm:$0xff]  }
 0x262   :  { %v3074_v62 = vpack.c.bf16 %v3006_v55, %v6201_v34  ;;  %v2356_v57 = vadd.f32 %v2355_v58, %v5790_v48  ;;  %v2357_v6 = vpop.f32.mrb[170].mxu1 }
 0x263   :  { %4613 = vmatprep.subr.bf16.mxu1 %v3073_v25  ;;  %v2684_v41 = vmax.f32 %v2354_v12, 0.0  ;;  %v2358_v14 = vadd.f32 %v2357_v6, %v5796_v22  ;;  %v2359_v30 = vpop.f32.mrb[171].mxu1 }
 0x264   :  { %4614 = vmatpush3.bf16.msra.mxu1 %v3071_v32  ;;  %v2685_v31 = vmax.f32 %v2356_v57, 0.0  ;;  %v2360_v50 = vadd.f32 %v2359_v30, %v5796_v22 }
 0x265   :  { %4615 = vmatprep.subr.bf16.mxu1 %v3023_v1  ;;  %v6235_v38 = vmul.f32 %v6209_v63, %v2684_v41  ;;  %v2701_v13 = vmax.f32 %v2358_v14, 0.0 }
 0x266   :  { %v6238_v39 = vmul.f32 %v6216_v45, %v2685_v31  ;;  %v2702_v27 = vmax.f32 %v2360_v50, 0.0 }
 0x267   :  { %3862 = vmatmul.mubr.bf16.gmra.mrb[224].mxu0 %v4915_v19  ;;  %v6241_v11 = vmul.f32 %v6209_v63, %v2701_v13 }
 0x268   :  { %4616 = vmatpush3.bf16.msra.mxu1 %v3021_v26  ;;  %3869 = vmatprep.mubr.bf16.mxu0 %v4916_v40  ;;  %v6247_v32 = vmul.f32 %v6216_v45, %v2702_v27  ;;  %v2363_v46 = vpop.f32.mrb[172].mxu1  ;;  %v4918_v26 = vld [vmem:[%s6996_s4 + $0x1f8] ss:$36 sps:$4 sm:$0xff]   ;;  %v4924_v27 = vld [vmem:[%s6996_s4 + $0x50] ss:$36 sps:$4 sm:$0xff]  }
 0x269   :  { %4617 = vmatprep.subr.bf16.mxu1 %v3040_v20  ;;  %v3024_v24 = vpack.c.bf16 %v6241_v11, %v6235_v38  ;;  %v2364_v1 = vadd.f32 %v2363_v46, %v5811_v59  ;;  %v2365_v43 = vpop.f32.mrb[173].mxu1 }
 0x26a   :  { %v3025_v10 = vpack.c.bf16 %v6247_v32, %v6238_v39  ;;  %v2366_v56 = vadd.f32 %v2365_v43, %v5811_v59  ;;  %v2367_v21 = vpop.f32.mrb[174].mxu1 }
 0x26b   :  { %v2718_v0 = vmax.f32 %v2364_v1, 0.0  ;;  %v2368_v60 = vadd.f32 %v2367_v21, %v5832_v15  ;;  %v2369_v42 = vpop.f32.mrb[175].mxu1  ;;  %v4925_v21 = vld [vmem:[%s6996_s4 + $0x9c] ss:$36 sps:$4 sm:$0xff]  }
 0x26c   :  { %4618 = vmatpush3.bf16.msra.mxu1 %v3038_v33  ;;  %v2719_v20 = vmax.f32 %v2366_v56, 0.0  ;;  %v2370_v5 = vadd.f32 %v2369_v42, %v5832_v15 }
 0x26d   :  { %4619 = vmatprep.subr.bf16.mxu1 %v3057_v37  ;;  %v6273_v28 = vmul.f32 %v6209_v63, %v2718_v0  ;;  %v2735_v34 = vmax.f32 %v2368_v60, 0.0 }
 0x26e   :  { %v6276_v49 = vmul.f32 %v6216_v45, %v2719_v20  ;;  %v2736_v51 = vmax.f32 %v2370_v5, 0.0 }
 0x26f   :  { %3870 = vmatmul.mubr.bf16.gmra.mrb[228].mxu0 %v4918_v26  ;;  %v6279_v16 = vmul.f32 %v6209_v63, %v2735_v34 }
 0x270   :  { %4620 = vmatpush3.bf16.msra.mxu1 %v3055_v53  ;;  %v6285_v33 = vmul.f32 %v6216_v45, %v2736_v51  ;;  %v2373_v8 = vpop.f32.mrb[176].mxu1  ;;  %4007 = vmatprep.mubr.bf16.mxu0 %v4945_v7 }
 0x271   :  { %4621 = vmatprep.subr.bf16.mxu1 %v3074_v62  ;;  %v3041_v2 = vpack.c.bf16 %v6279_v16, %v6273_v28  ;;  %v2374_v37 = vadd.f32 %v2373_v8, %v5854_v35  ;;  %v2375_v61 = vpop.f32.mrb[177].mxu1 }
 0x272   :  { %v3042_v55 = vpack.c.bf16 %v6285_v33, %v6276_v49  ;;  %v2376_v9 = vadd.f32 %v2375_v61, %v5854_v35  ;;  %v2377_v4 = vpop.f32.mrb[178].mxu1 }
 0x273   :  { %v2752_v47 = vmax.f32 %v2374_v37, 0.0  ;;  %v2378_v53 = vadd.f32 %v2377_v4, %v5862_v17  ;;  %v2379_v25 = vpop.f32.mrb[179].mxu1  ;;  %v5013_v37 = vld [vmem:[%s6991_s0 + $0x58] sm:$0xff]  ;;  %v5014_v4 = vld [vmem:[%s6991_s0 + $0x50] sm:$0xff] }
 0x274   :  { %4622 = vmatpush3.bf16.msra.mxu1 %v3072_v52  ;;  %v2753_v12 = vmax.f32 %v2376_v9, 0.0  ;;  %v2380_v58 = vadd.f32 %v2379_v25, %v5862_v17  ;;  %v6349_v61 = vrot.slane %v5013_v37, %v5792_v44 }
 0x275   :  { %v6305_v62 = vmul.f32 %v6209_v63, %v2752_v47  ;;  %v2769_v57 = vmax.f32 %v2378_v53, 0.0 }
 0x276   :  { %v6308_v6 = vmul.f32 %v6216_v45, %v2753_v12  ;;  %v2770_v19 = vmax.f32 %v2380_v58, 0.0  ;;  %v4927_v12 = vld [vmem:[%s6996_s4 + $0x98] ss:$36 sps:$4 sm:$0xff]  }
 0x277   :  { %3911 = vmatmul.mubr.bf16.vlgmr.msra.gmra.mrb[208].mxu1 %v4919_v18  ;;  %v6311_v41 = vmul.f32 %v6209_v63, %v2769_v57  ;;  %v6358_v18 = vrot.slane %v5014_v4, %v5792_v44  ;;  %v4928_v57 = vld [vmem:[%s6996_s4 + $0xe4] ss:$36 sps:$4 sm:$0xff]  }
 0x278   :  { %v6314_v36 = vmul.f32 %v6216_v45, %v2770_v19  ;;  %3918 = vmatprep.mubr.bf16.mxu1 %v4922_v29  ;;  %v2383_v3 = vpop.f32.mrb[180].mxu1 }
 0x279   :  { %v3058_v52 = vpack.c.bf16 %v6311_v41, %v6305_v62  ;;  %v2384_v14 = vadd.f32 %v2383_v3, %v5880_v54  ;;  %v2385_v30 = vpop.f32.mrb[181].mxu1 }
 0x27a   :  { %v3059_v40 = vpack.c.bf16 %v6314_v36, %v6308_v6  ;;  %v2386_v31 = vadd.f32 %v2385_v30, %v5880_v54  ;;  %v2387_v50 = vpop.f32.mrb[182].mxu1  ;;  %v4943_v6 = vld [vmem:[%s6996_s4 + $0x10] ss:$36 sps:$4 sm:$0xff]  }
 0x27b   :  { %v2786_v13 = vmax.f32 %v2384_v14, 0.0  ;;  %v2388_v46 = vadd.f32 %v2387_v50, %v5885_v23  ;;  %v2389_v1 = vpop.f32.mrb[183].mxu1 }
 0x27c   :  { %v2787_v43 = vmax.f32 %v2386_v31, 0.0  ;;  %v2390_v56 = vadd.f32 %v2389_v1, %v5885_v23 }
 0x27d   :  { %v6331_v26 = vmul.f32 %v6209_v63, %v2786_v13  ;;  %v2803_v0 = vmax.f32 %v2388_v46, 0.0 }
 0x27e   :  { %v6334_v60 = vmul.f32 %v6216_v45, %v2787_v43  ;;  %v2804_v42 = vmax.f32 %v2390_v56, 0.0 }
 0x27f   :  { %3919 = vmatmul.mubr.bf16.gmra.mrb[212].mxu1 %v4924_v27  ;;  %v6337_v20 = vmul.f32 %v6209_v63, %v2803_v0 }
 0x280   :  { %v2426_v5 = vpop.f32.mrb[168].mxu0  ;;  %v6340_v7 = vmul.f32 %v6216_v45, %v2804_v42  ;;  %3926 = vmatprep.mubr.bf16.mxu1 %v4925_v21 }
 0x281   :  { %v2427_v34 = vadd.f32 %v2426_v5, %v5790_v48  ;;  %v3075_v51 = vpack.c.bf16 %v6337_v20, %v6331_v26  ;;  %v2428_v8 = vpop.f32.mrb[169].mxu0 }
 0x282   :  { %v2429_v63 = vadd.f32 %v2428_v8, %v5790_v48  ;;  %v3076_v45 = vpack.c.bf16 %v6340_v7, %v6334_v60  ;;  %v2430_v9 = vpop.f32.mrb[170].mxu0 }
 0x283   :  { %v2686_v47 = vmax.f32 %v2427_v34, 0.0  ;;  %v2431_v53 = vadd.f32 %v2430_v9, %v5796_v22  ;;  %v2432_v25 = vpop.f32.mrb[171].mxu0  ;;  %v4930_v34 = vld [vmem:[%s6996_s4 + $0xe0] ss:$36 sps:$4 sm:$0xff]  }
 0x284   :  { %v2687_v58 = vmax.f32 %v2429_v63, 0.0  ;;  %v2433_v29 = vadd.f32 %v2432_v25, %v5796_v22  ;;  %v4931_v63 = vld [vmem:[%s6996_s4 + $0x12c] ss:$36 sps:$4 sm:$0xff]  }
 0x285   :  { %v2703_v19 = vmax.f32 %v2431_v53, 0.0  ;;  %v2890_v30 = vmul.f32 %v6358_v18, %v2686_v47 }
 0x286   :  { %v6369_v3 = vmul.f32 %v6349_v61, %v2687_v58  ;;  %v2704_v14 = vmax.f32 %v2433_v29, 0.0 }
 0x287   :  { %v2907_v31 = vmul.f32 %v6358_v18, %v2703_v19  ;;  %3927 = vmatmul.mubr.bf16.gmra.mrb[216].mxu1 %v4927_v12 }
 0x288   :  { %v6374_v50 = vmul.f32 %v6349_v61, %v2704_v14  ;;  %v2436_v13 = vpop.f32.mrb[172].mxu0  ;;  %3934 = vmatprep.mubr.bf16.mxu1 %v4928_v57 }
 0x289   :  { %v2437_v27 = vadd.f32 %v2436_v13, %v5811_v59  ;;  %v2438_v46 = vpop.f32.mrb[173].mxu0  ;;  %v3026_v1 = vpack.c.bf16 %v2907_v31, %v2890_v30  ;;  %v4933_v13 = vld [vmem:[%s6996_s4 + $0x128] ss:$36 sps:$4 sm:$0xff]  }
 0x28a   :  { %v2439_v43 = vadd.f32 %v2438_v46, %v5811_v59  ;;  %v2440_v56 = vpop.f32.mrb[174].mxu0  ;;  %v3027_v21 = vpack.c.bf16 %v6374_v50, %v6369_v3 }
 0x28b   :  { %v2720_v0 = vmax.f32 %v2437_v27, 0.0  ;;  %v2441_v42 = vadd.f32 %v2440_v56, %v5832_v15  ;;  %v2442_v5 = vpop.f32.mrb[175].mxu0  ;;  %4671 = vmatprep.subr.bf16.mxu0 %v3026_v1  ;;  %v4934_v1 = vld [vmem:[%s6996_s4 + $0x174] ss:$36 sps:$4 sm:$0xff]  }
 0x28c   :  { %v2721_v8 = vmax.f32 %v2439_v43, 0.0  ;;  %v2443_v37 = vadd.f32 %v2442_v5, %v5832_v15  ;;  %4672 = vmatpush3.bf16.msra.mxu0 %v3024_v24 }
 0x28d   :  { %v2737_v9 = vmax.f32 %v2441_v42, 0.0  ;;  %v2924_v53 = vmul.f32 %v6358_v18, %v2720_v0 }
 0x28e   :  { %v6392_v4 = vmul.f32 %v6349_v61, %v2721_v8  ;;  %v2738_v47 = vmax.f32 %v2443_v37, 0.0 }
 0x28f   :  { %v2941_v25 = vmul.f32 %v6358_v18, %v2737_v9  ;;  %3935 = vmatmul.mubr.bf16.gmra.mrb[220].mxu1 %v4930_v34 }
 0x290   :  { %v6397_v12 = vmul.f32 %v6349_v61, %v2738_v47  ;;  %v2446_v58 = vpop.f32.mrb[176].mxu0  ;;  %3942 = vmatprep.mubr.bf16.mxu1 %v4931_v63 }
 0x291   :  { %v2447_v38 = vadd.f32 %v2446_v58, %v5854_v35  ;;  %v2448_v11 = vpop.f32.mrb[177].mxu0  ;;  %v3043_v24 = vpack.c.bf16 %v2941_v25, %v2924_v53  ;;  %v4936_v58 = vld [vmem:[%s6996_s4 + $0x170] ss:$36 sps:$4 sm:$0xff]  }
 0x292   :  { %v2449_v29 = vadd.f32 %v2448_v11, %v5854_v35  ;;  %v2450_v57 = vpop.f32.mrb[178].mxu0  ;;  %v3044_v19 = vpack.c.bf16 %v6397_v12, %v6392_v4  ;;  %v4969_v4 = vld [vmem:[%s6996_s4 + $0x1c] ss:$36 sps:$4 sm:$0xff]  }
 0x293   :  { %v2754_v14 = vmax.f32 %v2447_v38, 0.0  ;;  %v2451_v30 = vadd.f32 %v2450_v57, %v5862_v17  ;;  %v2452_v31 = vpop.f32.mrb[179].mxu0  ;;  %4673 = vmatprep.subr.bf16.mxu0 %v3043_v24  ;;  %v4937_v24 = vld [vmem:[%s6996_s4 + $0x1bc] ss:$36 sps:$4 sm:$0xff]  }
 0x294   :  { %v2755_v27 = vmax.f32 %v2449_v29, 0.0  ;;  %v2453_v46 = vadd.f32 %v2452_v31, %v5862_v17  ;;  %4674 = vmatpush3.bf16.msra.mxu0 %v3041_v2 }
 0x295   :  { %v2771_v43 = vmax.f32 %v2451_v30, 0.0  ;;  %v2958_v42 = vmul.f32 %v6358_v18, %v2754_v14 }
 0x296   :  { %v6415_v56 = vmul.f32 %v6349_v61, %v2755_v27  ;;  %v2772_v0 = vmax.f32 %v2453_v46, 0.0  ;;  %v5015_v46 = vld [vmem:[%s6991_s0 + $0x68] sm:$0xff] }
 0x297   :  { %v2975_v5 = vmul.f32 %v6358_v18, %v2771_v43  ;;  %3943 = vmatmul.mubr.bf16.gmra.mrb[224].mxu1 %v4933_v13 }
 0x298   :  { %v6420_v34 = vmul.f32 %v6349_v61, %v2772_v0  ;;  %v2456_v8 = vpop.f32.mrb[180].mxu0  ;;  %3950 = vmatprep.mubr.bf16.mxu1 %v4934_v1  ;;  %v6448_v1 = vrot.slane %v5015_v46, %v5792_v44 }
 0x299   :  { %v2457_v28 = vadd.f32 %v2456_v8, %v5880_v54  ;;  %v2458_v16 = vpop.f32.mrb[181].mxu0  ;;  %v3060_v2 = vpack.c.bf16 %v2975_v5, %v2958_v42 }
 0x29a   :  { %v2459_v37 = vadd.f32 %v2458_v16, %v5880_v54  ;;  %v2460_v63 = vpop.f32.mrb[182].mxu0  ;;  %v3061_v9 = vpack.c.bf16 %v6420_v34, %v6415_v56  ;;  %v4939_v16 = vld [vmem:[%s6996_s4 + $0x1b8] ss:$36 sps:$4 sm:$0xff]  }
 0x29b   :  { %v2788_v47 = vmax.f32 %v2457_v28, 0.0  ;;  %v2461_v53 = vadd.f32 %v2460_v63, %v5885_v23  ;;  %v2462_v25 = vpop.f32.mrb[183].mxu0  ;;  %4675 = vmatprep.subr.bf16.mxu0 %v3060_v2  ;;  %v4940_v63 = vld [vmem:[%s6996_s4 + $0x204] ss:$36 sps:$4 sm:$0xff]  }
 0x29c   :  { %v2789_v38 = vmax.f32 %v2459_v37, 0.0  ;;  %v2463_v11 = vadd.f32 %v2462_v25, %v5885_v23  ;;  %4676 = vmatpush3.bf16.msra.mxu0 %v3058_v52 }
 0x29d   :  { %v2805_v29 = vmax.f32 %v2461_v53, 0.0  ;;  %v2992_v30 = vmul.f32 %v6358_v18, %v2788_v47 }
 0x29e   :  { %v6438_v57 = vmul.f32 %v6349_v61, %v2789_v38  ;;  %v2806_v14 = vmax.f32 %v2463_v11, 0.0 }
 0x29f   :  { %v3009_v31 = vmul.f32 %v6358_v18, %v2805_v29  ;;  %3951 = vmatmul.mubr.bf16.gmra.mrb[228].mxu1 %v4936_v58 }
 0x2a0   :  { %v3010_v13 = vmul.f32 %v6349_v61, %v2806_v14  ;;  %v2499_v27 = vpop.f32.mrb[184].mxu1  ;;  %3958 = vmatprep.mubr.bf16.mxu1 %v4937_v24  ;;  %v5016_v61 = vld [vmem:[%s6991_s0 + $0x60] sm:$0xff] }
 0x2a1   :  { %v2500_v62 = vadd.f32 %v2499_v27, %v5790_v48  ;;  %v2501_v41 = vpop.f32.mrb[185].mxu1  ;;  %v3077_v52 = vpack.c.bf16 %v3009_v31, %v2992_v30  ;;  %v6456_v42 = vrot.slane %v5016_v61, %v5792_v44 }
 0x2a2   :  { %v2502_v43 = vadd.f32 %v2501_v41, %v5790_v48  ;;  %v2503_v0 = vpop.f32.mrb[186].mxu1  ;;  %v3078_v18 = vpack.c.bf16 %v3010_v13, %v6438_v57 }
 0x2a3   :  { %v2688_v5 = vmax.f32 %v2500_v62, 0.0  ;;  %v2504_v8 = vadd.f32 %v2503_v0, %v5796_v22  ;;  %v2505_v28 = vpop.f32.mrb[187].mxu1  ;;  %4677 = vmatprep.subr.bf16.mxu0 %v3077_v52 }
 0x2a4   :  { %v2689_v2 = vmax.f32 %v2502_v43, 0.0  ;;  %v2506_v37 = vadd.f32 %v2505_v28, %v5796_v22  ;;  %4678 = vmatpush3.bf16.msra.mxu0 %v3075_v51  ;;  %v4946_v43 = vld [vmem:[%s6996_s4 + $0x5c] ss:$36 sps:$4 sm:$0xff]  }
 0x2a5   :  { %v2705_v47 = vmax.f32 %v2504_v8, 0.0  ;;  %4679 = vmatprep.subr.bf16.mxu0 %v3027_v21  ;;  %v6476_v58 = vmul.f32 %v6456_v42, %v2688_v5 }
 0x2a6   :  { %v6473_v53 = vmul.f32 %v6448_v1, %v2689_v2  ;;  %v2706_v25 = vmax.f32 %v2506_v37, 0.0 }
 0x2a7   :  { %v6479_v38 = vmul.f32 %v6456_v42, %v2705_v47  ;;  %3959 = vmatmul.mubr.bf16.gmra.mrb[232].mxu1 %v4939_v16 }
 0x2a8   :  { %v6482_v26 = vmul.f32 %v6448_v1, %v2706_v25  ;;  %v2509_v20 = vpop.f32.mrb[188].mxu1  ;;  %4680 = vmatpush3.bf16.msra.mxu0 %v3025_v10  ;;  %3966 = vmatprep.mubr.bf16.mxu1 %v4940_v63  ;;  %v4942_v10 = vld [vmem:[%s6996_s4 + $0x200] ss:$36 sps:$4 sm:$0xff]  }
 0x2a9   :  { %v3028_v51 = vpack.c.bf16 %v6479_v38, %v6476_v58  ;;  %v2510_v3 = vadd.f32 %v2509_v20, %v5811_v59  ;;  %v2511_v50 = vpop.f32.mrb[189].mxu1  ;;  %4681 = vmatprep.subr.bf16.mxu0 %v3044_v19 }
 0x2aa   :  { %v3029_v21 = vpack.c.bf16 %v6482_v26, %v6473_v53  ;;  %v2512_v11 = vadd.f32 %v2511_v50, %v5811_v59  ;;  %v2513_v24 = vpop.f32.mrb[190].mxu1  ;;  %v4967_v53 = vld [vmem:[%s6996_s4 + $0x18] ss:$36 sps:$4 sm:$0xff]   ;;  %v4971_v26 = vld [vmem:[%s6996_s4 + $0x68] ss:$36 sps:$4 sm:$0xff]  }
 0x2ab   :  { %v2722_v29 = vmax.f32 %v2510_v3, 0.0  ;;  %v2514_v39 = vadd.f32 %v2513_v24, %v5832_v15  ;;  %v2515_v32 = vpop.f32.mrb[191].mxu1  ;;  %v4948_v3 = vld [vmem:[%s6996_s4 + $0x58] ss:$36 sps:$4 sm:$0xff]   ;;  %v4949_v24 = vld [vmem:[%s6996_s4 + $0xa4] ss:$36 sps:$4 sm:$0xff]  }
 0x2ac   :  { %v2723_v57 = vmax.f32 %v2512_v11, 0.0  ;;  %v2516_v14 = vadd.f32 %v2515_v32, %v5832_v15  ;;  %4682 = vmatpush3.bf16.msra.mxu0 %v3042_v55 }
 0x2ad   :  { %v2739_v12 = vmax.f32 %v2514_v39, 0.0  ;;  %4683 = vmatprep.subr.bf16.mxu0 %v3061_v9  ;;  %v6514_v31 = vmul.f32 %v6456_v42, %v2722_v29 }
 0x2ae   :  { %v6511_v19 = vmul.f32 %v6448_v1, %v2723_v57  ;;  %v2740_v30 = vmax.f32 %v2516_v14, 0.0 }
 0x2af   :  { %v6517_v13 = vmul.f32 %v6456_v42, %v2739_v12  ;;  %3967 = vmatmul.mubr.bf16.gmra.mrb[236].mxu1 %v4942_v10  ;;  %v5017_v12 = vld [vmem:[%s6991_s0 + $0x78] sm:$0xff] }
 0x2b0   :  { %v6520_v49 = vmul.f32 %v6448_v1, %v2740_v30  ;;  %v2519_v33 = vpop.f32.mrb[192].mxu1  ;;  %4684 = vmatpush3.bf16.msra.mxu0 %v3059_v40  ;;  %4104 = vmatprep.mubr.bf16.mxu1 %v4969_v4  ;;  %v6584_v30 = vrot.slane %v5017_v12, %v5792_v44 }
 0x2b1   :  { %v3045_v55 = vpack.c.bf16 %v6517_v13, %v6514_v31  ;;  %v2520_v56 = vadd.f32 %v2519_v33, %v5854_v35  ;;  %v2521_v34 = vpop.f32.mrb[193].mxu1  ;;  %4685 = vmatprep.subr.bf16.mxu0 %v3078_v18 }
 0x2b2   :  { %v3046_v9 = vpack.c.bf16 %v6520_v49, %v6511_v19  ;;  %v2522_v27 = vadd.f32 %v2521_v34, %v5854_v35  ;;  %v2523_v62 = vpop.f32.mrb[194].mxu1  ;;  %v4978_v19 = vld [vmem:[%s6996_s4 + $0xb0] ss:$36 sps:$4 sm:$0xff]   ;;  %v4974_v49 = vld [vmem:[%s6996_s4 + $0x60] ss:$36 sps:$4 sm:$0xff]  }
 0x2b3   :  { %v2756_v41 = vmax.f32 %v2520_v56, 0.0  ;;  %v2524_v52 = vadd.f32 %v2523_v62, %v5862_v17  ;;  %v2525_v46 = vpop.f32.mrb[195].mxu1 }
 0x2b4   :  { %v2757_v36 = vmax.f32 %v2522_v27, 0.0  ;;  %v2526_v40 = vadd.f32 %v2525_v46, %v5862_v17  ;;  %4686 = vmatpush3.bf16.msra.mxu0 %v3076_v45 }
 0x2b5   :  { %v2773_v0 = vmax.f32 %v2524_v52, 0.0  ;;  %v6546_v5 = vmul.f32 %v6456_v42, %v2756_v41 }
 0x2b6   :  { %v6543_v18 = vmul.f32 %v6448_v1, %v2757_v36  ;;  %v2774_v61 = vmax.f32 %v2526_v40, 0.0  ;;  %v5019_v36 = vld [vmem:[%s6991_s0 + $0x80] sm:$0xff] }
 0x2b7   :  { %v6549_v8 = vmul.f32 %v6456_v42, %v2773_v0  ;;  %4008 = vmatmul.mubr.bf16.vlgmr.msra.gmra.mrb[232].mxu0 %v4943_v6  ;;  %v6603_v40 = vrot.slane %v5019_v36, %v5792_v44 }
 0x2b8   :  { %v6552_v28 = vmul.f32 %v6448_v1, %v2774_v61  ;;  %v2529_v60 = vpop.f32.mrb[196].mxu1  ;;  %4015 = vmatprep.mubr.bf16.mxu0 %v4946_v43 }
 0x2b9   :  { %v3062_v7 = vpack.c.bf16 %v6549_v8, %v6546_v5  ;;  %v2530_v45 = vadd.f32 %v2529_v60, %v5880_v54  ;;  %v2531_v16 = vpop.f32.mrb[197].mxu1  ;;  %v4961_v5 = vld [vmem:[%s6996_s4 + $0x1c0] ss:$36 sps:$4 sm:$0xff]   ;;  %v4966_v8 = vld [vmem:[%s6996_s4 + $0x20c] ss:$36 sps:$4 sm:$0xff]  }
 0x2ba   :  { %v3063_v2 = vpack.c.bf16 %v6552_v28, %v6543_v18  ;;  %v2532_v37 = vadd.f32 %v2531_v16, %v5880_v54  ;;  %v2533_v63 = vpop.f32.mrb[198].mxu1  ;;  %v4951_v16 = vld [vmem:[%s6996_s4 + $0xa0] ss:$36 sps:$4 sm:$0xff]   ;;  %v4975_v18 = vld [vmem:[%s6996_s4 + $0xac] ss:$36 sps:$4 sm:$0xff]  }
 0x2bb   :  { %v2790_v47 = vmax.f32 %v2530_v45, 0.0  ;;  %v2534_v25 = vadd.f32 %v2533_v63, %v5885_v23  ;;  %v2535_v20 = vpop.f32.mrb[199].mxu1  ;;  %v4986_v28 = vld [vmem:[%s6996_s4 + $0x140] ss:$36 sps:$4 sm:$0xff]  }
 0x2bc   :  { %v2791_v50 = vmax.f32 %v2532_v37, 0.0  ;;  %v2536_v11 = vadd.f32 %v2535_v20, %v5885_v23 }
 0x2bd   :  { %v2807_v29 = vmax.f32 %v2534_v25, 0.0  ;;  %v6572_v10 = vmul.f32 %v6456_v42, %v2790_v47 }
 0x2be   :  { %v6569_v39 = vmul.f32 %v6448_v1, %v2791_v50  ;;  %v2808_v32 = vmax.f32 %v2536_v11, 0.0 }
 0x2bf   :  { %v6575_v57 = vmul.f32 %v6456_v42, %v2807_v29  ;;  %4016 = vmatmul.mubr.bf16.gmra.mrb[236].mxu0 %v4948_v3 }
 0x2c0   :  { %v6578_v14 = vmul.f32 %v6448_v1, %v2808_v32  ;;  %v2572_v4 = vpop.f32.mrb[184].mxu0  ;;  %4023 = vmatprep.mubr.bf16.mxu0 %v4949_v24  ;;  %v5018_v1 = vld [vmem:[%s6991_s0 + $0x70] sm:$0xff] }
 0x2c1   :  { %v3079_v33 = vpack.c.bf16 %v6575_v57, %v6572_v10  ;;  %v2573_v56 = vadd.f32 %v2572_v4, %v5790_v48  ;;  %v4855_v42 = vpop.f32.mrb[200].mxu1  ;;  %v2574_v34 = vpop.f32.mrb[185].mxu0  ;;  %v6593_v27 = vrot.slane %v5018_v1, %v5792_v44  ;;  %v4952_v44 = vld [vmem:[%s6996_s4 + $0xec] ss:$36 sps:$4 sm:$0xff]   ;;  %v4970_v10 = vld [vmem:[%s6996_s4 + $0x20] ss:$36 sps:$4 sm:$0xff]  }
 0x2c2   :  { %v3080_v62 = vpack.c.bf16 %v6578_v14, %v6569_v39  ;;  %v2654_v41 = vadd.f32 %v4855_v42, %v5811_v59  ;;  %v2575_v52 = vadd.f32 %v2574_v34, %v5790_v48  ;;  %v2645_v46 = vpop.f32.mrb[201].mxu1  ;;  %v2576_v6 = vpop.f32.mrb[186].mxu0  ;;  %v4987_v39 = vld [vmem:[%s6996_s4 + $0x188] ss:$36 sps:$4 sm:$0xff]   ;;  %v4980_v57 = vld [vmem:[%s6996_s4 + $0xf4] ss:$36 sps:$4 sm:$0xff]  }
 0x2c3   :  { %v2690_v43 = vmax.f32 %v2573_v56, 0.0  ;;  %v2646_v0 = vadd.f32 %v2645_v46, %v5790_v48  ;;  %v2577_v61 = vadd.f32 %v2576_v6, %v5796_v22  ;;  %v4856_v60 = vpop.f32.mrb[202].mxu1  ;;  %v2578_v45 = vpop.f32.mrb[187].mxu0  ;;  %v4994_v14 = vld [vmem:[%s6996_s4 + $0x1d0] ss:$36 sps:$4 sm:$0xff]  }
 0x2c4   :  { %v2726_v37 = vmax.f32 %v2654_v41, 0.0  ;;  %v2691_v63 = vmax.f32 %v2575_v52, 0.0  ;;  %v2657_v47 = vadd.f32 %v4856_v60, %v5832_v15  ;;  %v2579_v25 = vadd.f32 %v2578_v45, %v5796_v22  ;;  %v2648_v20 = vpop.f32.mrb[203].mxu1 }
 0x2c5   :  { %v2692_v48 = vmax.f32 %v2646_v0, 0.0  ;;  %v2707_v3 = vmax.f32 %v2577_v61, 0.0  ;;  %v2649_v50 = vadd.f32 %v2648_v20, %v5796_v22  ;;  %v2894_v32 = vmul.f32 %v6593_v27, %v2690_v43 }
 0x2c6   :  { %v6617_v11 = vmul.f32 %v6584_v30, %v2691_v63  ;;  %v2743_v24 = vmax.f32 %v2657_v47, 0.0  ;;  %v2708_v29 = vmax.f32 %v2579_v25, 0.0  ;;  %v2930_v56 = vmul.f32 %v6603_v40, %v2726_v37 }
 0x2c7   :  { %v2911_v4 = vmul.f32 %v6593_v27, %v2707_v3  ;;  %v2709_v12 = vmax.f32 %v2649_v50, 0.0  ;;  %4024 = vmatmul.mubr.bf16.gmra.mrb[240].mxu0 %v4951_v16  ;;  %v2896_v22 = vmul.f32 %v6603_v40, %v2692_v48  ;;  %v4954_v48 = vld [vmem:[%s6996_s4 + $0xe8] ss:$36 sps:$4 sm:$0xff]  }
 0x2c8   :  { %v2947_v42 = vmul.f32 %v6603_v40, %v2743_v24  ;;  %v6624_v34 = vmul.f32 %v6584_v30, %v2708_v29  ;;  %v2582_v1 = vpop.f32.mrb[188].mxu0  ;;  %4031 = vmatprep.mubr.bf16.mxu0 %v4952_v44 }
 0x2c9   :  { %v2913_v41 = vmul.f32 %v6603_v40, %v2709_v12  ;;  %v2583_v52 = vadd.f32 %v2582_v1, %v5811_v59  ;;  %v4859_v46 = vpop.f32.mrb[204].mxu1  ;;  %v2584_v6 = vpop.f32.mrb[189].mxu0  ;;  %v3030_v36 = vpack.c.bf16 %v2911_v4, %v2894_v32  ;;  %v4955_v32 = vld [vmem:[%s6996_s4 + $0x134] ss:$36 sps:$4 sm:$0xff]  }
 0x2ca   :  { %v2670_v43 = vadd.f32 %v4859_v46, %v5880_v54  ;;  %v2585_v0 = vadd.f32 %v2584_v6, %v5811_v59  ;;  %v2661_v61 = vpop.f32.mrb[205].mxu1  ;;  %v2586_v60 = vpop.f32.mrb[190].mxu0  ;;  %v3049_v45 = vpack.c.bf16 %v2947_v42, %v2930_v56  ;;  %v3031_v16 = vpack.c.bf16 %v6624_v34, %v6617_v11 }
 0x2cb   :  { %v2724_v37 = vmax.f32 %v2583_v52, 0.0  ;;  %v2662_v63 = vadd.f32 %v2661_v61, %v5854_v35  ;;  %v2587_v47 = vadd.f32 %v2586_v60, %v5832_v15  ;;  %v4860_v25 = vpop.f32.mrb[206].mxu1  ;;  %v2588_v20 = vpop.f32.mrb[191].mxu0  ;;  %4735 = vmatprep.subr.bf16.mxu1 %v3030_v36  ;;  %v3032_v44 = vpack.c.bf16 %v2913_v41, %v2896_v22 }
 0x2cc   :  { %v2794_v59 = vmax.f32 %v2670_v43, 0.0  ;;  %v2725_v3 = vmax.f32 %v2585_v0, 0.0  ;;  %v2673_v50 = vadd.f32 %v4860_v25, %v5885_v23  ;;  %v2589_v24 = vadd.f32 %v2588_v20, %v5832_v15  ;;  %v2664_v29 = vpop.f32.mrb[207].mxu1  ;;  %4736 = vmatpush3.bf16.msra.mxu1 %v3028_v51 }
 0x2cd   :  { %v2760_v4 = vmax.f32 %v2662_v63, 0.0  ;;  %v2741_v12 = vmax.f32 %v2587_v47, 0.0  ;;  %v2665_v56 = vadd.f32 %v2664_v29, %v5862_v17  ;;  %4861 = vmatprep.subr.bf16.mxu0 %v3032_v44  ;;  %v2928_v15 = vmul.f32 %v6593_v27, %v2724_v37 }
 0x2ce   :  { %v6648_v42 = vmul.f32 %v6584_v30, %v2725_v3  ;;  %v2811_v1 = vmax.f32 %v2673_v50, 0.0  ;;  %v2742_v22 = vmax.f32 %v2589_v24, 0.0  ;;  %4862 = vmatpush3.bf16.msra.mxu0 %v3032_v44  ;;  %v2998_v51 = vmul.f32 %v6603_v40, %v2794_v59 }
 0x2cf   :  { %v2945_v58 = vmul.f32 %v6593_v27, %v2741_v12  ;;  %v2777_v38 = vmax.f32 %v2665_v56, 0.0  ;;  %4863 = vmatprep.subr.bf16.mxu0 %v3049_v45  ;;  %4032 = vmatmul.mubr.bf16.gmra.mrb[244].mxu0 %v4954_v48  ;;  %v2964_v6 = vmul.f32 %v6603_v40, %v2760_v4 }
 0x2d0   :  { %v3015_v41 = vmul.f32 %v6603_v40, %v2811_v1  ;;  %v6655_v52 = vmul.f32 %v6584_v30, %v2742_v22  ;;  %v2592_v46 = vpop.f32.mrb[192].mxu0  ;;  %4039 = vmatprep.mubr.bf16.mxu0 %v4955_v32 }
 0x2d1   :  { %v2981_v36 = vmul.f32 %v6603_v40, %v2777_v38  ;;  %v2593_v43 = vadd.f32 %v2592_v46, %v5854_v35  ;;  %v2594_v0 = vpop.f32.mrb[193].mxu0  ;;  %v3047_v61 = vpack.c.bf16 %v2945_v58, %v2928_v15  ;;  %v4957_v40 = vld [vmem:[%s6996_s4 + $0x130] ss:$36 sps:$4 sm:$0xff]   ;;  %v4960_v58 = vld [vmem:[%s6996_s4 + $0x178] ss:$36 sps:$4 sm:$0xff]  }
 0x2d2   :  { %v2595_v60 = vadd.f32 %v2594_v0, %v5854_v35  ;;  %4864 = vmatpush3.bf16.msra.mxu0 %v3049_v45  ;;  %v2596_v37 = vpop.f32.mrb[194].mxu0  ;;  %v3083_v63 = vpack.c.bf16 %v3015_v41, %v2998_v51  ;;  %v3048_v47 = vpack.c.bf16 %v6655_v52, %v6648_v42  ;;  %v4958_v35 = vld [vmem:[%s6996_s4 + $0x17c] ss:$36 sps:$4 sm:$0xff]  }
 0x2d3   :  { %v2758_v25 = vmax.f32 %v2593_v43, 0.0  ;;  %v2597_v20 = vadd.f32 %v2596_v37, %v5862_v17  ;;  %v2598_v44 = vpop.f32.mrb[195].mxu0  ;;  %4737 = vmatprep.subr.bf16.mxu1 %v3047_v61  ;;  %v3066_v48 = vpack.c.bf16 %v2981_v36, %v2964_v6 }
 0x2d4   :  { %v2759_v59 = vmax.f32 %v2595_v60, 0.0  ;;  %v2599_v3 = vadd.f32 %v2598_v44, %v5862_v17  ;;  %4738 = vmatpush3.bf16.msra.mxu1 %v3045_v55  ;;  %v4990_v44 = vld [vmem:[%s6996_s4 + $0x184] ss:$36 sps:$4 sm:$0xff]  }
 0x2d5   :  { %v2775_v45 = vmax.f32 %v2597_v20, 0.0  ;;  %4865 = vmatprep.subr.bf16.mxu0 %v3066_v48  ;;  %v2962_v29 = vmul.f32 %v6593_v27, %v2758_v25 }
 0x2d6   :  { %v2963_v50 = vmul.f32 %v6584_v30, %v2759_v59  ;;  %v2776_v24 = vmax.f32 %v2599_v3, 0.0  ;;  %4866 = vmatpush3.bf16.msra.mxu0 %v3066_v48 }
 0x2d7   :  { %v2979_v32 = vmul.f32 %v6593_v27, %v2775_v45  ;;  %4867 = vmatprep.subr.bf16.mxu0 %v3083_v63  ;;  %4040 = vmatmul.mubr.bf16.gmra.mrb[248].mxu0 %v4957_v40 }
 0x2d8   :  { %v2980_v17 = vmul.f32 %v6584_v30, %v2776_v24  ;;  %v2602_v31 = vpop.f32.mrb[196].mxu0  ;;  %4047 = vmatprep.mubr.bf16.mxu0 %v4958_v35  ;;  %v4988_v35 = vld [vmem:[%s6996_s4 + $0x180] ss:$36 sps:$4 sm:$0xff]   ;;  %v4993_v24 = vld [vmem:[%s6996_s4 + $0x1cc] ss:$36 sps:$4 sm:$0xff]  }
 0x2d9   :  { %v2603_v13 = vadd.f32 %v2602_v31, %v5880_v54  ;;  %v2604_v55 = vpop.f32.mrb[197].mxu0  ;;  %v3064_v4 = vpack.c.bf16 %v2979_v32, %v2962_v29 }
 0x2da   :  { %v2605_v12 = vadd.f32 %v2604_v55, %v5880_v54  ;;  %4868 = vmatpush3.bf16.msra.mxu0 %v3083_v63  ;;  %v2606_v56 = vpop.f32.mrb[198].mxu0  ;;  %v3065_v42 = vpack.c.bf16 %v2980_v17, %v2963_v50  ;;  %v4963_v54 = vld [vmem:[%s6996_s4 + $0x1c4] ss:$36 sps:$4 sm:$0xff]  }
 0x2db   :  { %v2792_v1 = vmax.f32 %v2603_v13, 0.0  ;;  %v2607_v22 = vadd.f32 %v2606_v56, %v5885_v23  ;;  %v2608_v15 = vpop.f32.mrb[199].mxu0  ;;  %4739 = vmatprep.subr.bf16.mxu1 %v3064_v4  ;;  %v4991_v13 = vld [vmem:[%s6996_s4 + $0x1c8] ss:$36 sps:$4 sm:$0xff]  }
 0x2dc   :  { %v2793_v38 = vmax.f32 %v2605_v12, 0.0  ;;  %v2609_v51 = vadd.f32 %v2608_v15, %v5885_v23  ;;  %4740 = vmatpush3.bf16.msra.mxu1 %v3062_v7  ;;  %v4964_v7 = vld [vmem:[%s6996_s4 + $0x208] ss:$36 sps:$4 sm:$0xff]   ;;  %v4998_v12 = vld [vmem:[%s6996_s4 + $0x214] ss:$36 sps:$4 sm:$0xff]  }
 0x2dd   :  { %v2809_v41 = vmax.f32 %v2607_v22, 0.0  ;;  %v2996_v6 = vmul.f32 %v6593_v27, %v2792_v1  ;;  %v4996_v15 = vld [vmem:[%s6996_s4 + $0x210] ss:$36 sps:$4 sm:$0xff]  }
 0x2de   :  { %v2997_v52 = vmul.f32 %v6584_v30, %v2793_v38  ;;  %v2810_v46 = vmax.f32 %v2609_v51, 0.0 }
 0x2df   :  { %v3013_v36 = vmul.f32 %v6593_v27, %v2809_v41  ;;  %4048 = vmatmul.mubr.bf16.gmra.mrb[252].mxu0 %v4960_v58  ;;  %v4982_v27 = vld [vmem:[%s6996_s4 + $0xf0] ss:$36 sps:$4 sm:$0xff]  }
 0x2e0   :  { %v3014_v43 = vmul.f32 %v6584_v30, %v2810_v46  ;;  %4055 = vmatprep.mubr.bf16.mxu0 %v4963_v54 }
 0x2e1   :  { %v3081_v23 = vpack.c.bf16 %v3013_v36, %v2996_v6 }
 0x2e2   :  { %v3082_v0 = vpack.c.bf16 %v3014_v43, %v2997_v52 }
 0x2e3   :  { %4741 = vmatprep.subr.bf16.mxu1 %v3081_v23 }
 0x2e4   :  { %4742 = vmatpush3.bf16.msra.mxu1 %v3079_v33 }
 0x2e5   :  { %4743 = vmatprep.subr.bf16.mxu1 %v3031_v16  ;;  %v4985_v16 = vld [vmem:[%s6996_s4 + $0x13c] ss:$36 sps:$4 sm:$0xff]  }
 0x2e7   :  { %4056 = vmatmul.mubr.bf16.gmra.mrb[0].mxu0 %v4961_v5 }
 0x2e8   :  { %4744 = vmatpush3.bf16.msra.mxu1 %v3029_v21  ;;  %4063 = vmatprep.mubr.bf16.mxu0 %v4966_v8  ;;  %v4972_v21 = vld [vmem:[%s6996_s4 + $0x64] ss:$36 sps:$4 sm:$0xff]  }
 0x2e9   :  { %4745 = vmatprep.subr.bf16.mxu1 %v3048_v47  ;;  %v4983_v47 = vld [vmem:[%s6996_s4 + $0x138] ss:$36 sps:$4 sm:$0xff]  }
 0x2ec   :  { %4746 = vmatpush3.bf16.msra.mxu1 %v3046_v9  ;;  %v4979_v9 = vld [vmem:[%s6996_s4 + $0xf8] ss:$36 sps:$4 sm:$0xff]  }
 0x2ed   :  { %4747 = vmatprep.subr.bf16.mxu1 %v3065_v42 }
 0x2ef   :  { %4064 = vmatmul.mubr.bf16.gmra.mrb[4].mxu0 %v4964_v7 }
 0x2f0   :  { %4748 = vmatpush3.bf16.msra.mxu1 %v3063_v2  ;;  %4869 = vmatprep.mubr.msk.bf16.mxu0 %vm3756_vm1, %v4970_v10  ;;  %v4977_v2 = vld [vmem:[%s6996_s4 + $0xa8] ss:$36 sps:$4 sm:$0xff]  }
 0x2f1   :  { %4749 = vmatprep.subr.bf16.mxu1 %v3082_v0 }
 0x2f4   :  { %4750 = vmatpush3.bf16.msra.mxu1 %v3080_v62  ;;  %v4995_v62 = vld [vmem:[%s6996_s4 + $0x218] ss:$36 sps:$4 sm:$0xff]  }
 0x2f7   :  { %4105 = vmatmul.mubr.bf16.vlgmr.msra.gmra.mrb[240].mxu1 %v4967_v53  ;;  %4870 = vmatmul.mubr.msk.bf16.vlgmr.msra.gmra.mrb[8].mxu0 %vm3756_vm1, %v4971_v26 }
 0x2f8   :  { %4112 = vmatprep.mubr.bf16.mxu1 %v4972_v21  ;;  %4873 = vmatprep.mubr.msk.bf16.mxu0 %vm3756_vm1, %v4978_v19 }
 0x2ff   :  { %4113 = vmatmul.mubr.bf16.gmra.mrb[244].mxu1 %v4974_v49  ;;  %4874 = vmatmul.mubr.msk.bf16.gmra.mrb[12].mxu0 %vm3756_vm1, %v4979_v9 }
 0x300   :  { %4120 = vmatprep.mubr.bf16.mxu1 %v4975_v18  ;;  %4877 = vmatprep.mubr.msk.bf16.mxu0 %vm3756_vm1, %v4986_v28  ;;  %v3319_v28 = vpop.permute.xlu0 %3318 }
 0x307   :  { %4121 = vmatmul.mubr.bf16.gmra.mrb[248].mxu1 %v4977_v2  ;;  %4878 = vmatmul.mubr.msk.bf16.gmra.mrb[16].mxu0 %vm3756_vm1, %v4987_v39 }
 0x308   :  { %4128 = vmatprep.mubr.bf16.mxu1 %v4980_v57  ;;  %4881 = vmatprep.mubr.msk.bf16.mxu0 %vm3756_vm1, %v4994_v14 }
 0x30a   :  { %v4559_v30 = vpop.f32.mrb[200].mxu0 }
 0x30b   :  { %v4560_v33 = vpop.f32.mrb[201].mxu0 }
 0x30c   :  { %v6774_v11 = vadd.f32 %v4560_v33, %v4559_v30  ;;  %v4562_v34 = vpop.f32.mrb[202].mxu0  ;;  %v3324_v30 = vpop.permute.xlu1 %3323 }
 0x30d   :  { %v4563_v61 = vpop.f32.mrb[203].mxu0 }
 0x30e   :  { %v6779_v60 = vadd.f32 %v4563_v61, %v4562_v34  ;;  %v3816_v39 = vadd.f32 %v6774_v11, %v3319_v28 }
 0x30f   :  { %4129 = vmatmul.mubr.bf16.gmra.mrb[252].mxu1 %v4982_v27  ;;  %4882 = vmatmul.mubr.msk.bf16.gmra.mrb[20].mxu0 %vm3756_vm1, %v4995_v62 }
 0x310   :  { %4136 = vmatprep.mubr.bf16.mxu1 %v4985_v16  ;;  %v3819_v27 = vadd.f32 %v6779_v60, %v3324_v30 }
 0x312   :  { %v4565_v37 = vpop.f32.mrb[204].mxu0 }
 0x313   :  { %v4566_v63 = vpop.f32.mrb[205].mxu0 }
 0x314   :  { %v6785_v25 = vadd.f32 %v4566_v63, %v4565_v37  ;;  %v4568_v20 = vpop.f32.mrb[206].mxu0  ;;  %v3329_v37 = vpop.permute.xlu0 %3328 }
 0x315   :  { %v4569_v48 = vpop.f32.mrb[207].mxu0 }
 0x316   :  { %v6790_v40 = vadd.f32 %v4569_v48, %v4568_v20  ;;  %v3334_v48 = vpop.permute.xlu1 %3333 }
 0x317   :  { %4137 = vmatmul.mubr.bf16.gmra.mrb[0].mxu1 %v4983_v47  ;;  %v3824_v47 = vadd.f32 %v6785_v25, %v3329_v37 }
 0x318   :  { %4144 = vmatprep.mubr.bf16.mxu1 %v4990_v44 }
 0x31a   :  { %v4571_v59 = vpop.f32.mrb[208].mxu0 }
 0x31b   :  { %v4572_v3 = vpop.f32.mrb[209].mxu0 }
 0x31c   :  { %v6795_v45 = vadd.f32 %v4572_v3, %v4571_v59  ;;  %v4574_v50 = vpop.f32.mrb[210].mxu0  ;;  %v3827_v59 = vadd.f32 %v6790_v40, %v3334_v48 }
 0x31d   :  { %v4575_v29 = vpop.f32.mrb[211].mxu0 }
 0x31e   :  { %v6800_v32 = vadd.f32 %v4575_v29, %v4574_v50 }
 0x31f   :  { %4145 = vmatmul.mubr.bf16.gmra.mrb[4].mxu1 %v4988_v35 }
 0x320   :  { %4152 = vmatprep.mubr.bf16.mxu1 %v4993_v24  ;;  %v3339_v24 = vpop.permute.xlu0 %3338 }
 0x322   :  { %v4577_v17 = vpop.f32.mrb[212].mxu0 }
 0x323   :  { %v4578_v31 = vpop.f32.mrb[213].mxu0 }
 0x324   :  { %v6805_v55 = vadd.f32 %v4578_v31, %v4577_v17  ;;  %v4580_v4 = vpop.f32.mrb[214].mxu0  ;;  %v3832_v17 = vadd.f32 %v6795_v45, %v3339_v24 }
 0x325   :  { %v4581_v56 = vpop.f32.mrb[215].mxu0 }
 0x326   :  { %v6810_v42 = vadd.f32 %v4581_v56, %v4580_v4  ;;  %v3344_v4 = vpop.permute.xlu1 %3343 }
 0x327   :  { %4153 = vmatmul.mubr.bf16.gmra.mrb[8].mxu1 %v4991_v13 }
 0x328   :  { %4160 = vmatprep.mubr.bf16.mxu1 %v4998_v12  ;;  %v3835_v12 = vadd.f32 %v6800_v32, %v3344_v4 }
 0x32a   :  { %v4583_v1 = vpop.f32.mrb[216].mxu0 }
 0x32b   :  { %v4584_v22 = vpop.f32.mrb[217].mxu0 }
 0x32c   :  { %v6815_v58 = vadd.f32 %v4584_v22, %v4583_v1  ;;  %v4586_v38 = vpop.f32.mrb[218].mxu0 }
 0x32d   :  { %v4587_v51 = vpop.f32.mrb[219].mxu0 }
 0x32e   :  { %v6817_v54 = vadd.f32 %v4587_v51, %v4586_v38 }
 0x32f   :  { %4161 = vmatmul.mubr.bf16.gmra.mrb[12].mxu1 %v4996_v15  ;;  %v3349_v15 = vpop.permute.xlu0 %3348 }
 0x330   :  { %v3840_v51 = vadd.f32 %v6805_v55, %v3349_v15 }
 0x332   :  { %v4589_v41 = vpop.f32.mrb[220].mxu0 }
 0x333   :  { %v4590_v52 = vpop.f32.mrb[221].mxu0 }
 0x334   :  { %v6819_v46 = vadd.f32 %v4590_v52, %v4589_v41  ;;  %v4592_v6 = vpop.f32.mrb[222].mxu0 }
 0x335   :  { %v4593_v36 = vpop.f32.mrb[223].mxu0 }
 0x336   :  { %v6821_v43 = vadd.f32 %v4593_v36, %v4592_v6  ;;  %v3354_v6 = vpop.permute.xlu1 %3353 }
 0x337   :  { %v3843_v36 = vadd.f32 %v6810_v42, %v3354_v6 }
 0x33a   :  { %v4595_v23 = vpop.f32.mrb[224].mxu0 }
 0x33b   :  { %v4596_v0 = vpop.f32.mrb[225].mxu0 }
 0x33c   :  { %v6823_v5 = vadd.f32 %v4596_v0, %v4595_v23  ;;  %v4598_v8 = vpop.f32.mrb[226].mxu0 }
 0x33d   :  { %v4599_v7 = vpop.f32.mrb[227].mxu0 }
 0x33e   :  { %v6825_v10 = vadd.f32 %v4599_v7, %v4598_v8  ;;  %v3359_v7 = vpop.permute.xlu0 %3358 }
 0x342   :  { %v4601_v53 = vpop.f32.mrb[228].mxu0 }
 0x343   :  { %v4602_v26 = vpop.f32.mrb[229].mxu0 }
 0x344   :  { %v6827_v21 = vadd.f32 %v4602_v26, %v4601_v53  ;;  %v4604_v19 = vpop.f32.mrb[230].mxu0  ;;  %v3848_v26 = vadd.f32 %v6815_v58, %v3359_v7 }
 0x345   :  { %v4605_v49 = vpop.f32.mrb[231].mxu0 }
 0x346   :  { %v6829_v9 = vadd.f32 %v4605_v49, %v4604_v19 }
 0x34a   :  { %v4623_v18 = vpop.f32.mrb[208].mxu1 }
 0x34b   :  { %v4624_v2 = vpop.f32.mrb[209].mxu1 }
 0x34c   :  { %v4625_v57 = vadd.f32 %v4624_v2, %v4623_v18  ;;  %v4626_v14 = vpop.f32.mrb[210].mxu1  ;;  %v3364_v18 = vpop.permute.xlu1 %3363 }
 0x34d   :  { %v4627_v33 = vpop.f32.mrb[211].mxu1  ;;  %v3851_v28 = vadd.f32 %v6817_v54, %v3364_v18 }
 0x34e   :  { %v6833_v62 = vadd.f32 %v4625_v57, %v3816_v39  ;;  %v4628_v34 = vadd.f32 %v4627_v33, %v4626_v14  ;;  %v3369_v14 = vpop.permute.xlu0 %3368 }
 0x34f   :  { %v3856_v33 = vadd.f32 %v6819_v46, %v3369_v14 }
 0x350   :  { %v6835_v16 = vadd.f32 %v4628_v34, %v3819_v27 }
 0x352   :  { %v4629_v61 = vpop.f32.mrb[212].mxu1 }
 0x353   :  { %v4630_v63 = vpop.f32.mrb[213].mxu1 }
 0x354   :  { %v4631_v20 = vadd.f32 %v4630_v63, %v4629_v61  ;;  %v4632_v44 = vpop.f32.mrb[214].mxu1  ;;  %v3374_v61 = vpop.permute.xlu1 %3373 }
 0x355   :  { %v4633_v11 = vpop.f32.mrb[215].mxu1  ;;  %v3859_v37 = vadd.f32 %v6821_v43, %v3374_v61 }
 0x356   :  { %v6839_v3 = vadd.f32 %v4631_v20, %v3824_v47  ;;  %v4634_v35 = vadd.f32 %v4633_v11, %v4632_v44  ;;  %v3379_v44 = vpop.permute.xlu0 %3378 }
 0x357   :  { %v3864_v11 = vadd.f32 %v6823_v5, %v3379_v44 }
 0x358   :  { %v6841_v60 = vadd.f32 %v4634_v35, %v3827_v59 }
 0x35a   :  { %v4635_v50 = vpop.f32.mrb[216].mxu1 }
 0x35b   :  { %v4636_v29 = vpop.f32.mrb[217].mxu1 }
 0x35c   :  { %v4637_v31 = vadd.f32 %v4636_v29, %v4635_v50  ;;  %v4638_v13 = vpop.f32.mrb[218].mxu1  ;;  %v3384_v50 = vpop.permute.xlu1 %3383 }
 0x35d   :  { %v4639_v25 = vpop.f32.mrb[219].mxu1  ;;  %v3867_v24 = vadd.f32 %v6825_v10, %v3384_v50 }
 0x35e   :  { %v6845_v56 = vadd.f32 %v4637_v31, %v3832_v17  ;;  %v4640_v1 = vadd.f32 %v4639_v25, %v4638_v13  ;;  %v3389_v13 = vpop.permute.xlu0 %3388 }
 0x35f   :  { %v3872_v25 = vadd.f32 %v6827_v21, %v3389_v13 }
 0x360   :  { %v6847_v40 = vadd.f32 %v4640_v1, %v3835_v12 }
 0x362   :  { %v4641_v22 = vpop.f32.mrb[220].mxu1 }
 0x363   :  { %v4642_v38 = vpop.f32.mrb[221].mxu1 }
 0x364   :  { %v4643_v41 = vadd.f32 %v4642_v38, %v4641_v22  ;;  %v4644_v52 = vpop.f32.mrb[222].mxu1  ;;  %v3394_v22 = vpop.permute.xlu1 %3393 }
 0x365   :  { %v4645_v45 = vpop.f32.mrb[223].mxu1  ;;  %v3875_v15 = vadd.f32 %v6829_v9, %v3394_v22 }
 0x366   :  { %v6851_v23 = vadd.f32 %v4643_v41, %v3840_v51  ;;  %v4646_v0 = vadd.f32 %v4645_v45, %v4644_v52 }
 0x368   :  { %v6853_v32 = vadd.f32 %v4646_v0, %v3843_v36 }
 0x36a   :  { %v4647_v8 = vpop.f32.mrb[224].mxu1 }
 0x36b   :  { %v4648_v53 = vpop.f32.mrb[225].mxu1 }
 0x36c   :  { %v4649_v19 = vadd.f32 %v4648_v53, %v4647_v8  ;;  %v4650_v49 = vpop.f32.mrb[226].mxu1 }
 0x36d   :  { %v4651_v55 = vpop.f32.mrb[227].mxu1 }
 0x36e   :  { %v6857_v2 = vadd.f32 %v4649_v19, %v3848_v26  ;;  %v4652_v39 = vadd.f32 %v4651_v55, %v4650_v49 }
 0x370   :  { %v6859_v42 = vadd.f32 %v4652_v39, %v3851_v28 }
 0x372   :  { %v4653_v57 = vpop.f32.mrb[228].mxu1 }
 0x373   :  { %v4654_v30 = vpop.f32.mrb[229].mxu1 }
 0x374   :  { %v4655_v27 = vadd.f32 %v4654_v30, %v4653_v57  ;;  %v4656_v34 = vpop.f32.mrb[230].mxu1 }
 0x375   :  { %v4657_v58 = vpop.f32.mrb[231].mxu1 }
 0x376   :  { %v6863_v63 = vadd.f32 %v4655_v27, %v3856_v33  ;;  %v4658_v47 = vadd.f32 %v4657_v58, %v4656_v34 }
 0x378   :  { %v6865_v54 = vadd.f32 %v4658_v47, %v3859_v37 }
 0x37a   :  { %v4659_v20 = vpop.f32.mrb[232].mxu1 }
 0x37b   :  { %v4660_v48 = vpop.f32.mrb[233].mxu1 }
 0x37c   :  { %v4661_v59 = vadd.f32 %v4660_v48, %v4659_v20  ;;  %v4662_v35 = vpop.f32.mrb[234].mxu1 }
 0x37d   :  { %v4663_v46 = vpop.f32.mrb[235].mxu1 }
 0x37e   :  { %v6869_v29 = vadd.f32 %v4661_v59, %v3864_v11  ;;  %v4664_v17 = vadd.f32 %v4663_v46, %v4662_v35 }
 0x380   :  { %v6871_v43 = vadd.f32 %v4664_v17, %v3867_v24 }
 0x382   :  { %v4665_v31 = vpop.f32.mrb[236].mxu1 }
 0x383   :  { %v4666_v4 = vpop.f32.mrb[237].mxu1 }
 0x384   :  { %v4667_v12 = vadd.f32 %v4666_v4, %v4665_v31  ;;  %v4668_v1 = vpop.f32.mrb[238].mxu1 }
 0x385   :  { %v4669_v5 = vpop.f32.mrb[239].mxu1 }
 0x386   :  { %v6875_v38 = vadd.f32 %v4667_v12, %v3872_v25  ;;  %v4670_v51 = vadd.f32 %v4669_v5, %v4668_v1 }
 0x388   :  { %v6877_v10 = vadd.f32 %v4670_v51, %v3875_v15 }
 0x38a   :  { %v4687_v41 = vpop.f32.mrb[232].mxu0 }
 0x38b   :  { %v4688_v52 = vpop.f32.mrb[233].mxu0 }
 0x38c   :  { %v4689_v6 = vadd.f32 %v4688_v52, %v4687_v41  ;;  %v4690_v45 = vpop.f32.mrb[234].mxu0 }
 0x38d   :  { %v4691_v36 = vpop.f32.mrb[235].mxu0 }
 0x38e   :  { %v6880_v0 = vadd.f32 %v4689_v6, %v6833_v62  ;;  %v4692_v21 = vadd.f32 %v4691_v36, %v4690_v45 }
 0x390   :  { %v6883_v8 = vadd.f32 %v4692_v21, %v6835_v16 }
 0x392   :  { %v4693_v7 = vpop.f32.mrb[236].mxu0 }
 0x393   :  { %v4694_v53 = vpop.f32.mrb[237].mxu0 }
 0x394   :  { %v4695_v9 = vadd.f32 %v4694_v53, %v4693_v7  ;;  %v4696_v26 = vpop.f32.mrb[238].mxu0 }
 0x395   :  { %v4697_v19 = vpop.f32.mrb[239].mxu0 }
 0x396   :  { %v6886_v49 = vadd.f32 %v4695_v9, %v6839_v3  ;;  %v4698_v18 = vadd.f32 %v4697_v19, %v4696_v26 }
 0x398   :  { %v6889_v55 = vadd.f32 %v4698_v18, %v6841_v60 }
 0x39a   :  { %v4699_v28 = vpop.f32.mrb[240].mxu0 }
 0x39b   :  { %v4700_v39 = vpop.f32.mrb[241].mxu0 }
 0x39c   :  { %v4701_v62 = vadd.f32 %v4700_v39, %v4699_v28  ;;  %v4702_v57 = vpop.f32.mrb[242].mxu0 }
 0x39d   :  { %v4703_v14 = vpop.f32.mrb[243].mxu0 }
 0x39e   :  { %v6892_v16 = vadd.f32 %v4701_v62, %v6845_v56  ;;  %v4704_v30 = vadd.f32 %v4703_v14, %v4702_v57 }
 0x3a0   :  { %v6895_v33 = vadd.f32 %v4704_v30, %v6847_v40 }
 0x3a2   :  { %v4705_v27 = vpop.f32.mrb[244].mxu0 }
 0x3a3   :  { %v4706_v34 = vpop.f32.mrb[245].mxu0 }
 0x3a4   :  { %v4707_v3 = vadd.f32 %v4706_v34, %v4705_v27  ;;  %v4708_v61 = vpop.f32.mrb[246].mxu0 }
 0x3a5   :  { %v4709_v58 = vpop.f32.mrb[247].mxu0 }
 0x3a6   :  { %v6898_v60 = vadd.f32 %v4707_v3, %v6851_v23  ;;  %v4710_v37 = vadd.f32 %v4709_v58, %v4708_v61 }
 0x3a8   :  { %v6901_v47 = vadd.f32 %v4710_v37, %v6853_v32 }
 0x3aa   :  { %v4711_v20 = vpop.f32.mrb[248].mxu0 }
 0x3ab   :  { %v4712_v44 = vpop.f32.mrb[249].mxu0 }
 0x3ac   :  { %v4713_v56 = vadd.f32 %v4712_v44, %v4711_v20  ;;  %v4714_v48 = vpop.f32.mrb[250].mxu0 }
 0x3ad   :  { %v4715_v11 = vpop.f32.mrb[251].mxu0 }
 0x3ae   :  { %v6904_v40 = vadd.f32 %v4713_v56, %v6857_v2  ;;  %v4716_v59 = vadd.f32 %v4715_v11, %v4714_v48 }
 0x3b0   :  { %v6907_v35 = vadd.f32 %v4716_v59, %v6859_v42 }
 0x3b2   :  { %v4717_v50 = vpop.f32.mrb[252].mxu0 }
 0x3b3   :  { %v4718_v46 = vpop.f32.mrb[253].mxu0 }
 0x3b4   :  { %v4719_v23 = vadd.f32 %v4718_v46, %v4717_v50  ;;  %v4720_v24 = vpop.f32.mrb[254].mxu0 }
 0x3b5   :  { %v4721_v17 = vpop.f32.mrb[255].mxu0 }
 0x3b6   :  { %v6910_v32 = vadd.f32 %v4719_v23, %v6863_v63  ;;  %v4722_v31 = vadd.f32 %v4721_v17, %v4720_v24 }
 0x3b8   :  { %v6913_v13 = vadd.f32 %v4722_v31, %v6865_v54 }
 0x3ba   :  { %v4723_v4 = vpop.f32.mrb[0].mxu0 }
 0x3bb   :  { %v4724_v25 = vpop.f32.mrb[1].mxu0 }
 0x3bc   :  { %v4725_v2 = vadd.f32 %v4724_v25, %v4723_v4  ;;  %v4726_v12 = vpop.f32.mrb[2].mxu0 }
 0x3bd   :  { %v4727_v1 = vpop.f32.mrb[3].mxu0 }
 0x3be   :  { %v6916_v42 = vadd.f32 %v4725_v2, %v6869_v29  ;;  %v4728_v22 = vadd.f32 %v4727_v1, %v4726_v12 }
 0x3c0   :  { %v6919_v5 = vadd.f32 %v4728_v22, %v6871_v43 }
 0x3c2   :  { %v4729_v15 = vpop.f32.mrb[4].mxu0 }
 0x3c3   :  { %v4730_v51 = vpop.f32.mrb[5].mxu0 }
 0x3c4   :  { %v4731_v63 = vadd.f32 %v4730_v51, %v4729_v15  ;;  %v4732_v41 = vpop.f32.mrb[6].mxu0 }
 0x3c5   :  { %v4733_v52 = vpop.f32.mrb[7].mxu0 }
 0x3c6   :  { %v6922_v54 = vadd.f32 %v4731_v63, %v6875_v38  ;;  %v4734_v6 = vadd.f32 %v4733_v52, %v4732_v41 }
 0x3c8   :  { %v6925_v45 = vadd.f32 %v4734_v6, %v6877_v10 }
 0x3ca   :  { %v4751_v36 = vpop.f32.mrb[240].mxu1  ;;  %v4871_v21 = vpop.f32.mrb[8].mxu0 }
 0x3cb   :  { %v4752_v29 = vpop.f32.mrb[241].mxu1  ;;  %v4203_v7 = vpop.f32.mrb[9].mxu0 }
 0x3cc   :  { %v4753_v53 = vadd.f32 %v4752_v29, %v4751_v36  ;;  %v4754_v9 = vpop.f32.mrb[242].mxu1  ;;  %v4872_v43 = vpop.f32.mrb[10].mxu0 }
 0x3cd   :  { %v4755_v26 = vpop.f32.mrb[243].mxu1  ;;  %v4206_v19 = vpop.f32.mrb[11].mxu0 }
 0x3ce   :  { %v4756_v18 = vadd.f32 %v4755_v26, %v4754_v9  ;;  %v4107_v28 = vadd.f32 %v4753_v53, %v6880_v0 }
 0x3d0   :  { %v4204_v39 = vadd.f32 %v4203_v7, %v4107_v28  ;;  %v4110_v38 = vadd.f32 %v4756_v18, %v6883_v8 }
 0x3d2   :  { %4266 = vst [vmem:[%s6997_s6] sm:$0xff] %v4204_v39  ;;  %v4207_v10 = vadd.f32 %v4206_v19, %v4110_v38  ;;  %v4757_v62 = vpop.f32.mrb[244].mxu1  ;;  %v4875_v57 = vpop.f32.mrb[12].mxu0 }
 0x3d3   :  { %v4758_v14 = vpop.f32.mrb[245].mxu1  ;;  %v4219_v30 = vpop.f32.mrb[13].mxu0 }
 0x3d4   :  { %4267 = vst [vmem:[%s6997_s6 + $0x8] sm:$0xff] %v4207_v10  ;;  %v4759_v27 = vadd.f32 %v4758_v14, %v4757_v62  ;;  %v4760_v34 = vpop.f32.mrb[246].mxu1  ;;  %v4876_v3 = vpop.f32.mrb[14].mxu0 }
 0x3d5   :  { %v4761_v0 = vpop.f32.mrb[247].mxu1  ;;  %v4222_v61 = vpop.f32.mrb[15].mxu0 }
 0x3d6   :  { %v4115_v8 = vadd.f32 %v4759_v27, %v6886_v49  ;;  %v4762_v58 = vadd.f32 %v4761_v0, %v4760_v34 }
 0x3d8   :  { %v4212_v37 = vadd.f32 %v4871_v21, %v4115_v8  ;;  %v4118_v20 = vadd.f32 %v4762_v58, %v6889_v55 }
 0x3da   :  { %4268 = vst [vmem:[%s6997_s6 + $0x10] sm:$0xff] %v4212_v37  ;;  %v4215_v44 = vadd.f32 %v4872_v43, %v4118_v20  ;;  %v4763_v56 = vpop.f32.mrb[248].mxu1  ;;  %v4879_v48 = vpop.f32.mrb[16].mxu0 }
 0x3db   :  { %v4764_v11 = vpop.f32.mrb[249].mxu1  ;;  %v4235_v59 = vpop.f32.mrb[17].mxu0 }
 0x3dc   :  { %4269 = vst [vmem:[%s6997_s6 + $0x18] sm:$0xff] %v4215_v44  ;;  %v4765_v50 = vadd.f32 %v4764_v11, %v4763_v56  ;;  %v4766_v46 = vpop.f32.mrb[250].mxu1  ;;  %v4880_v49 = vpop.f32.mrb[18].mxu0 }
 0x3dd   :  { %v4767_v23 = vpop.f32.mrb[251].mxu1  ;;  %v4238_v24 = vpop.f32.mrb[19].mxu0 }
 0x3de   :  { %v4768_v17 = vadd.f32 %v4767_v23, %v4766_v46  ;;  %v4123_v55 = vadd.f32 %v4765_v50, %v6892_v16 }
 0x3e0   :  { %v4220_v31 = vadd.f32 %v4219_v30, %v4123_v55  ;;  %v4126_v4 = vadd.f32 %v4768_v17, %v6895_v33 }
 0x3e2   :  { %4270 = vst [vmem:[%s6997_s6 + $0x20] sm:$0xff] %v4220_v31  ;;  %v4223_v25 = vadd.f32 %v4222_v61, %v4126_v4  ;;  %v4769_v2 = vpop.f32.mrb[252].mxu1  ;;  %v4883_v12 = vpop.f32.mrb[20].mxu0 }
 0x3e3   :  { %v4770_v1 = vpop.f32.mrb[253].mxu1  ;;  %v4251_v22 = vpop.f32.mrb[21].mxu0 }
 0x3e4   :  { %4271 = vst [vmem:[%s6997_s6 + $0x28] sm:$0xff] %v4223_v25  ;;  %v4771_v15 = vadd.f32 %v4770_v1, %v4769_v2  ;;  %v4772_v51 = vpop.f32.mrb[254].mxu1  ;;  %v4884_v63 = vpop.f32.mrb[22].mxu0 }
 0x3e5   :  { %v4773_v16 = vpop.f32.mrb[255].mxu1  ;;  %v4254_v41 = vpop.f32.mrb[23].mxu0 }
 0x3e6   :  { %v4131_v33 = vadd.f32 %v4771_v15, %v6898_v60  ;;  %v4774_v52 = vadd.f32 %v4773_v16, %v4772_v51 }
 0x3e8   :  { %v4228_v6 = vadd.f32 %v4875_v57, %v4131_v33  ;;  %v4134_v36 = vadd.f32 %v4774_v52, %v6901_v47 }
 0x3ea   :  { %4272 = vst [vmem:[%s6997_s6 + $0x30] sm:$0xff] %v4228_v6  ;;  %v4231_v21 = vadd.f32 %v4876_v3, %v4134_v36  ;;  %v4775_v29 = vpop.f32.mrb[0].mxu1 }
 0x3eb   :  { %v4776_v7 = vpop.f32.mrb[1].mxu1 }
 0x3ec   :  { %4273 = vst [vmem:[%s6997_s6 + $0x38] sm:$0xff] %v4231_v21  ;;  %v4777_v53 = vadd.f32 %v4776_v7, %v4775_v29  ;;  %v4778_v9 = vpop.f32.mrb[2].mxu1 }
 0x3ed   :  { %v4779_v43 = vpop.f32.mrb[3].mxu1 }
 0x3ee   :  { %v4780_v26 = vadd.f32 %v4779_v43, %v4778_v9  ;;  %v4139_v60 = vadd.f32 %v4777_v53, %v6904_v40 }
 0x3f0   :  { %v4236_v19 = vadd.f32 %v4235_v59, %v4139_v60  ;;  %v4142_v47 = vadd.f32 %v4780_v26, %v6907_v35 }
 0x3f2   :  { %4274 = vst [vmem:[%s6997_s6 + $0x40] sm:$0xff] %v4236_v19  ;;  %v4239_v18 = vadd.f32 %v4238_v24, %v4142_v47  ;;  %v4781_v28 = vpop.f32.mrb[4].mxu1 }
 0x3f3   :  { %v4782_v39 = vpop.f32.mrb[5].mxu1 }
 0x3f4   :  { %4275 = vst [vmem:[%s6997_s6 + $0x48] sm:$0xff] %v4239_v18  ;;  %v4783_v38 = vadd.f32 %v4782_v39, %v4781_v28  ;;  %v4784_v10 = vpop.f32.mrb[6].mxu1 }
 0x3f5   :  { %v4785_v62 = vpop.f32.mrb[7].mxu1 }
 0x3f6   :  { %v4147_v57 = vadd.f32 %v4783_v38, %v6910_v32  ;;  %v4786_v40 = vadd.f32 %v4785_v62, %v4784_v10 }
 0x3f8   :  { %v4244_v14 = vadd.f32 %v4879_v48, %v4147_v57  ;;  %v4150_v35 = vadd.f32 %v4786_v40, %v6913_v13 }
 0x3fa   :  { %4276 = vst [vmem:[%s6997_s6 + $0x50] sm:$0xff] %v4244_v14  ;;  %v4247_v30 = vadd.f32 %v4880_v49, %v4150_v35  ;;  %v4787_v27 = vpop.f32.mrb[8].mxu1 }
 0x3fb   :  { %v4788_v34 = vpop.f32.mrb[9].mxu1 }
 0x3fc   :  { %4277 = vst [vmem:[%s6997_s6 + $0x58] sm:$0xff] %v4247_v30  ;;  %v4789_v3 = vadd.f32 %v4788_v34, %v4787_v27  ;;  %v4790_v0 = vpop.f32.mrb[10].mxu1 }
 0x3fd   :  { %v4791_v61 = vpop.f32.mrb[11].mxu1 }
 0x3fe   :  { %v4792_v8 = vadd.f32 %v4791_v61, %v4790_v0  ;;  %v4155_v32 = vadd.f32 %v4789_v3, %v6916_v42 }
 0x400   :  { %v4252_v58 = vadd.f32 %v4251_v22, %v4155_v32  ;;  %v4158_v13 = vadd.f32 %v4792_v8, %v6919_v5 }
 0x402   :  { %4278 = vst [vmem:[%s6997_s6 + $0x60] sm:$0xff] %v4252_v58  ;;  %v4255_v37 = vadd.f32 %v4254_v41, %v4158_v13  ;;  %v4793_v20 = vpop.f32.mrb[12].mxu1 }
 0x403   :  { %v4794_v44 = vpop.f32.mrb[13].mxu1 }
 0x404   :  { %4279 = vst [vmem:[%s6997_s6 + $0x68] sm:$0xff] %v4255_v37  ;;  %v4795_v56 = vadd.f32 %v4794_v44, %v4793_v20  ;;  %v4796_v48 = vpop.f32.mrb[14].mxu1 }
 0x405   :  { %v4797_v11 = vpop.f32.mrb[15].mxu1 }
 0x406   :  { %v4163_v59 = vadd.f32 %v4795_v56, %v6922_v54  ;;  %v4798_v42 = vadd.f32 %v4797_v11, %v4796_v48 }
 0x408   :  { %v4260_v50 = vadd.f32 %v4883_v12, %v4163_v59  ;;  %v4166_v5 = vadd.f32 %v4798_v42, %v6925_v45 }
 0x40a   :  { %4280 = vst [vmem:[%s6997_s6 + $0x70] sm:$0xff] %v4260_v50  ;;  %v4263_v46 = vadd.f32 %v4884_v63, %v4166_v5 }
 0x40c   :  { %4281 = vst [vmem:[%s6997_s6 + $0x78] sm:$0xff] %v4263_v46 }

</bundles_post_ra>
